<compile_context>
chip_gen: v6e
topology: v6e:2x2x1
jax: 0.10.0
libtpu: 0.0.40
codegen_flags: <defaults>
</compile_context>

<pallas_src>
import functools

import jax
import jax.numpy as jnp
from jax.experimental import pallas as pl
from jax.experimental.pallas import tpu as pltpu


_HEAD_K_TILE = 1024   # K (flat) tile of the fused linear head
_LANE = 128


def _round_up(x, m):
    return (x + m - 1) // m * m


def _silu(x):
    # x * sigmoid(x); the reciprocal goes to the EUP (separate issue slot) so
    # the epilogue stays off the VALU critical path.
    return x * pl.reciprocal(1.0 + jnp.exp(-x), approx=True)


# ----------------------------------------------------------------------------
# Kernel 1: DFT matmul  (fft(x)[k] = sum_n x[n] e^{-2i*pi*nk/S}, exact)
# ----------------------------------------------------------------------------
def _dft_kernel(x_ref, d_ref, o_ref):
    o_ref[...] = jnp.dot(x_ref[...], d_ref[...],
                         preferred_element_type=jnp.float32)


def dft_matmul(x, dft):
    """x: (M, S) f32 rows.  dft: (S, 2S) = [cos | -sin].  Returns (M, 2S) f32."""
    M, S = x.shape
    S2 = dft.shape[1]
    Mp = _round_up(M, 8)
    tm = min(Mp, 512)
    Mp = _round_up(Mp, tm)
    xd = jnp.pad(x, ((0, Mp - M), (0, 0))) if Mp != M else x

    out = pl.pallas_call(
        _dft_kernel,
        out_shape=jax.ShapeDtypeStruct((Mp, S2), jnp.float32),
        grid_spec=pltpu.PrefetchScalarGridSpec(
            num_scalar_prefetch=0,
            grid=(Mp // tm,),
            in_specs=[
                pl.BlockSpec((tm, S), lambda i: (i, 0)),
                pl.BlockSpec((S, S2), lambda i: (0, 0)),
            ],
            out_specs=pl.BlockSpec((tm, S2), lambda i: (i, 0)),
        ),
        compiler_params=pltpu.CompilerParams(
            dimension_semantics=("parallel",)),
    )(xd, dft)
    return out[:M] if Mp != M else out


# ----------------------------------------------------------------------------
# Kernel 2: fused Conv1d(k3,p1)+SiLU -> Conv1d(k3,p1)+SiLU  (per batch element)
# ----------------------------------------------------------------------------
def _fused_conv_kernel(x_ref, w1_ref, b1_ref, w2_ref, b2_ref, o_ref, h1_ref,
                       *, taps):
    # x_ref : (L+2, Cin)  length-padded channels-last input
    # w1_ref: (3, Cin, 32)   w2_ref: (3, 32, 64)   biases: (1, Cout)
    # h1_ref: (L+2, 32) VMEM scratch (zero-padded conv1 activation)
    # o_ref : (L, 64)
    L, cout2 = o_ref.shape
    cout1 = h1_ref.shape[1]

    acc1 = jnp.zeros((L, cout1), jnp.float32)
    for t in range(taps):                       # static unroll over 3 taps
        acc1 += jnp.dot(x_ref[t:t + L, :], w1_ref[t],
                        preferred_element_type=jnp.float32)
    h1 = _silu(acc1 + b1_ref[...])

    # Build conv2's padding=1 input entirely in VMEM (no HBM round trip).
    h1_ref[0:1, :] = jnp.zeros((1, cout1), jnp.float32)
    h1_ref[L + 1:L + 2, :] = jnp.zeros((1, cout1), jnp.float32)
    h1_ref[1:L + 1, :] = h1

    acc2 = jnp.zeros((L, cout2), jnp.float32)
    for t in range(taps):
        acc2 += jnp.dot(h1_ref[t:t + L, :], w2_ref[t],
                        preferred_element_type=jnp.float32)
    o_ref[...] = _silu(acc2 + b2_ref[...]).astype(o_ref.dtype)


def fused_conv(x_cl_padded, w1, b1, w2, b2, *, out_dtype=jnp.bfloat16):
    """x_cl_padded: (B, L+2, Cin) f32.  w1: (3,Cin,32)  w2: (3,32,64)."""
    B, Lp2, cin1 = x_cl_padded.shape
    taps, _, cout1 = w1.shape
    cout2 = w2.shape[2]
    L = Lp2 - (taps - 1)

    return pl.pallas_call(
        functools.partial(_fused_conv_kernel, taps=taps),
        out_shape=jax.ShapeDtypeStruct((B, L, cout2), out_dtype),
        grid_spec=pltpu.PrefetchScalarGridSpec(
            num_scalar_prefetch=0,
            grid=(B,),
            in_specs=[
                pl.BlockSpec((None, Lp2, cin1), lambda b: (b, 0, 0)),
                pl.BlockSpec((taps, cin1, cout1), lambda b: (0, 0, 0)),
                pl.BlockSpec((1, cout1), lambda b: (0, 0)),
                pl.BlockSpec((taps, cout1, cout2), lambda b: (0, 0, 0)),
                pl.BlockSpec((1, cout2), lambda b: (0, 0)),
            ],
            out_specs=pl.BlockSpec((None, L, cout2), lambda b: (b, 0, 0)),
            scratch_shapes=[pltpu.VMEM((Lp2, cout1), jnp.float32)],
        ),
        compiler_params=pltpu.CompilerParams(
            dimension_semantics=("parallel",)),
    )(x_cl_padded, w1, b1, w2, b2)


# ----------------------------------------------------------------------------
# Kernel 3: fused Linear(flat->1024)+SiLU -> Linear(1024->out)+SiLU
# ----------------------------------------------------------------------------
def _fused_head_kernel(x_ref, w1_ref, b1_ref, w2_ref, b2_ref, o_ref, acc_ref):
    k = pl.program_id(1)

    @pl.when(k == 0)
    def _():
        acc_ref[...] = jnp.zeros_like(acc_ref)

    acc_ref[...] += jnp.dot(x_ref[...], w1_ref[...],
                            preferred_element_type=jnp.float32)

    @pl.when(k == pl.num_programs(1) - 1)
    def _():
        h1 = _silu(acc_ref[...] + b1_ref[...]).astype(jnp.bfloat16)
        out = jnp.dot(h1, w2_ref[...], preferred_element_type=jnp.float32)
        o_ref[...] = _silu(out + b2_ref[...]).astype(o_ref.dtype)


def fused_head(x, w1, b1, w2, b2, *, out_dim):
    """SiLU(SiLU(x @ w1 + b1) @ w2 + b2).

    x: (B, K) activation.  w1: (Kp, 1024) bf16 (rows zero-padded, Kp % tile==0).
    w2: (1024, N2p) bf16 (cols zero-padded to 128).  Biases: (1, N).
    """
    B, K = x.shape
    Kp, N1 = w1.shape
    N2p = w2.shape[1]

    Mp = _round_up(B, 8)
    tm = min(Mp, 256)
    Mp = _round_up(Mp, tm)
    tk = min(Kp, _HEAD_K_TILE)

    xd = jnp.pad(x.astype(jnp.bfloat16), ((0, Mp - B), (0, Kp - K)))
    grid = (Mp // tm, Kp // tk)

    out = pl.pallas_call(
        _fused_head_kernel,
        out_shape=jax.ShapeDtypeStruct((Mp, N2p), jnp.float32),
        grid_spec=pltpu.PrefetchScalarGridSpec(
            num_scalar_prefetch=0,
            grid=grid,
            in_specs=[
                pl.BlockSpec((tm, tk), lambda i, k: (i, k)),
                pl.BlockSpec((tk, N1), lambda i, k: (k, 0)),
                pl.BlockSpec((1, N1), lambda i, k: (0, 0)),
                pl.BlockSpec((N1, N2p), lambda i, k: (0, 0)),
                pl.BlockSpec((1, N2p), lambda i, k: (0, 0)),
            ],
            out_specs=pl.BlockSpec((tm, N2p), lambda i, k: (i, 0)),
            scratch_shapes=[pltpu.VMEM((tm, N1), jnp.float32)],
        ),
        compiler_params=pltpu.CompilerParams(
            dimension_semantics=("parallel", "arbitrary")),
    )(xd, w1, b1, w2, b2)

    return out[:B, :out_dim]


# ----------------------------------------------------------------------------
# Parameters (canonical PyTorch layout) + one-time kernel-side preparation
# ----------------------------------------------------------------------------
def init_params(key, *, input_size, n_input_frames, frame_step,
                out_channel, target_h, target_w):
    ks = jax.random.split(key, 8)
    cin1 = frame_step * 2
    flat = 64 * n_input_frames * input_size
    out_dim = out_channel * target_h * target_w

    def w_init(k, shape, fan_in):
        return jax.random.normal(k, shape, jnp.float32) / jnp.sqrt(fan_in)

    return {
        "conv1_w": w_init(ks[0], (32, cin1, 3), cin1 * 3),
        "conv1_b": 0.02 * jax.random.normal(ks[1], (32,), jnp.float32),
        "conv2_w": w_init(ks[2], (64, 32, 3), 32 * 3),
        "conv2_b": 0.02 * jax.random.normal(ks[3], (64,), jnp.float32),
        "fc1_w": w_init(ks[4], (1024, flat), flat),     # nn.Linear: (out, in)
        "fc1_b": 0.02 * jax.random.normal(ks[5], (1024,), jnp.float32),
        "fc2_w": w_init(ks[6], (out_dim, 1024), 1024),
        "fc2_b": 0.02 * jax.random.normal(ks[7], (out_dim,), jnp.float32),
    }


def prepare_params(params, *, input_size, n_input_frames, frame_step):
    """One-time weight re-layout / padding / cast for the kernel path."""
    del frame_step  # layout does not depend on it
    S = input_size
    L = n_input_frames * S
    flat = 64 * L

    # TODO(synk): torch.fft.fft has no Pallas primitive; realized exactly as an
    # O(S^2) DFT-matrix matmul:  fft(x)[k] = sum_n x[n] (cos - i*sin)(2*pi*nk/S).
    n = jnp.arange(S, dtype=jnp.float32)[:, None]
    k = jnp.arange(S, dtype=jnp.float32)[None, :]
    ang = 2.0 * jnp.pi * n * k / S
    dft = jnp.concatenate([jnp.cos(ang), -jnp.sin(ang)], axis=1)   # (S, 2S): [Re | Im]

    def conv_taps(w):            # (Cout, Cin, 3) -> (3, Cin, Cout) tap-major
        return jnp.transpose(w, (2, 1, 0)).astype(jnp.float32)

    # nn.Linear #1 consumes a (channel, position)-ordered flatten; the conv
    # kernel emits channels-last (position, channel).  Permute rows once:
    # new row l*64 + c  <-  old row c*L + l.
    fc1_wt = params["fc1_w"].T                                     # (64*L, 1024)
    fc1_wt = fc1_wt.reshape(64, L, -1).transpose(1, 0, 2).reshape(flat, -1)
    Kp = _round_up(flat, _HEAD_K_TILE)
    fc1_wt = jnp.pad(fc1_wt, ((0, Kp - flat), (0, 0))).astype(jnp.bfloat16)

    out_dim = params["fc2_w"].shape[0]
    N2p = _round_up(out_dim, _LANE)
    fc2_wt = jnp.pad(params["fc2_w"].T,
                     ((0, 0), (0, N2p - out_dim))).astype(jnp.bfloat16)
    fc2_b = jnp.pad(params["fc2_b"],
                    (0, N2p - out_dim)).astype(jnp.float32).reshape(1, N2p)

    return {
        "dft": dft.astype(jnp.float32),
        "conv1_wt": conv_taps(params["conv1_w"]),
        "conv1_b": params["conv1_b"].astype(jnp.float32).reshape(1, -1),
        "conv2_wt": conv_taps(params["conv2_w"]),
        "conv2_b": params["conv2_b"].astype(jnp.float32).reshape(1, -1),
        "fc1_wt": fc1_wt,
        "fc1_b": params["fc1_b"].astype(jnp.float32).reshape(1, -1),
        "fc2_wt": fc2_wt,
        "fc2_b": fc2_b,
    }


# ----------------------------------------------------------------------------
# Forward pass (kernel path)
# ----------------------------------------------------------------------------
def fft_conv1d_linear_forward(x, kp, *, out_channel, target_h, target_w):
    """x: (B, n_input_frames, frame_step, input_size) float32."""
    B, nf, fs, S = x.shape
    L = nf * S
    out_dim = out_channel * target_h * target_w

    # torch.fft.fft(x, dim=-1)  (exact DFT on the MXU)
    y = dft_matmul(x.reshape(-1, S).astype(jnp.float32), kp["dft"])  # (B*nf*fs, 2S)

    # cat([real, imag], dim=2) -> raw .view(B, 2fs, L) -> channels-last + pad=1
    real = y[:, :S].reshape(B, nf, fs, S)
    imag = y[:, S:].reshape(B, nf, fs, S)
    comb = jnp.concatenate([real, imag], axis=2).reshape(B, 2 * fs, L)
    x_cl = jnp.transpose(comb, (0, 2, 1))                            # (B, L, 2fs)
    x_cl = jnp.pad(x_cl, ((0, 0), (1, 1), (0, 0)))                   # (B, L+2, 2fs)

    # Conv1d(2fs->32,k3,p1)+SiLU ; Conv1d(32->64,k3,p1)+SiLU   (one fused kernel)
    h = fused_conv(x_cl, kp["conv1_wt"], kp["conv1_b"],
                   kp["conv2_wt"], kp["conv2_b"])                    # (B, L, 64) bf16

    # Flatten + Linear(flat->1024)+SiLU + Linear(1024->out)+SiLU  (one fused kernel)
    flat = h.reshape(B, L * 64)                                      # fc1_wt rows pre-permuted
    out = fused_head(flat, kp["fc1_wt"], kp["fc1_b"],
                     kp["fc2_wt"], kp["fc2_b"], out_dim=out_dim)     # (B, out_dim) f32
    return out.reshape(B, 1, out_channel, target_h, target_w)


# ----------------------------------------------------------------------------
# Pure-JAX f32 reference (mirrors the PyTorch module exactly)
# ----------------------------------------------------------------------------
def reference_forward(x, params, *, out_channel, target_h, target_w):
    B, nf, fs, S = x.shape
    xf = jnp.fft.fft(x, axis=-1)
    comb = jnp.concatenate([jnp.real(xf), jnp.imag(xf)], axis=2)     # (B, nf, 2fs, S)
    comb = comb.reshape(B, 2 * fs, nf * S).astype(jnp.float32)

    def conv1d(h, w, b):                       # h (B,C,L), w (O,C,3), b (O,)
        hp = jnp.pad(h, ((0, 0), (0, 0), (1, 1)))
        Lh = h.shape[2]
        o = sum(jnp.einsum("bcl,oc->bol", hp[:, :, t:t + Lh], w[:, :, t])
                for t in range(3))
        return o + b[None, :, None]

    h = jax.nn.silu(conv1d(comb, params["conv1_w"], params["conv1_b"]))
    h = jax.nn.silu(conv1d(h, params["conv2_w"], params["conv2_b"]))
    flat = h.reshape(B, -1)
    h = jax.nn.silu(flat @ params["fc1_w"].T + params["fc1_b"])
    h = jax.nn.silu(h @ params["fc2_w"].T + params["fc2_b"])
    return h.reshape(B, 1, out_channel, target_h, target_w)


if __name__ == "__main__":
    # Small shapes consistent with the module:
    #   x: (batch, n_input_frames, frame_step, input_size)
    #   conv in_channels = frame_step*2 ; flattened = 64*n_input_frames*input_size
    batch, n_input_frames, frame_step, input_size = 2, 4, 3, 16
    target_h = target_w = 1
    out_channel = 4

    key = jax.random.PRNGKey(0)
    k_x, k_p = jax.random.split(key)
    x = jax.random.normal(
        k_x, (batch, n_input_frames, frame_step, input_size), jnp.float32)

    params = init_params(k_p, input_size=input_size,
                         n_input_frames=n_input_frames, frame_step=frame_step,
                         out_channel=out_channel,
                         target_h=target_h, target_w=target_w)
    kparams = prepare_params(params, input_size=input_size,
                             n_input_frames=n_input_frames,
                             frame_step=frame_step)

    fwd = jax.jit(functools.partial(fft_conv1d_linear_forward,
                                    out_channel=out_channel,
                                    target_h=target_h, target_w=target_w))
    out = jax.block_until_ready(fwd(x, kparams))
    assert out.shape == (batch, 1, out_channel, target_h, target_w), out.shape

    ref = jax.block_until_ready(
        reference_forward(x, params, out_channel=out_channel,
                          target_h=target_h, target_w=target_w))
    assert jnp.allclose(out, ref, rtol=5e-2, atol=5e-2), \
        float(jnp.max(jnp.abs(out - ref)))

    print("KERNEL_OK")
</pallas_src>

<mosaic_0001>
module attributes {stable_mosaic.version = 11 : i64} {
  func.func @_dft_kernel(%arg0: i32, %arg1: memref<24x16xf32, #tpu.memory_space<vmem>>, %arg2: memref<16x32xf32, #tpu.memory_space<vmem>>, %arg3: memref<24x32xf32, #tpu.memory_space<vmem>>) attributes {dimension_semantics = [#tpu.dimension_semantics<parallel>], iteration_bounds = array<i64: 1>, scalar_prefetch = 0 : i64, scratch_operands = 0 : i64, tpu.core_type = #tpu.core_type<tc>, window_params = [{transform_indices = @transform_0, window_bounds = array<i64: 24, 16>}, {pipeline_mode = #tpu.pipeline_mode<synchronous>, transform_indices = @transform_1, window_bounds = array<i64: 16, 32>}, {transform_indices = @transform_2, window_bounds = array<i64: 24, 32>}]} {
    %c0 = arith.constant 0 : index
    %c0_0 = arith.constant 0 : index
    %0 = vector.load %arg1[%c0, %c0_0] : memref<24x16xf32, #tpu.memory_space<vmem>>, vector<24x16xf32>
    %c0_1 = arith.constant 0 : index
    %c0_2 = arith.constant 0 : index
    %1 = vector.load %arg2[%c0_1, %c0_2] : memref<16x32xf32, #tpu.memory_space<vmem>>, vector<16x32xf32>
    %cst = arith.constant dense<0.000000e+00> : vector<24x32xf32>
    %2 = tpu.matmul %0, %1, %cst {dimension_numbers = #tpu.dot_dimension_numbers<[1], [0], [0], [1], [0, 0, 1, 1], [], []>} : vector<24x16xf32>, vector<16x32xf32>, vector<24x32xf32> -> vector<24x32xf32>
    %c0_3 = arith.constant 0 : index
    %c0_4 = arith.constant 0 : index
    %3 = vector.load %arg3[%c0_3, %c0_4] : memref<24x32xf32, #tpu.memory_space<vmem>>, vector<24x32xf32>
    tpu.vector_store %arg3[%c0_3, %c0_4], %2 {strides = array<i32>} : memref<24x32xf32, #tpu.memory_space<vmem>>, vector<24x32xf32>,
    return
  }
  func.func @transform_0(%arg0: i32) -> (i32, i32) {
    %c0_i32 = arith.constant 0 : i32
    %c0_i32_0 = arith.constant 0 : i32
    return %arg0, %c0_i32 : i32, i32
  }
  func.func @transform_1(%arg0: i32) -> (i32, i32) {
    %c0_i32 = arith.constant 0 : i32
    %c0_i32_0 = arith.constant 0 : i32
    %c0_i32_1 = arith.constant 0 : i32
    return %c0_i32, %c0_i32_0 : i32, i32
  }
  func.func @transform_2(%arg0: i32) -> (i32, i32) {
    %c0_i32 = arith.constant 0 : i32
    %c0_i32_0 = arith.constant 0 : i32
    return %arg0, %c0_i32 : i32, i32
  }
}

module attributes {stable_mosaic.version = 11 : i64} {
  func.func @_fused_conv_kernel(%arg0: i32, %arg1: memref<1x66x6xf32, #tpu.memory_space<vmem>>, %arg2: memref<3x6x32xf32, #tpu.memory_space<vmem>>, %arg3: memref<1x32xf32, #tpu.memory_space<vmem>>, %arg4: memref<3x32x64xf32, #tpu.memory_space<vmem>>, %arg5: memref<1x64xf32, #tpu.memory_space<vmem>>, %arg6: memref<1x64x64xbf16, #tpu.memory_space<vmem>>, %arg7: memref<66x32xf32, #tpu.memory_space<vmem>>) attributes {dimension_semantics = [#tpu.dimension_semantics<parallel>], iteration_bounds = array<i64: 2>, scalar_prefetch = 0 : i64, scratch_operands = 1 : i64, tpu.core_type = #tpu.core_type<tc>, window_params = [{transform_indices = @transform_0, window_bounds = array<i64: 1, 66, 6>}, {pipeline_mode = #tpu.pipeline_mode<synchronous>, transform_indices = @transform_1, window_bounds = array<i64: 3, 6, 32>}, {pipeline_mode = #tpu.pipeline_mode<synchronous>, transform_indices = @transform_2, window_bounds = array<i64: 1, 32>}, {pipeline_mode = #tpu.pipeline_mode<synchronous>, transform_indices = @transform_3, window_bounds = array<i64: 3, 32, 64>}, {pipeline_mode = #tpu.pipeline_mode<synchronous>, transform_indices = @transform_4, window_bounds = array<i64: 1, 64>}, {transform_indices = @transform_5, window_bounds = array<i64: 1, 64, 64>}]} {
    %cst = arith.constant 0.000000e+00 : f32
    %0 = vector.broadcast %cst : f32 to vector<64x32xf32>
    %c0 = arith.constant 0 : index
    %c0_0 = arith.constant 0 : index
    %c0_1 = arith.constant 0 : index
    %1 = vector.load %arg1[%c0, %c0_0, %c0_1] : memref<1x66x6xf32, #tpu.memory_space<vmem>>, vector<1x64x6xf32>
    %2 = vector.shape_cast %1 : vector<1x64x6xf32> to vector<64x6xf32>
    %c0_2 = arith.constant 0 : index
    %c0_3 = arith.constant 0 : index
    %c0_4 = arith.constant 0 : index
    %3 = vector.load %arg2[%c0_2, %c0_3, %c0_4] : memref<3x6x32xf32, #tpu.memory_space<vmem>>, vector<1x6x32xf32>
    %4 = vector.shape_cast %3 : vector<1x6x32xf32> to vector<6x32xf32>
    %cst_5 = arith.constant dense<0.000000e+00> : vector<64x32xf32>
    %5 = tpu.matmul %2, %4, %cst_5 {dimension_numbers = #tpu.dot_dimension_numbers<[1], [0], [0], [1], [0, 0, 1, 1], [], []>} : vector<64x6xf32>, vector<6x32xf32>, vector<64x32xf32> -> vector<64x32xf32>
    %6 = arith.addf %0, %5 : vector<64x32xf32>
    %c0_6 = arith.constant 0 : index
    %c1 = arith.constant 1 : index
    %c0_7 = arith.constant 0 : index
    %7 = vector.load %arg1[%c0_6, %c1, %c0_7] : memref<1x66x6xf32, #tpu.memory_space<vmem>>, vector<1x64x6xf32>
    %8 = vector.shape_cast %7 : vector<1x64x6xf32> to vector<64x6xf32>
    %c1_8 = arith.constant 1 : index
    %c0_9 = arith.constant 0 : index
    %c0_10 = arith.constant 0 : index
    %9 = vector.load %arg2[%c1_8, %c0_9, %c0_10] : memref<3x6x32xf32, #tpu.memory_space<vmem>>, vector<1x6x32xf32>
    %10 = vector.shape_cast %9 : vector<1x6x32xf32> to vector<6x32xf32>
    %cst_11 = arith.constant dense<0.000000e+00> : vector<64x32xf32>
    %11 = tpu.matmul %8, %10, %cst_11 {dimension_numbers = #tpu.dot_dimension_numbers<[1], [0], [0], [1], [0, 0, 1, 1], [], []>} : vector<64x6xf32>, vector<6x32xf32>, vector<64x32xf32> -> vector<64x32xf32>
    %12 = arith.addf %6, %11 : vector<64x32xf32>
    %c0_12 = arith.constant 0 : index
    %c2 = arith.constant 2 : index
    %c0_13 = arith.constant 0 : index
    %13 = vector.load %arg1[%c0_12, %c2, %c0_13] : memref<1x66x6xf32, #tpu.memory_space<vmem>>, vector<1x64x6xf32>
    %14 = vector.shape_cast %13 : vector<1x64x6xf32> to vector<64x6xf32>
    %c2_14 = arith.constant 2 : index
    %c0_15 = arith.constant 0 : index
    %c0_16 = arith.constant 0 : index
    %15 = vector.load %arg2[%c2_14, %c0_15, %c0_16] : memref<3x6x32xf32, #tpu.memory_space<vmem>>, vector<1x6x32xf32>
    %16 = vector.shape_cast %15 : vector<1x6x32xf32> to vector<6x32xf32>
    %cst_17 = arith.constant dense<0.000000e+00> : vector<64x32xf32>
    %17 = tpu.matmul %14, %16, %cst_17 {dimension_numbers = #tpu.dot_dimension_numbers<[1], [0], [0], [1], [0, 0, 1, 1], [], []>} : vector<64x6xf32>, vector<6x32xf32>, vector<64x32xf32> -> vector<64x32xf32>
    %18 = arith.addf %12, %17 : vector<64x32xf32>
    %c0_18 = arith.constant 0 : index
    %c0_19 = arith.constant 0 : index
    %19 = vector.load %arg3[%c0_18, %c0_19] : memref<1x32xf32, #tpu.memory_space<vmem>>, vector<1x32xf32>
    %20 = vector.broadcast %19 : vector<1x32xf32> to vector<64x32xf32>
    %21 = arith.addf %18, %20 : vector<64x32xf32>
    %cst_20 = arith.constant 0.000000e+00 : f32
    %22 = vector.broadcast %cst_20 : f32 to vector<64x32xf32>
    %23 = arith.subf %22, %21 : vector<64x32xf32>
    %24 = math.exp %23 : vector<64x32xf32>
    %cst_21 = arith.constant 1.000000e+00 : f32
    %25 = vector.broadcast %cst_21 : f32 to vector<64x32xf32>
    %26 = arith.addf %25, %24 : vector<64x32xf32>
    %27 = tpu.reciprocal %26 {approx = true} : vector<64x32xf32> -> vector<64x32xf32>
    %28 = arith.mulf %21, %27 : vector<64x32xf32>
    %cst_22 = arith.constant 0.000000e+00 : f32
    %29 = vector.broadcast %cst_22 : f32 to vector<1x32xf32>
    %c0_23 = arith.constant 0 : index
    %c0_24 = arith.constant 0 : index
    %30 = vector.load %arg7[%c0_23, %c0_24] : memref<66x32xf32, #tpu.memory_space<vmem>>, vector<1x32xf32>
    tpu.vector_store %arg7[%c0_23, %c0_24], %29 {strides = array<i32>} : memref<66x32xf32, #tpu.memory_space<vmem>>, vector<1x32xf32>,
    %cst_25 = arith.constant 0.000000e+00 : f32
    %31 = vector.broadcast %cst_25 : f32 to vector<1x32xf32>
    %c65 = arith.constant 65 : index
    %c0_26 = arith.constant 0 : index
    %32 = vector.load %arg7[%c65, %c0_26] : memref<66x32xf32, #tpu.memory_space<vmem>>, vector<1x32xf32>
    tpu.vector_store %arg7[%c65, %c0_26], %31 {strides = array<i32>} : memref<66x32xf32, #tpu.memory_space<vmem>>, vector<1x32xf32>,
    %c1_27 = arith.constant 1 : index
    %c0_28 = arith.constant 0 : index
    %33 = vector.load %arg7[%c1_27, %c0_28] : memref<66x32xf32, #tpu.memory_space<vmem>>, vector<64x32xf32>
    tpu.vector_store %arg7[%c1_27, %c0_28], %28 {strides = array<i32>} : memref<66x32xf32, #tpu.memory_space<vmem>>, vector<64x32xf32>,
    %cst_29 = arith.constant 0.000000e+00 : f32
    %34 = vector.broadcast %cst_29 : f32 to vector<64x64xf32>
    %c0_30 = arith.constant 0 : index
    %c0_31 = arith.constant 0 : index
    %35 = vector.load %arg7[%c0_30, %c0_31] : memref<66x32xf32, #tpu.memory_space<vmem>>, vector<64x32xf32>
    %c0_32 = arith.constant 0 : index
    %c0_33 = arith.constant 0 : index
    %c0_34 = arith.constant 0 : index
    %36 = vector.load %arg4[%c0_32, %c0_33, %c0_34] : memref<3x32x64xf32, #tpu.memory_space<vmem>>, vector<1x32x64xf32>
    %37 = vector.shape_cast %36 : vector<1x32x64xf32> to vector<32x64xf32>
    %cst_35 = arith.constant dense<0.000000e+00> : vector<64x64xf32>
    %38 = tpu.matmul %35, %37, %cst_35 {dimension_numbers = #tpu.dot_dimension_numbers<[1], [0], [0], [1], [0, 0, 1, 1], [], []>} : vector<64x32xf32>, vector<32x64xf32>, vector<64x64xf32> -> vector<64x64xf32>
    %39 = arith.addf %34, %38 : vector<64x64xf32>
    %c1_36 = arith.constant 1 : index
    %c0_37 = arith.constant 0 : index
    %40 = vector.load %arg7[%c1_36, %c0_37] : memref<66x32xf32, #tpu.memory_space<vmem>>, vector<64x32xf32>
    %c1_38 = arith.constant 1 : index
    %c0_39 = arith.constant 0 : index
    %c0_40 = arith.constant 0 : index
    %41 = vector.load %arg4[%c1_38, %c0_39, %c0_40] : memref<3x32x64xf32, #tpu.memory_space<vmem>>, vector<1x32x64xf32>
    %42 = vector.shape_cast %41 : vector<1x32x64xf32> to vector<32x64xf32>
    %cst_41 = arith.constant dense<0.000000e+00> : vector<64x64xf32>
    %43 = tpu.matmul %40, %42, %cst_41 {dimension_numbers = #tpu.dot_dimension_numbers<[1], [0], [0], [1], [0, 0, 1, 1], [], []>} : vector<64x32xf32>, vector<32x64xf32>, vector<64x64xf32> -> vector<64x64xf32>
    %44 = arith.addf %39, %43 : vector<64x64xf32>
    %c2_42 = arith.constant 2 : index
    %c0_43 = arith.constant 0 : index
    %45 = vector.load %arg7[%c2_42, %c0_43] : memref<66x32xf32, #tpu.memory_space<vmem>>, vector<64x32xf32>
    %c2_44 = arith.constant 2 : index
    %c0_45 = arith.constant 0 : index
    %c0_46 = arith.constant 0 : index
    %46 = vector.load %arg4[%c2_44, %c0_45, %c0_46] : memref<3x32x64xf32, #tpu.memory_space<vmem>>, vector<1x32x64xf32>
    %47 = vector.shape_cast %46 : vector<1x32x64xf32> to vector<32x64xf32>
    %cst_47 = arith.constant dense<0.000000e+00> : vector<64x64xf32>
    %48 = tpu.matmul %45, %47, %cst_47 {dimension_numbers = #tpu.dot_dimension_numbers<[1], [0], [0], [1], [0, 0, 1, 1], [], []>} : vector<64x32xf32>, vector<32x64xf32>, vector<64x64xf32> -> vector<64x64xf32>
    %49 = arith.addf %44, %48 : vector<64x64xf32>
    %c0_48 = arith.constant 0 : index
    %c0_49 = arith.constant 0 : index
    %50 = vector.load %arg5[%c0_48, %c0_49] : memref<1x64xf32, #tpu.memory_space<vmem>>, vector<1x64xf32>
    %51 = vector.broadcast %50 : vector<1x64xf32> to vector<64x64xf32>
    %52 = arith.addf %49, %51 : vector<64x64xf32>
    %cst_50 = arith.constant 0.000000e+00 : f32
    %53 = vector.broadcast %cst_50 : f32 to vector<64x64xf32>
    %54 = arith.subf %53, %52 : vector<64x64xf32>
    %55 = math.exp %54 : vector<64x64xf32>
    %cst_51 = arith.constant 1.000000e+00 : f32
    %56 = vector.broadcast %cst_51 : f32 to vector<64x64xf32>
    %57 = arith.addf %56, %55 : vector<64x64xf32>
    %58 = tpu.reciprocal %57 {approx = true} : vector<64x64xf32> -> vector<64x64xf32>
    %59 = arith.mulf %52, %58 : vector<64x64xf32>
    %60 = arith.truncf %59 : vector<64x64xf32> to vector<64x64xbf16>
    %c0_52 = arith.constant 0 : index
    %c0_53 = arith.constant 0 : index
    %c0_54 = arith.constant 0 : index
    %61 = vector.load %arg6[%c0_52, %c0_53, %c0_54] : memref<1x64x64xbf16, #tpu.memory_space<vmem>>, vector<1x64x64xbf16>
    %62 = vector.shape_cast %61 : vector<1x64x64xbf16> to vector<64x64xbf16>
    %63 = vector.shape_cast %60 : vector<64x64xbf16> to vector<1x64x64xbf16>
    tpu.vector_store %arg6[%c0_52, %c0_53, %c0_54], %63 {strides = array<i32>} : memref<1x64x64xbf16, #tpu.memory_space<vmem>>, vector<1x64x64xbf16>,
    return
  }
  func.func @transform_0(%arg0: i32) -> (i32, i32, i32) {
    %c0_i32 = arith.constant 0 : i32
    %c0_i32_0 = arith.constant 0 : i32
    %c0_i32_1 = arith.constant 0 : i32
    return %arg0, %c0_i32, %c0_i32_0 : i32, i32, i32
  }
  func.func @transform_1(%arg0: i32) -> (i32, i32, i32) {
    %c0_i32 = arith.constant 0 : i32
    %c0_i32_0 = arith.constant 0 : i32
    %c0_i32_1 = arith.constant 0 : i32
    %c0_i32_2 = arith.constant 0 : i32
    return %c0_i32, %c0_i32_0, %c0_i32_1 : i32, i32, i32
  }
  func.func @transform_2(%arg0: i32) -> (i32, i32) {
    %c0_i32 = arith.constant 0 : i32
    %c0_i32_0 = arith.constant 0 : i32
    %c0_i32_1 = arith.constant 0 : i32
    return %c0_i32, %c0_i32_0 : i32, i32
  }
  func.func @transform_3(%arg0: i32) -> (i32, i32, i32) {
    %c0_i32 = arith.constant 0 : i32
    %c0_i32_0 = arith.constant 0 : i32
    %c0_i32_1 = arith.constant 0 : i32
    %c0_i32_2 = arith.constant 0 : i32
    return %c0_i32, %c0_i32_0, %c0_i32_1 : i32, i32, i32
  }
  func.func @transform_4(%arg0: i32) -> (i32, i32) {
    %c0_i32 = arith.constant 0 : i32
    %c0_i32_0 = arith.constant 0 : i32
    %c0_i32_1 = arith.constant 0 : i32
    return %c0_i32, %c0_i32_0 : i32, i32
  }
  func.func @transform_5(%arg0: i32) -> (i32, i32, i32) {
    %c0_i32 = arith.constant 0 : i32
    %c0_i32_0 = arith.constant 0 : i32
    %c0_i32_1 = arith.constant 0 : i32
    return %arg0, %c0_i32, %c0_i32_0 : i32, i32, i32
  }
}

module attributes {stable_mosaic.version = 11 : i64} {
  func.func @_fused_head_kernel(%arg0: i32, %arg1: i32, %arg2: memref<8x1024xbf16, #tpu.memory_space<vmem>>, %arg3: memref<1024x1024xbf16, #tpu.memory_space<vmem>>, %arg4: memref<1x1024xf32, #tpu.memory_space<vmem>>, %arg5: memref<1024x128xbf16, #tpu.memory_space<vmem>>, %arg6: memref<1x128xf32, #tpu.memory_space<vmem>>, %arg7: memref<8x128xf32, #tpu.memory_space<vmem>>, %arg8: memref<8x1024xf32, #tpu.memory_space<vmem>>) attributes {dimension_semantics = [#tpu.dimension_semantics<parallel>, #tpu.dimension_semantics<arbitrary>], iteration_bounds = array<i64: 1, 4>, scalar_prefetch = 0 : i64, scratch_operands = 1 : i64, tpu.core_type = #tpu.core_type<tc>, window_params = [{transform_indices = @transform_0, window_bounds = array<i64: 8, 1024>}, {transform_indices = @transform_1, window_bounds = array<i64: 1024, 1024>}, {pipeline_mode = #tpu.pipeline_mode<synchronous>, transform_indices = @transform_2, window_bounds = array<i64: 1, 1024>}, {pipeline_mode = #tpu.pipeline_mode<synchronous>, transform_indices = @transform_3, window_bounds = array<i64: 1024, 128>}, {pipeline_mode = #tpu.pipeline_mode<synchronous>, transform_indices = @transform_4, window_bounds = array<i64: 1, 128>}, {transform_indices = @transform_5, window_bounds = array<i64: 8, 128>}]} {
    %c0_i32 = arith.constant 0 : i32
    %0 = arith.cmpi eq, %arg1, %c0_i32 : i32
    %1 = arith.extui %0 : i1 to i32
    %c0_i32_0 = arith.constant 0 : i32
    %2 = arith.cmpi ne, %1, %c0_i32_0 : i32
    scf.if %2 {
      %cst_9 = arith.constant 0.000000e+00 : f32
      %12 = vector.broadcast %cst_9 : f32 to vector<8x1024xf32>
      %c0_10 = arith.constant 0 : index
      %c0_11 = arith.constant 0 : index
      %13 = vector.load %arg8[%c0_10, %c0_11] : memref<8x1024xf32, #tpu.memory_space<vmem>>, vector<8x1024xf32>
      tpu.vector_store %arg8[%c0_10, %c0_11], %12 {strides = array<i32>} : memref<8x1024xf32, #tpu.memory_space<vmem>>, vector<8x1024xf32>,
    } else {
    }
    %c0 = arith.constant 0 : index
    %c0_1 = arith.constant 0 : index
    %3 = vector.load %arg8[%c0, %c0_1] : memref<8x1024xf32, #tpu.memory_space<vmem>>, vector<8x1024xf32>
    %c0_2 = arith.constant 0 : index
    %c0_3 = arith.constant 0 : index
    %4 = vector.load %arg2[%c0_2, %c0_3] : memref<8x1024xbf16, #tpu.memory_space<vmem>>, vector<8x1024xbf16>
    %c0_4 = arith.constant 0 : index
    %c0_5 = arith.constant 0 : index
    %5 = vector.load %arg3[%c0_4, %c0_5] : memref<1024x1024xbf16, #tpu.memory_space<vmem>>, vector<1024x1024xbf16>
    %cst = arith.constant dense<0.000000e+00> : vector<8x1024xf32>
    %6 = tpu.matmul %4, %5, %cst {dimension_numbers = #tpu.dot_dimension_numbers<[1], [0], [0], [1], [0, 0, 1, 1], [], []>} : vector<8x1024xbf16>, vector<1024x1024xbf16>, vector<8x1024xf32> -> vector<8x1024xf32>
    %7 = arith.addf %3, %6 : vector<8x1024xf32>
    %c0_6 = arith.constant 0 : index
    %c0_7 = arith.constant 0 : index
    %8 = vector.load %arg8[%c0_6, %c0_7] : memref<8x1024xf32, #tpu.memory_space<vmem>>, vector<8x1024xf32>
    tpu.vector_store %arg8[%c0_6, %c0_7], %7 {strides = array<i32>} : memref<8x1024xf32, #tpu.memory_space<vmem>>, vector<8x1024xf32>,
    %c3_i32 = arith.constant 3 : i32
    %9 = arith.cmpi eq, %arg1, %c3_i32 : i32
    %10 = arith.extui %9 : i1 to i32
    %c0_i32_8 = arith.constant 0 : i32
    %11 = arith.cmpi ne, %10, %c0_i32_8 : i32
    scf.if %11 {
      %c0_9 = arith.constant 0 : index
      %c0_10 = arith.constant 0 : index
      %12 = vector.load %arg8[%c0_9, %c0_10] : memref<8x1024xf32, #tpu.memory_space<vmem>>, vector<8x1024xf32>
      %c0_11 = arith.constant 0 : index
      %c0_12 = arith.constant 0 : index
      %13 = vector.load %arg4[%c0_11, %c0_12] : memref<1x1024xf32, #tpu.memory_space<vmem>>, vector<1x1024xf32>
      %14 = vector.broadcast %13 : vector<1x1024xf32> to vector<8x1024xf32>
      %15 = arith.addf %12, %14 : vector<8x1024xf32>
      %cst_13 = arith.constant 0.000000e+00 : f32
      %16 = vector.broadcast %cst_13 : f32 to vector<8x1024xf32>
      %17 = arith.subf %16, %15 : vector<8x1024xf32>
      %18 = math.exp %17 : vector<8x1024xf32>
      %cst_14 = arith.constant 1.000000e+00 : f32
      %19 = vector.broadcast %cst_14 : f32 to vector<8x1024xf32>
      %20 = arith.addf %19, %18 : vector<8x1024xf32>
      %21 = tpu.reciprocal %20 {approx = true} : vector<8x1024xf32> -> vector<8x1024xf32>
      %22 = arith.mulf %15, %21 : vector<8x1024xf32>
      %23 = arith.truncf %22 : vector<8x1024xf32> to vector<8x1024xbf16>
      %c0_15 = arith.constant 0 : index
      %c0_16 = arith.constant 0 : index
      %24 = vector.load %arg5[%c0_15, %c0_16] : memref<1024x128xbf16, #tpu.memory_space<vmem>>, vector<1024x128xbf16>
      %cst_17 = arith.constant dense<0.000000e+00> : vector<8x128xf32>
      %25 = tpu.matmul %23, %24, %cst_17 {dimension_numbers = #tpu.dot_dimension_numbers<[1], [0], [0], [1], [0, 0, 1, 1], [], []>} : vector<8x1024xbf16>, vector<1024x128xbf16>, vector<8x128xf32> -> vector<8x128xf32>
      %c0_18 = arith.constant 0 : index
      %c0_19 = arith.constant 0 : index
      %26 = vector.load %arg6[%c0_18, %c0_19] : memref<1x128xf32, #tpu.memory_space<vmem>>, vector<1x128xf32>
      %27 = vector.broadcast %26 : vector<1x128xf32> to vector<8x128xf32>
      %28 = arith.addf %25, %27 : vector<8x128xf32>
      %cst_20 = arith.constant 0.000000e+00 : f32
      %29 = vector.broadcast %cst_20 : f32 to vector<8x128xf32>
      %30 = arith.subf %29, %28 : vector<8x128xf32>
      %31 = math.exp %30 : vector<8x128xf32>
      %cst_21 = arith.constant 1.000000e+00 : f32
      %32 = vector.broadcast %cst_21 : f32 to vector<8x128xf32>
      %33 = arith.addf %32, %31 : vector<8x128xf32>
      %34 = tpu.reciprocal %33 {approx = true} : vector<8x128xf32> -> vector<8x128xf32>
      %35 = arith.mulf %28, %34 : vector<8x128xf32>
      %c0_22 = arith.constant 0 : index
      %c0_23 = arith.constant 0 : index
      %36 = vector.load %arg7[%c0_22, %c0_23] : memref<8x128xf32, #tpu.memory_space<vmem>>, vector<8x128xf32>
      tpu.vector_store %arg7[%c0_22, %c0_23], %35 {strides = array<i32>} : memref<8x128xf32, #tpu.memory_space<vmem>>, vector<8x128xf32>,
    } else {
    }
    return
  }
  func.func @transform_0(%arg0: i32, %arg1: i32) -> (i32, i32) {
    %c0_i32 = arith.constant 0 : i32
    return %arg0, %arg1 : i32, i32
  }
  func.func @transform_1(%arg0: i32, %arg1: i32) -> (i32, i32) {
    %c0_i32 = arith.constant 0 : i32
    %c0_i32_0 = arith.constant 0 : i32
    return %arg1, %c0_i32 : i32, i32
  }
  func.func @transform_2(%arg0: i32, %arg1: i32) -> (i32, i32) {
    %c0_i32 = arith.constant 0 : i32
    %c0_i32_0 = arith.constant 0 : i32
    %c0_i32_1 = arith.constant 0 : i32
    return %c0_i32, %c0_i32_0 : i32, i32
  }
  func.func @transform_3(%arg0: i32, %arg1: i32) -> (i32, i32) {
    %c0_i32 = arith.constant 0 : i32
    %c0_i32_0 = arith.constant 0 : i32
    %c0_i32_1 = arith.constant 0 : i32
    return %c0_i32, %c0_i32_0 : i32, i32
  }
  func.func @transform_4(%arg0: i32, %arg1: i32) -> (i32, i32) {
    %c0_i32 = arith.constant 0 : i32
    %c0_i32_0 = arith.constant 0 : i32
    %c0_i32_1 = arith.constant 0 : i32
    return %c0_i32, %c0_i32_0 : i32, i32
  }
  func.func @transform_5(%arg0: i32, %arg1: i32) -> (i32, i32) {
    %c0_i32 = arith.constant 0 : i32
    %c0_i32_0 = arith.constant 0 : i32
    return %arg0, %c0_i32 : i32, i32
  }
}

</mosaic_0001>

<bundles_post_ra>
// kernel: fft_conv1d_linear_forward.3
= control target key start
LH: loop header
LB: loop body
LE: loop exit
PB: predicated region body
PF: predicated region fallthrough
CT: control target
= control target key end

     0   :  { %7 = vsyncpa [#allocation3], 0  ;;  %s181_s9 = smov [#allocation2]   ;;  %s225_s0 = inlined_call_operand.vmem [shape: f32[24,16], index: 0, kind: input, shape index: {}]   ;;  %s226_s1 = inlined_call_operand.hbm [shape: f32[16,32], index: 1, kind: input, shape index: {}]   ;;  %s227_s2 = inlined_call_operand.vmem [shape: f32[24,32], index: 2, kind: output, shape index: {}]  }
   0x1   :  { %s15_s10 = sshll.u32 %s181_s9, 4  ;;  %s16_s10 = int_to_ptr.vmem [resolvable:$true] %s15_s10 }
   0x2   :  { %s167_s11 = scalar_lea.vmem %s16_s10, 256  ;;  %p172_p1 = scmp.lt.s32.totalorder %s16_s10, %s16_s10 }
   0x3   :  { %p168_p0 = scmp.ne.s32.totalorder %s16_s10, %s167_s11  ;;  %p173_p2 = scmp.lt.s32.totalorder %s167_s11, %s167_s11 }
   0x5   :  { %p174_p3 = por %p173_p2, %p172_p1 }
   0x7   :  { %p175_p4 = pnand %p174_p3, %p168_p0 }
   0x9   :  { %178 = shalt.err (!%p175_p4)
}
   0xa   :  { %s182_s12 = smov 128   ;;  %s183_s13 = smov 8  }
   0xb   :  { %21 = dma.hbm_to_vmem [thread:$0]  %s226_s1, 256, %s16_s10, [#allocation3], %s182_s12, %s182_s12, %s183_s13  }
   0xc   :  { %179 = dma.done.wait [#allocation3], 256  }
   0xd   :  { %180 = vsyncadd [#allocation3], 4294967040  ;;  %v184_v0 = vmov 0.0   ;;  %vm185_vm0 = vmmov 0   ;;  %v29_v1 = vld [vmem:[#allocation2 + $0x8] sm:$0xff]  ;;  %v28_v2 = vld [vmem:[#allocation2] sm:$0xff] }
   0xe   :  { %150 = vmatprep.subr.mxu1 %v184_v0  ;;  %137 = vmatprep.subr.mxu0 %v184_v0  ;;  %v26_v3 = vld [vmem:[%s225_s0 + $0x8] sm:$0xff]  ;;  %vm30_vm1 = vcmask 130048   ;;  %v25_v4 = vld [vmem:[%s225_s0] sm:$0xff]  ;;  %v27_v5 = vld [vmem:[%s225_s0 + $0x10] sm:$0xff]  ;;  %vm120_vm2 = vcmask 261120  }
   0xf   :  { %144 = vmatprep.mubr.msk.f32.mxu1 %vm185_vm0, %v184_v0  ;;  %141 = vmatprep.mubr.msk.f32.mxu0 %vm185_vm0, %v184_v0 }
  0x10   :  { %152 = vmatpush3.msra.mxu1 %v29_v1  ;;  %138 = vmatpush3.msra.mxu0 %v29_v1 }
  0x11   :  { %151 = vmatprep.subr.mxu1 %v184_v0  ;;  %139 = vmatprep.subr.mxu0 %v184_v0 }
  0x12   :  { %153 = vmatpush3.msra.mxu1 %v28_v2  ;;  %140 = vmatpush3.msra.mxu0 %v28_v2 }
  0x13   :  { %145 = vmatmul.mubr.msk.f32.vlgmr.msra.gmra.mxu1 %vm30_vm1, %v26_v3  ;;  %142 = vmatmul.mubr.msk.f32.vlgmr.msra.gmra.mxu0 %vm30_vm1, %v25_v4 }
  0x14   :  { %147 = vmatprep.mubr.msk.f32.mxu1 %vm185_vm0, %v184_v0 }
  0x17   :  { %148 = vmatmul.mubr.msk.f32.gmra.mxu1 %vm30_vm1, %v27_v5 }
  0xd3   :  { %v111_v6 = vpop.f32.mrf.mxu1  ;;  %v106_v7 = vpop.f32.mrf.mxu0 }
  0xd4   :  { %122 = vst.msk [vmem:[%s227_s2 + $0x8] sm:$0xff] %vm120_vm2, %v111_v6  ;;  %121 = vst.msk [vmem:[%s227_s2] sm:$0xff] %vm120_vm2, %v106_v7 }
  0xd5   :  { %v146_v8 = vpop.f32.mrf.mxu1  ;;  %v143_v9 = vpop.f32.mrf.mxu0 }
  0xd7   :  { %v116_v10 = vpop.f32.mrf.mxu1 }
  0xd8   :  { %123 = vst.msk [vmem:[%s227_s2 + $0x10] sm:$0xff] %vm120_vm2, %v116_v10 }
  0xd9   :  { %v149_v11 = vpop.f32.mrf.mxu1 }
  0xda   :  { %128 = vsyncpa [#allocation3], 1 }

// kernel: fft_conv1d_linear_forward.4
= control target key start
LH: loop header
LB: loop body
LE: loop exit
PB: predicated region body
PF: predicated region fallthrough
CT: control target
= control target key end

     0   :  { %10 = vsyncpa [#allocation4], 0  ;;  %s2209_s0 = inlined_call_operand.vmem [shape: f32[2,66,6], index: 0, kind: input, shape index: {}]   ;;  %s2210_s1 = inlined_call_operand.hbm [shape: f32[3,6,32], index: 1, kind: input, shape index: {}]   ;;  %s2211_s2 = inlined_call_operand.hbm [shape: f32[1,32], index: 2, kind: input, shape index: {}]   ;;  %s2212_s3 = inlined_call_operand.hbm [shape: f32[3,32,64], index: 3, kind: input, shape index: {}]   ;;  %s2213_s4 = inlined_call_operand.hbm [shape: f32[1,64], index: 4, kind: input, shape index: {}]   ;;  %s2214_s5 = inlined_call_operand.vmem [shape: bf16[2,64,64], index: 5, kind: output, shape index: {}]  }
   0x1   :  { %11 = vsyncpa [#allocation6], 0 }
   0x2   :  { %12 = vsyncpa [#allocation9], 0  ;;  %s1954_s18 = smov 0  }
   0x3 LB: > { %s1917_s19 = smov [#allocation5]   ;;  %s1960_s21 = sadd.s32 4294967295, %s1915_s18   ;;  %s1915_s18 = sphi %s1954_s18, %s18_s18  }
   0x4   : > { %s185_s20 = sshll.u32 %s1917_s19, 4  ;;  %p1425_p0 = scmp.ge.s32.totalorder %s1915_s18, 1  ;;  %s186_s20 = int_to_ptr.vmem [resolvable:$true] %s185_s20 }
   0x5   : > { %p159_p1 = scmp.lt.s32.totalorder %s1915_s18, 3  ;;  %p1706_p2 = scmp.eq.s32.totalorder %s1960_s21, 0 }
   0x6   : > { %s1918_s23 = smov [#allocation3]   ;;  %s1919_s26 = smov [#allocation7]  }
   0x7   : > { %p1965_p3 = pnand %p1425_p0, %p159_p1  ;;  %s171_s24 = sshll.u32 %s1918_s23, 4  ;;  %s1971_s24 = int_to_ptr.vmem [resolvable:$true] %s171_s24 }
   0x8   : > { %s195_s27 = sshll.u32 %s1919_s26, 4  ;;  %s1920_s28 = smov [#allocation8]   ;;  %s1979_s27 = int_to_ptr.vmem [resolvable:$true] %s195_s27 }
   0x9   : > { %p1693_p4 = pneg %p1965_p3  ;;  %s1981_s29 = sshll.u32 %s1920_s28, 4  ;;  %s210_s29 = int_to_ptr.vmem [resolvable:$true] %s1981_s29 }
   0xa   : > { %s1804_s30 = scalar_lea.vmem %s186_s20, 16  ;;  %s1811_s6 = scalar_lea.vmem %s186_s20, 32 }
   0xb   : > { %p1975_p5 = pnand %p1706_p2, %p1693_p4  ;;  %p1805_p7 = scmp.ne.s32.totalorder %s186_s20, %s1804_s30 }
   0xc   : > { %p1812_p10 = scmp.lt.s32.totalorder %s186_s20, %s186_s20  ;;  %p1813_p11 = scmp.lt.s32.totalorder %s1811_s6, %s1804_s30 }
   0xd   : > { %p1795_p6 = pneg %p1975_p5 }
   0xe   : > { %p1814_p12 = por %p1813_p11, %p1812_p10 }
   0xf   : > { %p1807_p8 = pnand %p1805_p7, %p1795_p6 }
  0x11   : > { %p1808_p9 = pneg %p1807_p8 }
  0x13   : > { %p1815_p13 = pnand %p1814_p12, %p1808_p9 }
  0x15   : > { %1818 = shalt.err (!%p1815_p13)
}
  0x16   : > { %1699 = dma.hbm_to_vmem [thread:$0]  (!%p1975_p5), %s2211_s2, 16, %s186_s20, [#allocation6]  }
  0x17   : > { %s1830_s9 = scalar_lea.vmem %s1971_s24, 384  ;;  %p1838_p7 = scmp.lt.s32.totalorder %s1971_s24, %s1971_s24 }
  0x18   : > { %p1831_p0 = scmp.ne.s32.totalorder %s1971_s24, %s1830_s9  ;;  %p1839_p8 = scmp.lt.s32.totalorder %s1830_s9, %s1830_s9 }
  0x1a   : > { %p1833_p1 = pnand %p1831_p0, %p1795_p6  ;;  %p1840_p9 = por %p1839_p8, %p1838_p7 }
  0x1c   : > { %p1834_p4 = pneg %p1833_p1 }
  0x1e   : > { %p1841_p10 = pnand %p1840_p9, %p1834_p4 }
  0x20   : > { %1844 = shalt.err (!%p1841_p10)
}
  0x21   : > { %s1921_s10 = smov 128   ;;  %s1922_s11 = smov 8  }
  0x22   : > { %1696 = dma.hbm_to_vmem [thread:$0]  (!%p1975_p5), %s2210_s1, 384, %s1971_s24, [#allocation4], %s1921_s10, %s1921_s10, %s1922_s11  }
  0x23   : > { %s1856_s14 = scalar_lea.vmem %s1979_s27, 1536  ;;  %p1864_p0 = scmp.lt.s32.totalorder %s1979_s27, %s1979_s27 }
  0x24   : > { %p1857_p11 = scmp.ne.s32.totalorder %s1979_s27, %s1856_s14  ;;  %p1865_p1 = scmp.lt.s32.totalorder %s1856_s14, %s1856_s14 }
  0x26   : > { %p1859_p12 = pnand %p1857_p11, %p1795_p6  ;;  %p1866_p4 = por %p1865_p1, %p1864_p0 }
  0x28   : > { %p1860_p13 = pneg %p1859_p12 }
  0x2a   : > { %p1867_p7 = pnand %p1866_p4, %p1860_p13 }
  0x2c   : > { %1870 = shalt.err (!%p1867_p7)
}
  0x2d   : > { %1702 = dma.hbm_to_vmem [thread:$0]  (!%p1975_p5), %s2212_s3, 1536, %s1979_s27, [#allocation6], %s1921_s10, %s1921_s10, %s1922_s11  }
  0x2e   : > { %s1882_s17 = scalar_lea.vmem %s210_s29, 16  ;;  %s1889_s19 = scalar_lea.vmem %s210_s29, 32 }
  0x2f   : > { %p1883_p8 = scmp.ne.s32.totalorder %s210_s29, %s1882_s17  ;;  %p1890_p11 = scmp.lt.s32.totalorder %s210_s29, %s210_s29 }
  0x30   : > { %p1891_p12 = scmp.lt.s32.totalorder %s1889_s19, %s1882_s17 }
  0x31   : > { %p1885_p9 = pnand %p1883_p8, %p1795_p6 }
  0x32   : > { %p1892_p13 = por %p1891_p12, %p1890_p11 }
  0x33   : > { %p1886_p10 = pneg %p1885_p9 }
  0x35   : > { %p1893_p0 = pnand %p1892_p13, %p1886_p10 }
  0x37   : > { %1896 = shalt.err (!%p1893_p0)
}
  0x38   : > { %1705 = dma.hbm_to_vmem [thread:$0]  (!%p1975_p5), %s2213_s4, 16, %s210_s29, [#allocation9]  }
  0x39   : > { %230 = sbr.rel (%p1965_p3) target bundleno = 601 (0x259), region = 40 }
  0x3e   : > { %1902 = dma.done.wait (%p1706_p2), [#allocation4], 384  }
  0x3f   : > { %1904 = vsyncadd (%p1706_p2), [#allocation4], 4294966912 }
  0x40   : > { %1906 = dma.done.wait (%p1706_p2), [#allocation6], 1552  }
  0x41   : > { %1908 = vsyncadd (%p1706_p2), [#allocation6], 4294965744 }
  0x42   : > { %1910 = dma.done.wait (%p1706_p2), [#allocation9], 16  }
  0x43   : > { %1912 = vsyncadd (%p1706_p2), [#allocation9], 4294967280  ;;  %p270_p3 = scmp.lt.s32.totalorder %s1960_s21, 1  ;;  %vm324_vm0 = vcmask 1045504   ;;  %vm299_vm1 = vcmask 48128   ;;  %vm778_vm2 = vcmask 253952  }
  0x44   : > { %v298_v0 = vld [vmem:[#allocation3 + $0x8] sm:$0x3f]  ;;  %v288_v1 = vld [vmem:[#allocation3] sm:$0x3f]  ;;  %v574_v6 = vld [vmem:[#allocation3 + $0x10] sm:$0x3f] }
  0x45   : > { %s2218_s21 = smov (!%p270_p3, %s1960_s21), 1  ;;  %1574 = vmatprep.subr.msk.mxu0 %vm324_vm0, %v298_v0  ;;  %1588 = vmatprep.subr.msk.mxu1 %vm324_vm0, %v288_v1  ;;  %v814_v27 = vld [vmem:[#allocation7 + $0x38] sm:$0xff]  ;;  %v1923_v29 = vmov 0.0   ;;  %v813_v30 = vld [vmem:[#allocation7 + $0x30] sm:$0xff]  ;;  %v812_v32 = vld [vmem:[#allocation7 + $0x28] sm:$0xff]  ;;  %vm781_vm3 = vcmask 261120  }
  0x46   : > { %s1676_s22 = smul.u32 72, %s2218_s21  ;;  %1575 = vmatpush3.msk.msra.mxu0 %vm324_vm0, %v298_v0  ;;  %1589 = vmatpush3.msk.msra.mxu1 %vm324_vm0, %v288_v1  ;;  %v801_v28 = vld [vmem:[#allocation7 + $0x18] sm:$0xff]  ;;  %779 = vst.msk [vmem:[#allocation2] sm:$0x1] %vm778_vm2, %v1923_v29  ;;  %780 = vst.msk [vmem:[#allocation2 + $0x41] sm:$0x1] %vm778_vm2, %v1923_v29 }
  0x47   : > { %1602 = vmatprep.subr.msk.mxu0 %vm324_vm0, %v574_v6  ;;  %1616 = vmatprep.subr.mxu1 %v814_v27  ;;  %v800_v31 = vld [vmem:[#allocation7 + $0x10] sm:$0xff]  ;;  %v799_v33 = vld [vmem:[#allocation7 + $0x8] sm:$0xff]  ;;  %v811_v34 = vld [vmem:[#allocation7 + $0x20] sm:$0xff]  ;;  %s1502_s27 = sshll.u32 %s2218_s21, 5  ;;  %vm1318_vm4 = vcmask 519168  }
  0x48   : > { %s2050_s26 = scalar_lea.vmem %s2209_s0, %s1676_s22  ;;  %v798_v35 = vld [vmem:[#allocation7] sm:$0xff]  ;;  %v2106_v36 = vld [vmem:[#allocation7 + $0x58] sm:$0xff]  ;;  %s279_s30 = scalar_lea.vmem %s2214_s5, %s1502_s27 }
  0x49   : > { %v289_v2 = vld [vmem:[%s2050_s26 + $0x1] sm:$0xff]  ;;  %v290_v4 = vld [vmem:[%s2050_s26 + $0x9] sm:$0xff]  ;;  %v291_v7 = vld [vmem:[%s2050_s26 + $0x11] sm:$0xff] }
  0x4a   : > { %v280_v3 = vld [vmem:[%s2050_s26] sm:$0xff]  ;;  %v281_v5 = vld [vmem:[%s2050_s26 + $0x8] sm:$0xff]  ;;  %1576 = vmatprep.mubr.msk.f32.mxu0 %vm299_vm1, %v289_v2  ;;  %v282_v8 = vld [vmem:[%s2050_s26 + $0x10] sm:$0xff] }
  0x4b   : > { %1590 = vmatprep.mubr.msk.f32.mxu1 %vm299_vm1, %v280_v3  ;;  %1577 = vmatmul.mubr.msk.f32.vlgmr.msra.gmra.mxu0 %vm299_vm1, %v290_v4  ;;  %v292_v9 = vld [vmem:[%s2050_s26 + $0x19] sm:$0xff]  ;;  %v293_v11 = vld [vmem:[%s2050_s26 + $0x21] sm:$0xff]  ;;  %v294_v13 = vld [vmem:[%s2050_s26 + $0x29] sm:$0xff] }
  0x4c   : > { %1591 = vmatmul.mubr.msk.f32.vlgmr.msra.gmra.mxu1 %vm299_vm1, %v281_v5  ;;  %1579 = vmatprep.mubr.msk.f32.mxu0 %vm299_vm1, %v291_v7  ;;  %v283_v10 = vld [vmem:[%s2050_s26 + $0x18] sm:$0xff]  ;;  %v284_v12 = vld [vmem:[%s2050_s26 + $0x20] sm:$0xff]  ;;  %v285_v14 = vld [vmem:[%s2050_s26 + $0x28] sm:$0xff] }
  0x4d   : > { %1603 = vmatpush3.msk.msra.mxu0 %vm324_vm0, %v574_v6  ;;  %1593 = vmatprep.mubr.msk.f32.mxu1 %vm299_vm1, %v282_v8  ;;  %v295_v15 = vld [vmem:[%s2050_s26 + $0x31] sm:$0xff]  ;;  %v296_v17 = vld [vmem:[%s2050_s26 + $0x39] sm:$0xff]  ;;  %v565_v19 = vld [vmem:[%s2050_s26 + $0x2] sm:$0xff] }
  0x4e   : > { %v286_v16 = vld [vmem:[%s2050_s26 + $0x30] sm:$0xff]  ;;  %v287_v18 = vld [vmem:[%s2050_s26 + $0x38] sm:$0xff]  ;;  %v569_v23 = vld [vmem:[%s2050_s26 + $0x22] sm:$0xff]  ;;  %1636 = vmatprep.subr.mxu0 %v801_v28  ;;  %1617 = vmatpush3.msra.mxu1 %v814_v27 }
  0x4f   : > { %1580 = vmatmul.mubr.msk.f32.gmra.mxu0 %vm299_vm1, %v292_v9  ;;  %v566_v20 = vld [vmem:[%s2050_s26 + $0xa] sm:$0xff]  ;;  %v567_v21 = vld [vmem:[%s2050_s26 + $0x12] sm:$0xff]  ;;  %v568_v22 = vld [vmem:[%s2050_s26 + $0x1a] sm:$0xff]  ;;  %1618 = vmatprep.subr.mxu1 %v813_v30 }
  0x50   : > { %1594 = vmatmul.mubr.msk.f32.gmra.mxu1 %vm299_vm1, %v283_v10  ;;  %1582 = vmatprep.mubr.msk.f32.mxu0 %vm299_vm1, %v293_v11  ;;  %v570_v24 = vld [vmem:[%s2050_s26 + $0x2a] sm:$0xff]  ;;  %v571_v25 = vld [vmem:[%s2050_s26 + $0x32] sm:$0xff]  ;;  %v572_v26 = vld [vmem:[%s2050_s26 + $0x3a] sm:$0xff] }
  0x51   : > { %1596 = vmatprep.mubr.msk.f32.mxu1 %vm299_vm1, %v284_v12  ;;  %1619 = vmatpush3.msra.mxu1 %v813_v30  ;;  %v1466_v52 = vld [vmem:[#allocation5] ss:$0 sm:$0xff] }
  0x52   : > { %1620 = vmatprep.subr.mxu1 %v812_v32 }
  0x53   : > { %1583 = vmatmul.mubr.msk.f32.gmra.mxu0 %vm299_vm1, %v294_v13  ;;  %1621 = vmatpush3.msra.mxu1 %v812_v32 }
  0x54   : > { %1597 = vmatmul.mubr.msk.f32.gmra.mxu1 %vm299_vm1, %v285_v14  ;;  %1585 = vmatprep.mubr.msk.f32.mxu0 %vm299_vm1, %v295_v15 }
  0x55   : > { %1599 = vmatprep.mubr.msk.f32.mxu1 %vm299_vm1, %v286_v16  ;;  %1622 = vmatprep.subr.mxu1 %v811_v34 }
  0x56   : > { %1623 = vmatpush3.msra.mxu1 %v811_v34 }
  0x57   : > { %1586 = vmatmul.mubr.msk.f32.gmra.mxu0 %vm299_vm1, %v296_v17  ;;  %1656 = vmatprep.subr.mxu1 %v2106_v36 }
  0x58   : > { %1600 = vmatmul.mubr.msk.f32.gmra.mxu1 %vm299_vm1, %v287_v18  ;;  %1604 = vmatprep.mubr.msk.f32.mxu0 %vm299_vm1, %v565_v19 }
  0x5b   : > { %1605 = vmatmul.mubr.msk.f32.vlgmr.msra.gmra.mxu0 %vm299_vm1, %v566_v20 }
  0x5c   : > { %1607 = vmatprep.mubr.msk.f32.mxu0 %vm299_vm1, %v567_v21  ;;  %1637 = vmatpush3.msra.mxu0 %v801_v28 }
  0x5d   : > { %1638 = vmatprep.subr.mxu0 %v800_v31 }
  0x5e   : > { %1639 = vmatpush3.msra.mxu0 %v800_v31 }
  0x5f   : > { %1608 = vmatmul.mubr.msk.f32.gmra.mxu0 %vm299_vm1, %v568_v22  ;;  %1640 = vmatprep.subr.mxu0 %v799_v33 }
  0x60   : > { %1610 = vmatprep.mubr.msk.f32.mxu0 %vm299_vm1, %v569_v23  ;;  %1641 = vmatpush3.msra.mxu0 %v799_v33 }
  0x61   : > { %1642 = vmatprep.subr.mxu0 %v798_v35 }
  0x62   : > { %1643 = vmatpush3.msra.mxu0 %v798_v35 }
  0x63   : > { %1611 = vmatmul.mubr.msk.f32.gmra.mxu0 %vm299_vm1, %v570_v24 }
  0x64   : > { %1613 = vmatprep.mubr.msk.f32.mxu0 %vm299_vm1, %v571_v25 }
  0x67   : > { %1614 = vmatmul.mubr.msk.f32.gmra.mxu0 %vm299_vm1, %v572_v26 }
 0x10b   : > { %v1578_v37 = vpop.f32.mrf.mxu0 }
 0x10c   : > { %v1592_v38 = vpop.f32.mrf.mxu1 }
 0x10d   : > { %v394_v39 = vpop.f32.mrf.mxu0  ;;  %v532_v50 = vadd.f32 %v1592_v38, %v1578_v37 }
 0x10e   : > { %v526_v40 = vpop.f32.mrf.mxu1 }
 0x10f   : > { %v1581_v41 = vpop.f32.mrf.mxu0  ;;  %v527_v53 = vadd.f32 %v526_v40, %v394_v39 }
 0x110   : > { %v1595_v42 = vpop.f32.mrf.mxu1 }
 0x111   : > { %v404_v43 = vpop.f32.mrf.mxu0  ;;  %v542_v57 = vadd.f32 %v1595_v42, %v1581_v41 }
 0x112   : > { %v536_v45 = vpop.f32.mrf.mxu1 }
 0x113   : > { %v1584_v44 = vpop.f32.mrf.mxu0  ;;  %v537_v61 = vadd.f32 %v536_v45, %v404_v43 }
 0x114   : > { %v1598_v48 = vpop.f32.mrf.mxu1 }
 0x115   : > { %v414_v46 = vpop.f32.mrf.mxu0  ;;  %v552_v7 = vadd.f32 %v1598_v48, %v1584_v44 }
 0x116   : > { %v546_v54 = vpop.f32.mrf.mxu1 }
 0x117   : > { %v1587_v47 = vpop.f32.mrf.mxu0  ;;  %v547_v8 = vadd.f32 %v546_v54, %v414_v46 }
 0x118   : > { %v1601_v62 = vpop.f32.mrf.mxu1 }
 0x119   : > { %v424_v49 = vpop.f32.mrf.mxu0  ;;  %v562_v14 = vadd.f32 %v1601_v62, %v1587_v47 }
 0x11a   : > { %v556_v10 = vpop.f32.mrf.mxu1 }
 0x11b   : > { %v1606_v51 = vpop.f32.mrf.mxu0  ;;  %v557_v20 = vadd.f32 %v556_v10, %v424_v49 }
 0x11c   : > { %v708_v55 = vadd.f32 %v1606_v51, %v532_v50 }
 0x11d   : > { %v668_v56 = vpop.f32.mrf.mxu0 }
 0x11e   : > { %v2109_v58 = vadd.f32 %v1466_v52, %v708_v55  ;;  %v707_v59 = vadd.f32 %v668_v56, %v527_v53 }
 0x11f   : > { %v1609_v60 = vpop.f32.mrf.mxu0 }
 0x120   : > { %v731_v63 = vsub.f32 0.0, %v2109_v58  ;;  %v2112_v0 = vadd.f32 %v1466_v52, %v707_v59  ;;  %v710_v1 = vadd.f32 %v1609_v60, %v542_v57 }
 0x121   : > { %v678_v2 = vpop.f32.mrf.mxu0 }
 0x122   : > { %v740_v3 = vmul.f32 1.442695, %v731_v63  ;;  %v730_v4 = vsub.f32 0.0, %v2112_v0  ;;  %v2115_v5 = vadd.f32 %v1466_v52, %v710_v1  ;;  %v709_v6 = vadd.f32 %v678_v2, %v537_v61 }
 0x123   : > { %v1612_v9 = vpop.f32.mrf.mxu0 }
 0x124   : > { %1729 = vpow2.f32 %v740_v3  ;;  %v738_v11 = vmul.f32 1.442695, %v730_v4  ;;  %v733_v12 = vsub.f32 0.0, %v2115_v5  ;;  %v2118_v13 = vadd.f32 %v1466_v52, %v709_v6 }
 0x125   : > { %v712_v15 = vadd.f32 %v1612_v9, %v552_v7  ;;  %v688_v16 = vpop.f32.mrf.mxu0  ;;  %v1084_v9 = vld [vmem:[#allocation7 + $0x50] sm:$0xff] }
 0x126   : > { %1731 = vpow2.f32 %v738_v11  ;;  %v744_v17 = vmul.f32 1.442695, %v733_v12  ;;  %v732_v18 = vsub.f32 0.0, %v2118_v13  ;;  %v711_v19 = vadd.f32 %v688_v16, %v547_v8  ;;  %v1083_v16 = vld [vmem:[#allocation7 + $0x48] sm:$0xff] }
 0x127   : > { %v727_v21 = vadd.f32 %v1466_v52, %v712_v15  ;;  %v1615_v22 = vpop.f32.mrf.mxu0 }
 0x128   : > { %1733 = vpow2.f32 %v744_v17  ;;  %v742_v23 = vmul.f32 1.442695, %v732_v18  ;;  %v726_v24 = vadd.f32 %v1466_v52, %v711_v19  ;;  %v714_v25 = vadd.f32 %v1615_v22, %v562_v14 }
 0x129   : > { %v735_v26 = vsub.f32 0.0, %v727_v21  ;;  %v698_v27 = vpop.f32.mrf.mxu0 }
 0x12a   : > { %1735 = vpow2.f32 %v742_v23  ;;  %v734_v28 = vsub.f32 0.0, %v726_v24  ;;  %v729_v29 = vadd.f32 %v1466_v52, %v714_v25  ;;  %v713_v30 = vadd.f32 %v698_v27, %v557_v20  ;;  %v1082_v20 = vld [vmem:[#allocation7 + $0x40] sm:$0xff] }
 0x12b   : > { %v748_v31 = vmul.f32 1.442695, %v735_v26 }
 0x12c   : > { %v746_v32 = vmul.f32 1.442695, %v734_v28  ;;  %v737_v33 = vsub.f32 0.0, %v729_v29  ;;  %v2121_v34 = vadd.f32 %v1466_v52, %v713_v30 }
 0x12d   : > { %1737 = vpow2.f32 %v748_v31 }
 0x12e   : > { %1739 = vpow2.f32 %v746_v32  ;;  %v752_v35 = vmul.f32 1.442695, %v737_v33  ;;  %v736_v37 = vsub.f32 0.0, %v2121_v34 }
 0x130   : > { %1741 = vpow2.f32 %v752_v35  ;;  %v750_v38 = vmul.f32 1.442695, %v736_v37 }
 0x131   : > { %v1730_v39 = vpop.eup %1729 }
 0x132   : > { %v755_v40 = vadd.f32 1.0, %v1730_v39  ;;  %1743 = vpow2.f32 %v750_v38 }
 0x133   : > { %v1732_v41 = vpop.eup %1731 }
 0x134   : > { %1745 = vrcp.f32 %v755_v40  ;;  %v754_v42 = vadd.f32 1.0, %v1732_v41 }
 0x135   : > { %v1734_v43 = vpop.eup %1733 }
 0x136   : > { %1747 = vrcp.f32 %v754_v42  ;;  %v757_v44 = vadd.f32 1.0, %v1734_v43 }
 0x137   : > { %v1736_v45 = vpop.eup %1735 }
 0x138   : > { %1749 = vrcp.f32 %v757_v44  ;;  %v756_v46 = vadd.f32 1.0, %v1736_v45 }
 0x13a   : > { %v1738_v47 = vpop.eup %1737  ;;  %1751 = vrcp.f32 %v756_v46 }
 0x13b   : > { %v1740_v48 = vpop.eup %1739  ;;  %v759_v49 = vadd.f32 1.0, %v1738_v47 }
 0x13c   : > { %v758_v50 = vadd.f32 1.0, %v1740_v48 }
 0x13d   : > { %v1742_v51 = vpop.eup %1741  ;;  %1753 = vrcp.f32 %v759_v49  ;;  %v1491_v49 = vld [vmem:[#allocation8] ss:$0 sm:$0xff] }
 0x13e   : > { %1755 = vrcp.f32 %v758_v50  ;;  %v761_v52 = vadd.f32 1.0, %v1742_v51 }
 0x13f   : > { %v1744_v53 = vpop.eup %1743 }
 0x140   : > { %1757 = vrcp.f32 %v761_v52  ;;  %v760_v54 = vadd.f32 1.0, %v1744_v53 }
 0x141   : > { %v1746_v55 = vpop.eup %1745 }
 0x142   : > { %v771_v56 = vmul.f32 %v1746_v55, %v2109_v58  ;;  %1759 = vrcp.f32 %v760_v54 }
 0x143   : > { %v1748_v57 = vpop.eup %1747 }
 0x144   : > { %783 = vst.msk [vmem:[#allocation2 + $0x9] sm:$0xff] %vm781_vm3, %v771_v56  ;;  %v770_v59 = vmul.f32 %v1748_v57, %v2112_v0 }
 0x145   : > { %v1750_v60 = vpop.eup %1749 }
 0x146   : > { %782 = vst.msk [vmem:[#allocation2 + $0x1] sm:$0xff] %vm781_vm3, %v770_v59  ;;  %v773_v61 = vmul.f32 %v1750_v60, %v2115_v5 }
 0x147   : > { %v1752_v62 = vpop.eup %1751 }
 0x148   : > { %785 = vst.msk [vmem:[#allocation2 + $0x19] sm:$0xff] %vm781_vm3, %v773_v61  ;;  %v772_v63 = vmul.f32 %v1752_v62, %v2118_v13 }
 0x14a   : > { %v1754_v1 = vpop.eup %1753  ;;  %784 = vst.msk [vmem:[#allocation2 + $0x11] sm:$0xff] %vm781_vm3, %v772_v63 }
 0x14b   : > { %v1756_v58 = vpop.eup %1755  ;;  %v775_v2 = vmul.f32 %v1754_v1, %v727_v21  ;;  %v803_v8 = vld [vmem:[#allocation2 + $0x9] sm:$0xff] }
 0x14c   : > { %v774_v3 = vmul.f32 %v1756_v58, %v726_v24 }
 0x14d   : > { %v1758_v4 = vpop.eup %1757  ;;  %787 = vst.msk [vmem:[#allocation2 + $0x29] sm:$0xff] %vm781_vm3, %v775_v2  ;;  %v802_v0 = vld [vmem:[#allocation2 + $0x1] sm:$0xff] }
 0x14e   : > { %v790_v6 = vld [vmem:[#allocation2] sm:$0xff]  ;;  %v791_v7 = vld [vmem:[#allocation2 + $0x8] sm:$0xff]  ;;  %786 = vst.msk [vmem:[#allocation2 + $0x21] sm:$0xff] %vm781_vm3, %v774_v3  ;;  %v777_v5 = vmul.f32 %v1758_v4, %v729_v29  ;;  %1624 = vmatprep.mubr.msk.f32.mxu1 %vm781_vm3, %v802_v0 }
 0x14f   : > { %1644 = vmatprep.mubr.msk.f32.mxu0 %vm781_vm3, %v790_v6  ;;  %v1760_v10 = vpop.eup %1759  ;;  %1625 = vmatmul.mubr.msk.f32.vlgmr.msra.gmra.mxu1 %vm781_vm3, %v803_v8  ;;  %v805_v15 = vld [vmem:[#allocation2 + $0x19] sm:$0xff]  ;;  %v1073_v25 = vld [vmem:[#allocation2 + $0x2] sm:$0xff] }
 0x150   : > { %1645 = vmatmul.mubr.msk.f32.vlgmr.msra.gmra.mxu0 %vm781_vm3, %v791_v7  ;;  %789 = vst.msk [vmem:[#allocation2 + $0x39] sm:$0xff] %vm781_vm3, %v777_v5  ;;  %v776_v11 = vmul.f32 %v1760_v10, %v2121_v34  ;;  %1657 = vmatpush3.msra.mxu1 %v2106_v36 }
 0x151   : > { %v804_v12 = vld [vmem:[#allocation2 + $0x11] sm:$0xff]  ;;  %1658 = vmatprep.subr.mxu1 %v1084_v9 }
 0x152   : > { %v792_v13 = vld [vmem:[#allocation2 + $0x10] sm:$0xff]  ;;  %v793_v14 = vld [vmem:[#allocation2 + $0x18] sm:$0xff]  ;;  %788 = vst.msk [vmem:[#allocation2 + $0x31] sm:$0xff] %vm781_vm3, %v776_v11  ;;  %1627 = vmatprep.mubr.msk.f32.mxu1 %vm781_vm3, %v804_v12  ;;  %1659 = vmatpush3.msra.mxu1 %v1084_v9 }
 0x153   : > { %1647 = vmatprep.mubr.msk.f32.mxu0 %vm781_vm3, %v792_v13  ;;  %1628 = vmatmul.mubr.msk.f32.gmra.mxu1 %vm781_vm3, %v805_v15  ;;  %v1074_v26 = vld [vmem:[#allocation2 + $0xa] sm:$0xff]  ;;  %v1075_v27 = vld [vmem:[#allocation2 + $0x12] sm:$0xff] }
 0x154   : > { %1648 = vmatmul.mubr.msk.f32.gmra.mxu0 %vm781_vm3, %v793_v14  ;;  %1660 = vmatprep.subr.mxu1 %v1083_v16  ;;  %v807_v19 = vld [vmem:[#allocation2 + $0x29] sm:$0xff] }
 0x155   : > { %v806_v17 = vld [vmem:[#allocation2 + $0x21] sm:$0xff]  ;;  %1661 = vmatpush3.msra.mxu1 %v1083_v16 }
 0x156   : > { %v794_v18 = vld [vmem:[#allocation2 + $0x20] sm:$0xff]  ;;  %v795_v36 = vld [vmem:[#allocation2 + $0x28] sm:$0xff]  ;;  %1630 = vmatprep.mubr.msk.f32.mxu1 %vm781_vm3, %v806_v17  ;;  %1662 = vmatprep.subr.mxu1 %v1082_v20 }
 0x157   : > { %1650 = vmatprep.mubr.msk.f32.mxu0 %vm781_vm3, %v794_v18  ;;  %1631 = vmatmul.mubr.msk.f32.gmra.mxu1 %vm781_vm3, %v807_v19  ;;  %v809_v24 = vld [vmem:[#allocation2 + $0x39] sm:$0xff]  ;;  %v1077_v29 = vld [vmem:[#allocation2 + $0x22] sm:$0xff] }
 0x158   : > { %1651 = vmatmul.mubr.msk.f32.gmra.mxu0 %vm781_vm3, %v795_v36  ;;  %1663 = vmatpush3.msra.mxu1 %v1082_v20  ;;  %v1076_v28 = vld [vmem:[#allocation2 + $0x1a] sm:$0xff] }
 0x159   : > { %v808_v21 = vld [vmem:[#allocation2 + $0x31] sm:$0xff]  ;;  %v1080_v32 = vld [vmem:[#allocation2 + $0x3a] sm:$0xff] }
 0x15a   : > { %v796_v22 = vld [vmem:[#allocation2 + $0x30] sm:$0xff]  ;;  %v797_v23 = vld [vmem:[#allocation2 + $0x38] sm:$0xff]  ;;  %1633 = vmatprep.mubr.msk.f32.mxu1 %vm781_vm3, %v808_v21 }
 0x15b   : > { %1653 = vmatprep.mubr.msk.f32.mxu0 %vm781_vm3, %v796_v22  ;;  %1634 = vmatmul.mubr.msk.f32.gmra.mxu1 %vm781_vm3, %v809_v24  ;;  %v1078_v30 = vld [vmem:[#allocation2 + $0x2a] sm:$0xff]  ;;  %v1079_v31 = vld [vmem:[#allocation2 + $0x32] sm:$0xff] }
 0x15c   : > { %1654 = vmatmul.mubr.msk.f32.gmra.mxu0 %vm781_vm3, %v797_v23  ;;  %1664 = vmatprep.mubr.msk.f32.mxu1 %vm781_vm3, %v1073_v25 }
 0x15f   : > { %1665 = vmatmul.mubr.msk.f32.vlgmr.msra.gmra.mxu1 %vm781_vm3, %v1074_v26 }
 0x160   : > { %1667 = vmatprep.mubr.msk.f32.mxu1 %vm781_vm3, %v1075_v27 }
 0x163   : > { %1668 = vmatmul.mubr.msk.f32.gmra.mxu1 %vm781_vm3, %v1076_v28 }
 0x164   : > { %1670 = vmatprep.mubr.msk.f32.mxu1 %vm781_vm3, %v1077_v29 }
 0x167   : > { %1671 = vmatmul.mubr.msk.f32.gmra.mxu1 %vm781_vm3, %v1078_v30 }
 0x168   : > { %1673 = vmatprep.mubr.msk.f32.mxu1 %vm781_vm3, %v1079_v31 }
 0x16b   : > { %1674 = vmatmul.mubr.msk.f32.gmra.mxu1 %vm781_vm3, %v1080_v32 }
 0x20f   : > { %v1626_v33 = vpop.f32.mrf.mxu1 }
 0x210   : > { %v1646_v34 = vpop.f32.mrf.mxu0 }
 0x211   : > { %v905_v35 = vpop.f32.mrf.mxu1  ;;  %v1040_v47 = vadd.f32 %v1646_v34, %v1626_v33 }
 0x212   : > { %v1034_v37 = vpop.f32.mrf.mxu0 }
 0x213   : > { %v1629_v38 = vpop.f32.mrf.mxu1  ;;  %v1035_v50 = vadd.f32 %v1034_v37, %v905_v35 }
 0x214   : > { %v1649_v39 = vpop.f32.mrf.mxu0 }
 0x215   : > { %v915_v40 = vpop.f32.mrf.mxu1  ;;  %v1050_v54 = vadd.f32 %v1649_v39, %v1629_v38 }
 0x216   : > { %v1044_v42 = vpop.f32.mrf.mxu0 }
 0x217   : > { %v1632_v41 = vpop.f32.mrf.mxu1  ;;  %v1045_v59 = vadd.f32 %v1044_v42, %v915_v40 }
 0x218   : > { %v1652_v45 = vpop.f32.mrf.mxu0 }
 0x219   : > { %v925_v43 = vpop.f32.mrf.mxu1  ;;  %v1060_v0 = vadd.f32 %v1652_v45, %v1632_v41 }
 0x21a   : > { %v1054_v51 = vpop.f32.mrf.mxu0 }
 0x21b   : > { %v1635_v44 = vpop.f32.mrf.mxu1  ;;  %v1055_v6 = vadd.f32 %v1054_v51, %v925_v43 }
 0x21c   : > { %v1655_v60 = vpop.f32.mrf.mxu0 }
 0x21d   : > { %v935_v46 = vpop.f32.mrf.mxu1  ;;  %v1070_v11 = vadd.f32 %v1655_v60, %v1635_v44 }
 0x21e   : > { %v1064_v5 = vpop.f32.mrf.mxu0 }
 0x21f   : > { %v1666_v48 = vpop.f32.mrf.mxu1  ;;  %v1065_v17 = vadd.f32 %v1064_v5, %v935_v46 }
 0x220   : > { %v1216_v52 = vadd.f32 %v1666_v48, %v1040_v47 }
 0x221   : > { %v1176_v53 = vpop.f32.mrf.mxu1 }
 0x222   : > { %v2162_v55 = vadd.f32 %v1491_v49, %v1216_v52  ;;  %v1215_v56 = vadd.f32 %v1176_v53, %v1035_v50 }
 0x223   : > { %v1669_v57 = vpop.f32.mrf.mxu1 }
 0x224   : > { %v1239_v61 = vsub.f32 0.0, %v2162_v55  ;;  %v2165_v62 = vadd.f32 %v1491_v49, %v1215_v56  ;;  %v1218_v63 = vadd.f32 %v1669_v57, %v1050_v54 }
 0x225   : > { %v1186_v1 = vpop.f32.mrf.mxu1 }
 0x226   : > { %v1248_v58 = vmul.f32 1.442695, %v1239_v61  ;;  %v1238_v2 = vsub.f32 0.0, %v2165_v62  ;;  %v2168_v3 = vadd.f32 %v1491_v49, %v1218_v63  ;;  %v1217_v4 = vadd.f32 %v1186_v1, %v1045_v59 }
 0x227   : > { %v1672_v7 = vpop.f32.mrf.mxu1 }
 0x228   : > { %1761 = vpow2.f32 %v1248_v58  ;;  %v1246_v8 = vmul.f32 1.442695, %v1238_v2  ;;  %v1241_v9 = vsub.f32 0.0, %v2168_v3  ;;  %v2171_v10 = vadd.f32 %v1491_v49, %v1217_v4 }
 0x229   : > { %v1220_v12 = vadd.f32 %v1672_v7, %v1060_v0  ;;  %v1196_v13 = vpop.f32.mrf.mxu1 }
 0x22a   : > { %1763 = vpow2.f32 %v1246_v8  ;;  %v1252_v14 = vmul.f32 1.442695, %v1241_v9  ;;  %v1240_v15 = vsub.f32 0.0, %v2171_v10  ;;  %v1219_v16 = vadd.f32 %v1196_v13, %v1055_v6 }
 0x22b   : > { %v2174_v18 = vadd.f32 %v1491_v49, %v1220_v12  ;;  %v1675_v36 = vpop.f32.mrf.mxu1 }
 0x22c   : > { %1765 = vpow2.f32 %v1252_v14  ;;  %v1250_v19 = vmul.f32 1.442695, %v1240_v15  ;;  %v2176_v20 = vadd.f32 %v1491_v49, %v1219_v16  ;;  %v1222_v21 = vadd.f32 %v1675_v36, %v1070_v11 }
 0x22d   : > { %v1243_v22 = vsub.f32 0.0, %v2174_v18  ;;  %v1206_v23 = vpop.f32.mrf.mxu1 }
 0x22e   : > { %1767 = vpow2.f32 %v1250_v19  ;;  %v1242_v24 = vsub.f32 0.0, %v2176_v20  ;;  %v2180_v25 = vadd.f32 %v1491_v49, %v1222_v21  ;;  %v1221_v26 = vadd.f32 %v1206_v23, %v1065_v17 }
 0x22f   : > { %v1256_v27 = vmul.f32 1.442695, %v1243_v22 }
 0x230   : > { %v1254_v28 = vmul.f32 1.442695, %v1242_v24  ;;  %v1245_v29 = vsub.f32 0.0, %v2180_v25  ;;  %v2183_v30 = vadd.f32 %v1491_v49, %v1221_v26 }
 0x231   : > { %1769 = vpow2.f32 %v1256_v27 }
 0x232   : > { %1771 = vpow2.f32 %v1254_v28  ;;  %v1260_v31 = vmul.f32 1.442695, %v1245_v29  ;;  %v1244_v32 = vsub.f32 0.0, %v2183_v30 }
 0x234   : > { %1773 = vpow2.f32 %v1260_v31  ;;  %v1258_v33 = vmul.f32 1.442695, %v1244_v32 }
 0x235   : > { %v1762_v34 = vpop.eup %1761 }
 0x236   : > { %v1263_v35 = vadd.f32 1.0, %v1762_v34  ;;  %1775 = vpow2.f32 %v1258_v33 }
 0x237   : > { %v1764_v37 = vpop.eup %1763 }
 0x238   : > { %1777 = vrcp.f32 %v1263_v35  ;;  %v1262_v38 = vadd.f32 1.0, %v1764_v37 }
 0x239   : > { %v1766_v39 = vpop.eup %1765 }
 0x23a   : > { %1779 = vrcp.f32 %v1262_v38  ;;  %v1265_v40 = vadd.f32 1.0, %v1766_v39 }
 0x23b   : > { %v1768_v41 = vpop.eup %1767 }
 0x23c   : > { %1781 = vrcp.f32 %v1265_v40  ;;  %v1264_v42 = vadd.f32 1.0, %v1768_v41 }
 0x23e   : > { %v1770_v43 = vpop.eup %1769  ;;  %1783 = vrcp.f32 %v1264_v42 }
 0x23f   : > { %v1772_v44 = vpop.eup %1771  ;;  %v1267_v45 = vadd.f32 1.0, %v1770_v43 }
 0x240   : > { %v1266_v46 = vadd.f32 1.0, %v1772_v44 }
 0x241   : > { %v1774_v47 = vpop.eup %1773  ;;  %1785 = vrcp.f32 %v1267_v45 }
 0x242   : > { %1787 = vrcp.f32 %v1266_v46  ;;  %v1269_v48 = vadd.f32 1.0, %v1774_v47 }
 0x243   : > { %v1776_v49 = vpop.eup %1775 }
 0x244   : > { %1789 = vrcp.f32 %v1269_v48  ;;  %v1268_v50 = vadd.f32 1.0, %v1776_v49 }
 0x245   : > { %v1778_v51 = vpop.eup %1777 }
 0x246   : > { %v1279_v52 = vmul.f32 %v1778_v51, %v2162_v55  ;;  %1791 = vrcp.f32 %v1268_v50 }
 0x247   : > { %v1780_v53 = vpop.eup %1779 }
 0x248   : > { %v1504_v54 = vpack.c.bf16 %v1279_v52, %v1279_v52  ;;  %v1278_v56 = vmul.f32 %v1780_v53, %v2165_v62 }
 0x249   : > { %v1782_v57 = vpop.eup %1781 }
 0x24a   : > { %1320 = vst.msk [vmem:[%s279_s30 + $0x4] sm:$0xf] %vm1318_vm4, %v1504_v54  ;;  %v1503_v59 = vpack.c.bf16 %v1278_v56, %v1278_v56  ;;  %v1281_v60 = vmul.f32 %v1782_v57, %v2168_v3 }
 0x24b   : > { %v1784_v61 = vpop.eup %1783 }
 0x24c   : > { %1319 = vst.msk [vmem:[%s279_s30] sm:$0xf] %vm1318_vm4, %v1503_v59  ;;  %v1506_v55 = vpack.c.bf16 %v1281_v60, %v1281_v60  ;;  %v1280_v63 = vmul.f32 %v1784_v61, %v2171_v10 }
 0x24e   : > { %v1786_v1 = vpop.eup %1785  ;;  %1322 = vst.msk [vmem:[%s279_s30 + $0xc] sm:$0xf] %vm1318_vm4, %v1506_v55  ;;  %v1505_v58 = vpack.c.bf16 %v1280_v63, %v1280_v63 }
 0x24f   : > { %v1788_v2 = vpop.eup %1787  ;;  %v1283_v4 = vmul.f32 %v1786_v1, %v2174_v18 }
 0x250   : > { %1321 = vst.msk [vmem:[%s279_s30 + $0x8] sm:$0xf] %vm1318_vm4, %v1505_v58  ;;  %v1282_v62 = vmul.f32 %v1788_v2, %v2176_v20 }
 0x251   : > { %v1790_v0 = vpop.eup %1789  ;;  %v1508_v6 = vpack.c.bf16 %v1283_v4, %v1283_v4 }
 0x252   : > { %v1507_v3 = vpack.c.bf16 %v1282_v62, %v1282_v62  ;;  %v1285_v7 = vmul.f32 %v1790_v0, %v2180_v25 }
 0x253   : > { %v1792_v5 = vpop.eup %1791  ;;  %1324 = vst.msk [vmem:[%s279_s30 + $0x14] sm:$0xf] %vm1318_vm4, %v1508_v6 }
 0x254   : > { %1323 = vst.msk [vmem:[%s279_s30 + $0x10] sm:$0xf] %vm1318_vm4, %v1507_v3  ;;  %v1510_v8 = vpack.c.bf16 %v1285_v7, %v1285_v7  ;;  %v1284_v9 = vmul.f32 %v1792_v5, %v2183_v30 }
 0x256   : > { %1326 = vst.msk [vmem:[%s279_s30 + $0x1c] sm:$0xf] %vm1318_vm4, %v1510_v8  ;;  %v1509_v10 = vpack.c.bf16 %v1284_v9, %v1284_v9 }
 0x258   : > { %1325 = vst.msk [vmem:[%s279_s30 + $0x18] sm:$0xf] %vm1318_vm4, %v1509_v10 }
 0x259 PF: > { %s18_s18 = sadd.s32 1, %s1915_s18  }
 0x25a   : > { %p15_p2 = scmp.ge.s32.totalorder %s18_s18, 4  }
 0x25c   :  { %17 = sbr.rel (!%p15_p2) target bundleno = 3 (0x3), region = 91 }
 0x261   :  { %1348 = vsyncpa [#allocation4], 1 }
 0x262   :  { %1350 = vsyncpa [#allocation4 + $0x1], 1 }
 0x263   :  { %1351 = vsyncpa [#allocation6], 1 }
 0x264   :  { %1352 = vsyncpa [#allocation9], 1 }

// kernel: fft_conv1d_linear_forward.5
= control target key start
LH: loop header
LB: loop body
LE: loop exit
PB: predicated region body
PF: predicated region fallthrough
CT: control target
= control target key end

     0   :  { %10 = vsyncpa [#allocation4], 0  ;;  %s6944_s0 = inlined_call_operand.vmem [shape: bf16[8,4096], index: 0, kind: input, shape index: {}]   ;;  %s6945_s1 = inlined_call_operand.hbm [shape: bf16[4096,1024], index: 1, kind: input, shape index: {}]   ;;  %s6946_s2 = inlined_call_operand.hbm [shape: f32[1,1024], index: 2, kind: input, shape index: {}]   ;;  %s6947_s3 = inlined_call_operand.hbm [shape: bf16[1024,128], index: 3, kind: input, shape index: {}]   ;;  %s6948_s4 = inlined_call_operand.hbm [shape: f32[1,128], index: 4, kind: input, shape index: {}]   ;;  %s6949_s5 = inlined_call_operand.vmem [shape: f32[8,128], index: 5, kind: output, shape index: {}]  }
   0x1   :  { %12 = vsyncpa [#allocation4 + $0x1], 0 }
   0x2   :  { %13 = vsyncpa [#allocation6], 0 }
   0x3   :  { %14 = vsyncpa [#allocation9], 0  ;;  %s6152_s18 = smov 0   ;;  %s6154_s19 = smov 0  }
   0x4   :  { %s6156_s20 = smov 0   ;;  %s6158_s21 = smov 0  }
   0x5   :  { %s6160_s22 = smov 0   ;;  %s6162_s23 = smov 0  }
   0x6 LB: > { %s5051_s24 = sadd.s32 4294967295, %s6111_s23   ;;  %p80_p0 = scmp.ne.s32.totalorder %s6095_s19, %s6091_s18  ;;  %s6111_s23 = sphi %s6162_s23, %s20_s23   ;;  %s6107_s22 = sphi %s6160_s22, %s6966_s22   ;;  %s6103_s21 = sphi %s6158_s21, %s6965_s21   ;;  %s6099_s20 = sphi %s6156_s20, %s6964_s20   ;;  %s6095_s19 = sphi %s6154_s19, %s6963_s19   ;;  %s6091_s18 = sphi %s6152_s18, %s6962_s18  }
   0x7   : > { %p6182_p1 = scmp.eq.s32.totalorder %s5051_s24, 0  ;;  %p5052_p2 = scmp.ge.s32.totalorder %s6111_s23, 1 }
   0x8   : > { %p180_p3 = scmp.lt.s32.totalorder %s6111_s23, 5  ;;  %s6113_s28 = smov [#allocation5]  }
   0x9   : > { %s6954_s25 = scalar_select %p6182_p1, 1, 0 }
   0xa   : > { %p6190_p4 = por %p6182_p1, %p80_p0  ;;  %p6194_p5 = pnand %p5052_p2, %p180_p3 }
   0xb   : > { %s193_s29 = sshll.u32 %s6113_s28, 4  ;;  %s6114_s30 = smov [#allocation7]   ;;  %s194_s29 = int_to_ptr.vmem [resolvable:$true] %s193_s29 }
   0xc   : > { %s6955_s26 = scalar_select %p6190_p4, 1, 0 }
   0xd   : > { %s6956_s27 = scalar_select %p6194_p5, 1, 0 }
   0xe   : > { %p5762_p6 = pneg %p6194_p5  ;;  %s203_s6 = sshll.u32 %s6114_s30, 4  ;;  %s204_s6 = int_to_ptr.vmem [resolvable:$true] %s203_s6 }
   0xf   : > { %s6115_s8 = smov [#allocation8]   ;;  %s5958_s10 = scalar_lea.vmem %s194_s29, 128 }
  0x10   : > { %p6202_p7 = pnand %p5762_p6, %p6182_p1  ;;  %s217_s9 = sshll.u32 %s6115_s8, 4  ;;  %s218_s9 = int_to_ptr.vmem [resolvable:$true] %s217_s9 }
  0x11   : > { %p5959_p9 = scmp.ne.s32.totalorder %s194_s29, %s5958_s10  ;;  %p5966_p12 = scmp.lt.s32.totalorder %s194_s29, %s194_s29 }
  0x12   : > { %p5949_p8 = pneg %p6202_p7  ;;  %p5967_p13 = scmp.lt.s32.totalorder %s5958_s10, %s5958_s10 }
  0x14   : > { %p5961_p10 = pnand %p5959_p9, %p5949_p8  ;;  %p5968_p0 = por %p5967_p13, %p5966_p12 }
  0x16   : > { %p5962_p11 = pneg %p5961_p10 }
  0x18   : > { %p5969_p2 = pnand %p5968_p0, %p5962_p11 }
  0x1a   : > { %5972 = shalt.err (!%p5969_p2)
}
  0x1b   : > { %5765 = dma.hbm_to_vmem [thread:$0]  (!%p6202_p7), %s6946_s2, 128, %s194_s29, [#allocation6]  }
  0x1c   : > { %s5984_s13 = scalar_lea.vmem %s204_s6, 8192  ;;  %p5992_p9 = scmp.lt.s32.totalorder %s204_s6, %s204_s6 }
  0x1d   : > { %p5985_p3 = scmp.ne.s32.totalorder %s204_s6, %s5984_s13  ;;  %p5993_p10 = scmp.lt.s32.totalorder %s5984_s13, %s5984_s13 }
  0x1f   : > { %p5987_p6 = pnand %p5985_p3, %p5949_p8  ;;  %p5994_p4 = por %p5993_p10, %p5992_p9 }
  0x21   : > { %p5988_p1 = pneg %p5987_p6 }
  0x23   : > { %p5995_p5 = pnand %p5994_p4, %p5988_p1 }
  0x25   : > { %5998 = shalt.err (!%p5995_p5)
}
  0x26   : > { %s6116_s14 = smov 64   ;;  %s6117_s15 = smov 4  }
  0x27   : > { %5768 = dma.hbm_to_vmem [thread:$0]  (!%p6202_p7), %s6947_s3, 8192, %s204_s6, [#allocation6], %s6116_s14, %s6116_s14, %s6117_s15  }
  0x28   : > { %s6010_s18 = scalar_lea.vmem %s218_s9, 16  ;;  %s6017_s24 = scalar_lea.vmem %s218_s9, 32 }
  0x29   : > { %p6011_p11 = scmp.ne.s32.totalorder %s218_s9, %s6010_s18  ;;  %p6018_p0 = scmp.lt.s32.totalorder %s218_s9, %s218_s9 }
  0x2a   : > { %p6019_p1 = scmp.lt.s32.totalorder %s6017_s24, %s6010_s18 }
  0x2b   : > { %p6013_p12 = pnand %p6011_p11, %p5949_p8 }
  0x2c   : > { %p6020_p4 = por %p6019_p1, %p6018_p0 }
  0x2d   : > { %p6014_p13 = pneg %p6013_p12 }
  0x2f   : > { %p6021_p5 = pnand %p6020_p4, %p6014_p13 }
  0x31   : > { %6024 = shalt.err (!%p6021_p5)
}
  0x32   : > { %5771 = dma.hbm_to_vmem [thread:$0]  (!%p6202_p7), %s6948_s4, 16, %s218_s9, [#allocation9]  }
  0x33   : > { %s67_s30 = sadd.s32 1, %s6099_s20  ;;  %s29_s6 = sadd.s32 1, %s6107_s22 }
  0x34   : > { %p74_p8 = scmp.ne.s32.totalorder %s6099_s20, %s6095_s19  ;;  %p30_p2 = scmp.ge.s32.totalorder %s29_s6, 4 }
  0x35   : > { %p75_p3 = scmp.eq.s32.totalorder %s6111_s23, 0  ;;  %p5779_p6 = scmp.lt.s32.totalorder %s6111_s23, 4 }
  0x36   : > { %s241_s7 = sand.u32 1, %s6099_s20   ;;  %s6968_s6 = smov (%p30_p2, %s29_s6), 0 }
  0x37   : > { %p76_p9 = por %p75_p3, %p74_p8  ;;  %s64_s8 = ssub.s32 %s6107_s22, %s6968_s6 }
  0x38   : > { %s5057_s10 = sshll.u32 %s241_s7, 12  ;;  %p65_p10 = scmp.eq.s32.totalorder %s64_s8, 0 }
  0x39   : > { %s5659_s11 = sshll.u32 %s6107_s22, 16  ;;  %s245_s12 = scalar_lea.vmem [#allocation3], %s5057_s10 }
  0x3a   : > { %s253_s13 = sshll.u32 %s245_s12, 4  ;;  %s252_s16 = scalar_lea.hbm %s6945_s1, %s5659_s11  ;;  %s254_s13 = int_to_ptr.vmem [resolvable:$true] %s253_s13 }
  0x3b   : > { %s6245_s9 = scalar_select %p65_p10, %s6099_s20, %s67_s30  }
  0x3c   : > { %p6252_p7 = pnand %p5779_p6, %p76_p9  ;;  %s242_s18 = scalar_lea.sflag [#allocation4], %s241_s7 }
  0x3d   : > { %s6038_s24 = scalar_lea.vmem %s254_s13, 65536  ;;  %s6118_s28 = smov [#allocation3]  }
  0x3e   : > { %p6027_p11 = pneg %p6252_p7  ;;  %p6039_p12 = scmp.ne.s32.totalorder %s254_s13, %s6038_s24 }
  0x3f   : > { %s6043_s29 = sshll.u32 %s6118_s28, 4  ;;  %s6044_s29 = int_to_ptr.vmem [resolvable:$false] %s6043_s29 }
  0x40   : > { %p6041_p13 = pnand %p6039_p12, %p6027_p11  ;;  %s6045_s30 = scalar_lea.vmem %s6044_s29, 131072 }
  0x41   : > { %p6046_p1 = scmp.lt.s32.totalorder %s254_s13, %s6044_s29  ;;  %p6047_p4 = scmp.lt.s32.totalorder %s6045_s30, %s6038_s24 }
  0x42   : > { %p6042_p0 = pneg %p6041_p13 }
  0x43   : > { %p6048_p5 = por %p6047_p4, %p6046_p1 }
  0x45   : > { %p6049_p8 = pnand %p6048_p5, %p6042_p0 }
  0x47   : > { %6052 = shalt.err (!%p6049_p8)
}
  0x48   : > { %s6119_s8 = smov 512   ;;  %s6120_s10 = smov 32  }
  0x49   : > { %5775 = dma.hbm_to_vmem [thread:$0]  (!%p6252_p7), %s252_s16, 65536, %s254_s13, %s242_s18, %s6119_s8, %s6119_s8, %s6120_s10  }
  0x4a   : > { %p6959_p2 = scmp.ne.s32.totalorder %s6956_s27, 0 }
  0x4b   : > { %s267_s7 = sand.u32 (!%p6959_p2), 1, %s6095_s19   ;;  %p6960_p3 = scmp.ne.s32.totalorder (!%p6959_p2), %s6955_s26, 0 }
  0x4c   : > { %265 = sbr.rel (%p6959_p2) target bundleno = 1142 (0x476), region = 40  ;;  %s5062_s11 = sshll.u32 (!%p6959_p2), %s267_s7, 12 }
  0x4d   : > { %s268_s12 = scalar_lea.sflag (!%p6959_p2), [#allocation4], %s267_s7  ;;  %s6263_s14 = scalar_lea.vmem (!%p6959_p2), [#allocation3], %s5062_s11 }
  0x51   : > { %6078 = dma.done.wait (%p6960_p3), %s268_s12, 65536  }
  0x52   : > { %6080 = vsyncadd (%p6960_p3), %s268_s12, 4294901760  ;;  %p6961_p6 = scmp.ne.s32.totalorder %s6954_s25, 0 }
  0x54   : > { %6082 = dma.done.wait (%p6961_p6), [#allocation6], 8320  }
  0x55   : > { %6084 = vsyncadd (%p6961_p6), [#allocation6], 4294958976 }
  0x56   : > { %6086 = dma.done.wait (%p6961_p6), [#allocation9], 16  }
  0x57   : > { %6088 = vsyncadd (%p6961_p6), [#allocation9], 4294967280  ;;  %s5066_s27 = sshll.u32 %s6103_s21, 3  ;;  %p5068_p10 = scmp.ne.s32.totalorder %s6103_s21, 0 }
  0x58   : > { %p321_p9 = scmp.lt.s32.totalorder %s5066_s27, 31 }
  0x59   : > { %337 = sbr.rel (%p5068_p10) target bundleno = 99 (0x63), region = 60 }
  0x5a   : > { %s6970_s27 = smov (!%p321_p9, %s5066_s27), 31 }
  0x5b   : > { %s5067_s13 = sshll.u32 %s6970_s27, 2 }
  0x5c   : > { %s6281_s16 = scalar_lea.vmem %s6944_s0, %s5067_s13 }
  0x5e   : > { %v6121_v0 = vmov 0.0  }
  0x5f   : > { %338 = vst [vmem:[#allocation2 + $0x30] sm:$0xff] %v6121_v0  ;;  %339 = vst [vmem:[#allocation2] sm:$0xff] %v6121_v0 }
  0x60   : > { %340 = vst [vmem:[#allocation2 + $0x18] sm:$0xff] %v6121_v0  ;;  %341 = vst [vmem:[#allocation2 + $0x10] sm:$0xff] %v6121_v0 }
  0x61   : > { %342 = vst [vmem:[#allocation2 + $0x8] sm:$0xff] %v6121_v0  ;;  %343 = vst [vmem:[#allocation2 + $0x20] sm:$0xff] %v6121_v0 }
  0x62   : > { %344 = vst [vmem:[#allocation2 + $0x28] sm:$0xff] %v6121_v0  ;;  %345 = vst [vmem:[#allocation2 + $0x38] sm:$0xff] %v6121_v0 }
  0x63 PF: > { %v414_v1 = vld [vmem:[%s6263_s14 + $0x1c0] sm:$0xff]  ;;  %v6316_v55 = vld [vmem:[%s6281_s16 + $0x8] sm:$0xff]  ;;  %p5589_p7 = scmp.ne.s32.totalorder %s6103_s21, 3 }
  0x64   : > { %v418_v2 = vld [vmem:[%s6263_s14 + $0x1e0] sm:$0xff]  ;;  %v6326_v60 = vcombine.high %v6316_v55, %v6316_v55 }
  0x65   : > { %v542_v3 = vld [vmem:[%s6263_s14 + $0x5c0] sm:$0xff]  ;;  %v5134_v4 = vcombine.high %v414_v1, %v418_v2  ;;  %v5133_v6 = vcombine.low %v414_v1, %v418_v2 }
  0x66   : > { %v546_v5 = vld [vmem:[%s6263_s14 + $0x5e0] sm:$0xff]  ;;  %3531 = vmatprep.mubr.bf16.mxu1 %v6326_v60 }
  0x67   : > { %v406_v7 = vld [vmem:[%s6263_s14 + $0x180] sm:$0xff]  ;;  %v5262_v9 = vcombine.high %v542_v3, %v546_v5  ;;  %v5261_v10 = vcombine.low %v542_v3, %v546_v5  ;;  %3458 = vmatprep.subr.bf16.mxu0 %v5134_v4 }
  0x68   : > { %v410_v8 = vld [vmem:[%s6263_s14 + $0x1a0] sm:$0xff]  ;;  %3459 = vmatpush1.bf16.msra.mxu0 %v5133_v6 }
  0x69   : > { %v5126_v11 = vcombine.high %v406_v7, %v410_v8  ;;  %v534_v12 = vld [vmem:[%s6263_s14 + $0x580] sm:$0xff]  ;;  %3499 = vmatprep.subr.bf16.mxu1 %v5262_v9  ;;  %v5125_v19 = vcombine.low %v406_v7, %v410_v8 }
  0x6a   : > { %v538_v13 = vld [vmem:[%s6263_s14 + $0x5a0] sm:$0xff]  ;;  %3500 = vmatpush1.bf16.msra.mxu1 %v5261_v10 }
  0x6b   : > { %v398_v14 = vld [vmem:[%s6263_s14 + $0x140] sm:$0xff]  ;;  %v5254_v15 = vcombine.high %v534_v12, %v538_v13  ;;  %3460 = vmatprep.subr.bf16.mxu0 %v5126_v11  ;;  %v5253_v20 = vcombine.low %v534_v12, %v538_v13 }
  0x6c   : > { %v402_v16 = vld [vmem:[%s6263_s14 + $0x160] sm:$0xff]  ;;  %3461 = vmatpush1.bf16.msra.mxu0 %v5125_v19 }
  0x6d   : > { %v526_v17 = vld [vmem:[%s6263_s14 + $0x540] sm:$0xff]  ;;  %v5118_v21 = vcombine.high %v398_v14, %v402_v16  ;;  %3501 = vmatprep.subr.bf16.mxu1 %v5254_v15  ;;  %v5117_v27 = vcombine.low %v398_v14, %v402_v16 }
  0x6e   : > { %v530_v18 = vld [vmem:[%s6263_s14 + $0x560] sm:$0xff]  ;;  %3502 = vmatpush1.bf16.msra.mxu1 %v5253_v20 }
  0x6f   : > { %v5246_v22 = vcombine.high %v526_v17, %v530_v18  ;;  %v390_v23 = vld [vmem:[%s6263_s14 + $0x100] sm:$0xff]  ;;  %3462 = vmatprep.subr.bf16.mxu0 %v5118_v21  ;;  %v5245_v28 = vcombine.low %v526_v17, %v530_v18 }
  0x70   : > { %v394_v24 = vld [vmem:[%s6263_s14 + $0x120] sm:$0xff]  ;;  %3463 = vmatpush1.bf16.msra.mxu0 %v5117_v27 }
  0x71   : > { %v518_v25 = vld [vmem:[%s6263_s14 + $0x500] sm:$0xff]  ;;  %v5110_v29 = vcombine.high %v390_v23, %v394_v24  ;;  %3503 = vmatprep.subr.bf16.mxu1 %v5246_v22  ;;  %v5109_v35 = vcombine.low %v390_v23, %v394_v24 }
  0x72   : > { %v522_v26 = vld [vmem:[%s6263_s14 + $0x520] sm:$0xff]  ;;  %3504 = vmatpush1.bf16.msra.mxu1 %v5245_v28 }
  0x73   : > { %v5238_v30 = vcombine.high %v518_v25, %v522_v26  ;;  %v382_v31 = vld [vmem:[%s6263_s14 + $0xc0] sm:$0xff]  ;;  %3464 = vmatprep.subr.bf16.mxu0 %v5110_v29  ;;  %v5237_v36 = vcombine.low %v518_v25, %v522_v26 }
  0x74   : > { %v386_v32 = vld [vmem:[%s6263_s14 + $0xe0] sm:$0xff]  ;;  %3465 = vmatpush1.bf16.msra.mxu0 %v5109_v35 }
  0x75   : > { %v510_v33 = vld [vmem:[%s6263_s14 + $0x4c0] sm:$0xff]  ;;  %v5102_v37 = vcombine.high %v382_v31, %v386_v32  ;;  %3505 = vmatprep.subr.bf16.mxu1 %v5238_v30  ;;  %v5101_v43 = vcombine.low %v382_v31, %v386_v32 }
  0x76   : > { %v514_v34 = vld [vmem:[%s6263_s14 + $0x4e0] sm:$0xff]  ;;  %3506 = vmatpush1.bf16.msra.mxu1 %v5237_v36 }
  0x77   : > { %v5230_v38 = vcombine.high %v510_v33, %v514_v34  ;;  %v374_v39 = vld [vmem:[%s6263_s14 + $0x80] sm:$0xff]  ;;  %3466 = vmatprep.subr.bf16.mxu0 %v5102_v37  ;;  %v5229_v44 = vcombine.low %v510_v33, %v514_v34 }
  0x78   : > { %v378_v40 = vld [vmem:[%s6263_s14 + $0xa0] sm:$0xff]  ;;  %3467 = vmatpush1.bf16.msra.mxu0 %v5101_v43 }
  0x79   : > { %v502_v41 = vld [vmem:[%s6263_s14 + $0x480] sm:$0xff]  ;;  %v5094_v45 = vcombine.high %v374_v39, %v378_v40  ;;  %3507 = vmatprep.subr.bf16.mxu1 %v5230_v38  ;;  %v5093_v51 = vcombine.low %v374_v39, %v378_v40 }
  0x7a   : > { %v506_v42 = vld [vmem:[%s6263_s14 + $0x4a0] sm:$0xff]  ;;  %3508 = vmatpush1.bf16.msra.mxu1 %v5229_v44 }
  0x7b   : > { %v5222_v46 = vcombine.high %v502_v41, %v506_v42  ;;  %v366_v47 = vld [vmem:[%s6263_s14 + $0x40] sm:$0xff]  ;;  %3468 = vmatprep.subr.bf16.mxu0 %v5094_v45  ;;  %v5221_v52 = vcombine.low %v502_v41, %v506_v42 }
  0x7c   : > { %v370_v48 = vld [vmem:[%s6263_s14 + $0x60] sm:$0xff]  ;;  %3469 = vmatpush1.bf16.msra.mxu0 %v5093_v51 }
  0x7d   : > { %v494_v49 = vld [vmem:[%s6263_s14 + $0x440] sm:$0xff]  ;;  %v5086_v53 = vcombine.high %v366_v47, %v370_v48  ;;  %3509 = vmatprep.subr.bf16.mxu1 %v5222_v46  ;;  %v5085_v63 = vcombine.low %v366_v47, %v370_v48 }
  0x7e   : > { %v498_v50 = vld [vmem:[%s6263_s14 + $0x460] sm:$0xff]  ;;  %3510 = vmatpush1.bf16.msra.mxu1 %v5221_v52 }
  0x7f   : > { %v6313_v54 = vld [vmem:[%s6281_s16] sm:$0xff]  ;;  %v5214_v56 = vcombine.high %v494_v49, %v498_v50  ;;  %3470 = vmatprep.subr.bf16.mxu0 %v5086_v53  ;;  %v5213_v0 = vcombine.low %v494_v49, %v498_v50 }
  0x80   : > { %v358_v57 = vld [vmem:[%s6263_s14] sm:$0xff]  ;;  %v6322_v59 = vcombine.high %v6313_v54, %v6313_v54  ;;  %3471 = vmatpush1.bf16.msra.mxu0 %v5085_v63 }
  0x81   : > { %v362_v58 = vld [vmem:[%s6263_s14 + $0x20] sm:$0xff]  ;;  %3511 = vmatprep.subr.bf16.mxu1 %v5214_v56 }
  0x82   : > { %v486_v61 = vld [vmem:[%s6263_s14 + $0x400] sm:$0xff]  ;;  %3490 = vmatprep.mubr.bf16.mxu0 %v6322_v59  ;;  %v5078_v1 = vcombine.high %v358_v57, %v362_v58  ;;  %v5077_v7 = vcombine.low %v358_v57, %v362_v58  ;;  %3512 = vmatpush1.bf16.msra.mxu1 %v5213_v0 }
  0x83   : > { %v490_v62 = vld [vmem:[%s6263_s14 + $0x420] sm:$0xff] }
  0x84   : > { %v5206_v2 = vcombine.high %v486_v61, %v490_v62  ;;  %v478_v3 = vld [vmem:[%s6263_s14 + $0x3c0] sm:$0xff]  ;;  %3472 = vmatprep.subr.bf16.mxu0 %v5078_v1  ;;  %v5205_v8 = vcombine.low %v486_v61, %v490_v62 }
  0x85   : > { %v482_v4 = vld [vmem:[%s6263_s14 + $0x3e0] sm:$0xff]  ;;  %3473 = vmatpush1.bf16.msra.mxu0 %v5077_v7 }
  0x86   : > { %v606_v5 = vld [vmem:[%s6263_s14 + $0x7c0] sm:$0xff]  ;;  %v5198_v9 = vcombine.high %v478_v3, %v482_v4  ;;  %3513 = vmatprep.subr.bf16.mxu1 %v5206_v2  ;;  %v5197_v15 = vcombine.low %v478_v3, %v482_v4 }
  0x87   : > { %v610_v6 = vld [vmem:[%s6263_s14 + $0x7e0] sm:$0xff]  ;;  %3514 = vmatpush1.bf16.msra.mxu1 %v5205_v8 }
  0x88   : > { %v5326_v10 = vcombine.high %v606_v5, %v610_v6  ;;  %v470_v11 = vld [vmem:[%s6263_s14 + $0x380] sm:$0xff]  ;;  %3474 = vmatprep.subr.bf16.mxu0 %v5198_v9  ;;  %v5325_v16 = vcombine.low %v606_v5, %v610_v6 }
  0x89   : > { %v474_v12 = vld [vmem:[%s6263_s14 + $0x3a0] sm:$0xff]  ;;  %3475 = vmatpush2.bf16.msra.mxu0 %v5197_v15 }
  0x8a   : > { %v598_v13 = vld [vmem:[%s6263_s14 + $0x780] sm:$0xff]  ;;  %v5190_v17 = vcombine.high %v470_v11, %v474_v12  ;;  %3515 = vmatprep.subr.bf16.mxu1 %v5326_v10  ;;  %v5189_v23 = vcombine.low %v470_v11, %v474_v12 }
  0x8b   : > { %v602_v14 = vld [vmem:[%s6263_s14 + $0x7a0] sm:$0xff]  ;;  %3516 = vmatpush2.bf16.msra.mxu1 %v5325_v16 }
  0x8c   : > { %v5318_v18 = vcombine.high %v598_v13, %v602_v14  ;;  %v462_v19 = vld [vmem:[%s6263_s14 + $0x340] sm:$0xff]  ;;  %3476 = vmatprep.subr.bf16.mxu0 %v5190_v17  ;;  %v5317_v24 = vcombine.low %v598_v13, %v602_v14  ;;  %v6372_v17 = vcombine.low %v6313_v54, %v6313_v54 }
  0x8d   : > { %v466_v20 = vld [vmem:[%s6263_s14 + $0x360] sm:$0xff]  ;;  %3477 = vmatpush2.bf16.msra.mxu0 %v5189_v23  ;;  %v6384_v23 = vld [vmem:[%s6281_s16 + $0x18] sm:$0xff] }
  0x8e   : > { %v590_v21 = vld [vmem:[%s6263_s14 + $0x740] sm:$0xff]  ;;  %v5182_v25 = vcombine.high %v462_v19, %v466_v20  ;;  %3517 = vmatprep.subr.bf16.mxu1 %v5318_v18  ;;  %v5181_v31 = vcombine.low %v462_v19, %v466_v20  ;;  %v6377_v20 = vld [vmem:[%s6281_s16 + $0x10] sm:$0xff] }
  0x8f   : > { %v594_v22 = vld [vmem:[%s6263_s14 + $0x760] sm:$0xff]  ;;  %3518 = vmatpush2.bf16.msra.mxu1 %v5317_v24 }
  0x90   : > { %v5310_v26 = vcombine.high %v590_v21, %v594_v22  ;;  %v454_v27 = vld [vmem:[%s6263_s14 + $0x300] sm:$0xff]  ;;  %3478 = vmatprep.subr.bf16.mxu0 %v5182_v25  ;;  %v5309_v32 = vcombine.low %v590_v21, %v594_v22  ;;  %v6381_v21 = vcombine.low %v6316_v55, %v6316_v55 }
  0x91   : > { %v458_v28 = vld [vmem:[%s6263_s14 + $0x320] sm:$0xff]  ;;  %3479 = vmatpush2.bf16.msra.mxu0 %v5181_v31 }
  0x92   : > { %v582_v29 = vld [vmem:[%s6263_s14 + $0x700] sm:$0xff]  ;;  %v5174_v33 = vcombine.high %v454_v27, %v458_v28  ;;  %3519 = vmatprep.subr.bf16.mxu1 %v5310_v26  ;;  %v5173_v39 = vcombine.low %v454_v27, %v458_v28  ;;  %v6390_v28 = vcombine.high %v6377_v20, %v6377_v20 }
  0x93   : > { %v586_v30 = vld [vmem:[%s6263_s14 + $0x720] sm:$0xff]  ;;  %3520 = vmatpush2.bf16.msra.mxu1 %v5309_v32 }
  0x94   : > { %v5302_v34 = vcombine.high %v582_v29, %v586_v30  ;;  %v446_v35 = vld [vmem:[%s6263_s14 + $0x2c0] sm:$0xff]  ;;  %3480 = vmatprep.subr.bf16.mxu0 %v5174_v33  ;;  %v5301_v40 = vcombine.low %v582_v29, %v586_v30  ;;  %v6397_v30 = vcombine.high %v6384_v23, %v6384_v23 }
  0x95   : > { %v450_v36 = vld [vmem:[%s6263_s14 + $0x2e0] sm:$0xff]  ;;  %3481 = vmatpush2.bf16.msra.mxu0 %v5173_v39 }
  0x96   : > { %v574_v37 = vld [vmem:[%s6263_s14 + $0x6c0] sm:$0xff]  ;;  %v5166_v41 = vcombine.high %v446_v35, %v450_v36  ;;  %3521 = vmatprep.subr.bf16.mxu1 %v5302_v34  ;;  %v5165_v47 = vcombine.low %v446_v35, %v450_v36 }
  0x97   : > { %v578_v38 = vld [vmem:[%s6263_s14 + $0x6e0] sm:$0xff]  ;;  %3522 = vmatpush2.bf16.msra.mxu1 %v5301_v40 }
  0x98   : > { %v5294_v42 = vcombine.high %v574_v37, %v578_v38  ;;  %v438_v43 = vld [vmem:[%s6263_s14 + $0x280] sm:$0xff]  ;;  %3482 = vmatprep.subr.bf16.mxu0 %v5166_v41  ;;  %v5293_v48 = vcombine.low %v574_v37, %v578_v38 }
  0x99   : > { %v442_v44 = vld [vmem:[%s6263_s14 + $0x2a0] sm:$0xff]  ;;  %3483 = vmatpush2.bf16.msra.mxu0 %v5165_v47 }
  0x9a   : > { %v566_v45 = vld [vmem:[%s6263_s14 + $0x680] sm:$0xff]  ;;  %v5158_v49 = vcombine.high %v438_v43, %v442_v44  ;;  %3523 = vmatprep.subr.bf16.mxu1 %v5294_v42  ;;  %v5157_v57 = vcombine.low %v438_v43, %v442_v44 }
  0x9b   : > { %v570_v46 = vld [vmem:[%s6263_s14 + $0x6a0] sm:$0xff]  ;;  %3524 = vmatpush2.bf16.msra.mxu1 %v5293_v48 }
  0x9c   : > { %v5286_v50 = vcombine.high %v566_v45, %v570_v46  ;;  %v430_v51 = vld [vmem:[%s6263_s14 + $0x240] sm:$0xff]  ;;  %3484 = vmatprep.subr.bf16.mxu0 %v5158_v49  ;;  %v5285_v58 = vcombine.low %v566_v45, %v570_v46 }
  0x9d   : > { %v434_v52 = vld [vmem:[%s6263_s14 + $0x260] sm:$0xff]  ;;  %3485 = vmatpush2.bf16.msra.mxu0 %v5157_v57 }
  0x9e   : > { %v558_v53 = vld [vmem:[%s6263_s14 + $0x640] sm:$0xff]  ;;  %v5150_v61 = vcombine.high %v430_v51, %v434_v52  ;;  %3525 = vmatprep.subr.bf16.mxu1 %v5286_v50  ;;  %v5149_v3 = vcombine.low %v430_v51, %v434_v52 }
  0x9f   : > { %v562_v56 = vld [vmem:[%s6263_s14 + $0x660] sm:$0xff]  ;;  %3526 = vmatpush2.bf16.msra.mxu1 %v5285_v58 }
  0xa0   : > { %v5278_v62 = vcombine.high %v558_v53, %v562_v56  ;;  %v422_v63 = vld [vmem:[%s6263_s14 + $0x200] sm:$0xff]  ;;  %3486 = vmatprep.subr.bf16.mxu0 %v5150_v61  ;;  %v5277_v4 = vcombine.low %v558_v53, %v562_v56 }
  0xa1   : > { %v426_v0 = vld [vmem:[%s6263_s14 + $0x220] sm:$0xff]  ;;  %3487 = vmatpush2.bf16.msra.mxu0 %v5149_v3 }
  0xa2   : > { %v550_v1 = vld [vmem:[%s6263_s14 + $0x600] sm:$0xff]  ;;  %v5142_v5 = vcombine.high %v422_v63, %v426_v0  ;;  %3527 = vmatprep.subr.bf16.mxu1 %v5278_v62  ;;  %v5141_v11 = vcombine.low %v422_v63, %v426_v0 }
  0xa3   : > { %v554_v2 = vld [vmem:[%s6263_s14 + $0x620] sm:$0xff]  ;;  %3528 = vmatpush2.bf16.msra.mxu1 %v5277_v4 }
  0xa4   : > { %v5270_v6 = vcombine.high %v550_v1, %v554_v2  ;;  %v670_v7 = vld [vmem:[%s6263_s14 + $0x9c0] sm:$0xff]  ;;  %3488 = vmatprep.subr.bf16.mxu0 %v5142_v5  ;;  %v5269_v12 = vcombine.low %v550_v1, %v554_v2 }
  0xa5   : > { %v674_v8 = vld [vmem:[%s6263_s14 + $0x9e0] sm:$0xff]  ;;  %3489 = vmatpush2.bf16.msra.mxu0 %v5141_v11 }
  0xa6   : > { %v798_v9 = vld [vmem:[%s6263_s14 + $0xdc0] sm:$0xff]  ;;  %v5390_v13 = vcombine.high %v670_v7, %v674_v8  ;;  %3529 = vmatprep.subr.bf16.mxu1 %v5270_v6  ;;  %v5389_v22 = vcombine.low %v670_v7, %v674_v8 }
  0xa7   : > { %v802_v10 = vld [vmem:[%s6263_s14 + $0xde0] sm:$0xff]  ;;  %3530 = vmatpush2.bf16.msra.mxu1 %v5269_v12 }
  0xa8   : > { %v5518_v14 = vcombine.high %v798_v9, %v802_v10  ;;  %v662_v15 = vld [vmem:[%s6263_s14 + $0x980] sm:$0xff]  ;;  %3540 = vmatprep.subr.bf16.mxu0 %v5390_v13  ;;  %v5517_v24 = vcombine.low %v798_v9, %v802_v10  ;;  %3491 = vmatmul.mubr.bf16.vlgmr.msra.gmra.mxu0 %v6372_v17 }
  0xa9   : > { %v666_v16 = vld [vmem:[%s6263_s14 + $0x9a0] sm:$0xff]  ;;  %3541 = vmatpush1.bf16.msra.mxu0 %v5389_v22  ;;  %3572 = vmatprep.mubr.bf16.mxu0 %v6390_v28 }
  0xaa   : > { %v790_v18 = vld [vmem:[%s6263_s14 + $0xd80] sm:$0xff]  ;;  %v5382_v25 = vcombine.high %v662_v15, %v666_v16  ;;  %3581 = vmatprep.subr.bf16.mxu1 %v5518_v14  ;;  %3532 = vmatmul.mubr.bf16.vlgmr.msra.gmra.mxu1 %v6381_v21  ;;  %v5381_v31 = vcombine.low %v662_v15, %v666_v16 }
  0xab   : > { %v794_v19 = vld [vmem:[%s6263_s14 + $0xda0] sm:$0xff]  ;;  %3582 = vmatpush1.bf16.msra.mxu1 %v5517_v24  ;;  %3613 = vmatprep.mubr.bf16.mxu1 %v6397_v30 }
  0xac   : > { %v5510_v54 = vcombine.high %v790_v18, %v794_v19  ;;  %v654_v26 = vld [vmem:[%s6263_s14 + $0x940] sm:$0xff]  ;;  %3542 = vmatprep.subr.bf16.mxu0 %v5382_v25  ;;  %v5509_v32 = vcombine.low %v790_v18, %v794_v19 }
  0xad   : > { %v658_v27 = vld [vmem:[%s6263_s14 + $0x960] sm:$0xff]  ;;  %3543 = vmatpush1.bf16.msra.mxu0 %v5381_v31 }
  0xae   : > { %v782_v55 = vld [vmem:[%s6263_s14 + $0xd40] sm:$0xff]  ;;  %v5374_v33 = vcombine.high %v654_v26, %v658_v27  ;;  %3583 = vmatprep.subr.bf16.mxu1 %v5510_v54  ;;  %v5373_v39 = vcombine.low %v654_v26, %v658_v27 }
  0xaf   : > { %v786_v29 = vld [vmem:[%s6263_s14 + $0xd60] sm:$0xff]  ;;  %3584 = vmatpush1.bf16.msra.mxu1 %v5509_v32 }
  0xb0   : > { %v5502_v34 = vcombine.high %v782_v55, %v786_v29  ;;  %v646_v35 = vld [vmem:[%s6263_s14 + $0x900] sm:$0xff]  ;;  %3544 = vmatprep.subr.bf16.mxu0 %v5374_v33  ;;  %v5501_v40 = vcombine.low %v782_v55, %v786_v29 }
  0xb1   : > { %v650_v36 = vld [vmem:[%s6263_s14 + $0x920] sm:$0xff]  ;;  %3545 = vmatpush1.bf16.msra.mxu0 %v5373_v39 }
  0xb2   : > { %v774_v37 = vld [vmem:[%s6263_s14 + $0xd00] sm:$0xff]  ;;  %v5366_v41 = vcombine.high %v646_v35, %v650_v36  ;;  %3585 = vmatprep.subr.bf16.mxu1 %v5502_v34  ;;  %v5365_v47 = vcombine.low %v646_v35, %v650_v36 }
  0xb3   : > { %v778_v38 = vld [vmem:[%s6263_s14 + $0xd20] sm:$0xff]  ;;  %3586 = vmatpush1.bf16.msra.mxu1 %v5501_v40 }
  0xb4   : > { %v5494_v42 = vcombine.high %v774_v37, %v778_v38  ;;  %v638_v43 = vld [vmem:[%s6263_s14 + $0x8c0] sm:$0xff]  ;;  %3546 = vmatprep.subr.bf16.mxu0 %v5366_v41  ;;  %v5493_v48 = vcombine.low %v774_v37, %v778_v38 }
  0xb5   : > { %v642_v44 = vld [vmem:[%s6263_s14 + $0x8e0] sm:$0xff]  ;;  %3547 = vmatpush1.bf16.msra.mxu0 %v5365_v47 }
  0xb6   : > { %v766_v45 = vld [vmem:[%s6263_s14 + $0xcc0] sm:$0xff]  ;;  %v5358_v49 = vcombine.high %v638_v43, %v642_v44  ;;  %3587 = vmatprep.subr.bf16.mxu1 %v5494_v42  ;;  %v5357_v57 = vcombine.low %v638_v43, %v642_v44 }
  0xb7   : > { %v770_v46 = vld [vmem:[%s6263_s14 + $0xce0] sm:$0xff]  ;;  %3588 = vmatpush1.bf16.msra.mxu1 %v5493_v48 }
  0xb8   : > { %v5486_v50 = vcombine.high %v766_v45, %v770_v46  ;;  %v630_v51 = vld [vmem:[%s6263_s14 + $0x880] sm:$0xff]  ;;  %3548 = vmatprep.subr.bf16.mxu0 %v5358_v49  ;;  %v5485_v58 = vcombine.low %v766_v45, %v770_v46 }
  0xb9   : > { %v634_v52 = vld [vmem:[%s6263_s14 + $0x8a0] sm:$0xff]  ;;  %3549 = vmatpush1.bf16.msra.mxu0 %v5357_v57 }
  0xba   : > { %v758_v53 = vld [vmem:[%s6263_s14 + $0xc80] sm:$0xff]  ;;  %v5350_v61 = vcombine.high %v630_v51, %v634_v52  ;;  %3589 = vmatprep.subr.bf16.mxu1 %v5486_v50  ;;  %v5349_v3 = vcombine.low %v630_v51, %v634_v52 }
  0xbb   : > { %v762_v56 = vld [vmem:[%s6263_s14 + $0xca0] sm:$0xff]  ;;  %3590 = vmatpush1.bf16.msra.mxu1 %v5485_v58 }
  0xbc   : > { %v5478_v62 = vcombine.high %v758_v53, %v762_v56  ;;  %v622_v63 = vld [vmem:[%s6263_s14 + $0x840] sm:$0xff]  ;;  %3550 = vmatprep.subr.bf16.mxu0 %v5350_v61  ;;  %v5477_v4 = vcombine.low %v758_v53, %v762_v56 }
  0xbd   : > { %v626_v0 = vld [vmem:[%s6263_s14 + $0x860] sm:$0xff]  ;;  %3551 = vmatpush1.bf16.msra.mxu0 %v5349_v3 }
  0xbe   : > { %v750_v1 = vld [vmem:[%s6263_s14 + $0xc40] sm:$0xff]  ;;  %v5342_v5 = vcombine.high %v622_v63, %v626_v0  ;;  %3591 = vmatprep.subr.bf16.mxu1 %v5478_v62  ;;  %v5341_v11 = vcombine.low %v622_v63, %v626_v0 }
  0xbf   : > { %v754_v2 = vld [vmem:[%s6263_s14 + $0xc60] sm:$0xff]  ;;  %3592 = vmatpush1.bf16.msra.mxu1 %v5477_v4 }
  0xc0   : > { %v5470_v6 = vcombine.high %v750_v1, %v754_v2  ;;  %v614_v7 = vld [vmem:[%s6263_s14 + $0x800] sm:$0xff]  ;;  %3552 = vmatprep.subr.bf16.mxu0 %v5342_v5  ;;  %v5469_v12 = vcombine.low %v750_v1, %v754_v2 }
  0xc1   : > { %v618_v8 = vld [vmem:[%s6263_s14 + $0x820] sm:$0xff]  ;;  %3553 = vmatpush1.bf16.msra.mxu0 %v5341_v11 }
  0xc2   : > { %v742_v9 = vld [vmem:[%s6263_s14 + $0xc00] sm:$0xff]  ;;  %v5334_v13 = vcombine.high %v614_v7, %v618_v8  ;;  %3593 = vmatprep.subr.bf16.mxu1 %v5470_v6  ;;  %v5333_v22 = vcombine.low %v614_v7, %v618_v8 }
  0xc3   : > { %v746_v10 = vld [vmem:[%s6263_s14 + $0xc20] sm:$0xff]  ;;  %3594 = vmatpush1.bf16.msra.mxu1 %v5469_v12 }
  0xc4   : > { %v5462_v14 = vcombine.high %v742_v9, %v746_v10  ;;  %v734_v15 = vld [vmem:[%s6263_s14 + $0xbc0] sm:$0xff]  ;;  %3554 = vmatprep.subr.bf16.mxu0 %v5334_v13  ;;  %v5461_v24 = vcombine.low %v742_v9, %v746_v10 }
  0xc5   : > { %v738_v16 = vld [vmem:[%s6263_s14 + $0xbe0] sm:$0xff]  ;;  %3555 = vmatpush1.bf16.msra.mxu0 %v5333_v22 }
  0xc6   : > { %v862_v18 = vld [vmem:[%s6263_s14 + $0xfc0] sm:$0xff]  ;;  %v5454_v25 = vcombine.high %v734_v15, %v738_v16  ;;  %3595 = vmatprep.subr.bf16.mxu1 %v5462_v14  ;;  %v5453_v31 = vcombine.low %v734_v15, %v738_v16 }
  0xc7   : > { %v866_v19 = vld [vmem:[%s6263_s14 + $0xfe0] sm:$0xff]  ;;  %3596 = vmatpush1.bf16.msra.mxu1 %v5461_v24 }
  0xc8   : > { %v5582_v54 = vcombine.high %v862_v18, %v866_v19  ;;  %v726_v26 = vld [vmem:[%s6263_s14 + $0xb80] sm:$0xff]  ;;  %3556 = vmatprep.subr.bf16.mxu0 %v5454_v25  ;;  %v5581_v32 = vcombine.low %v862_v18, %v866_v19 }
  0xc9   : > { %v730_v27 = vld [vmem:[%s6263_s14 + $0xba0] sm:$0xff]  ;;  %3557 = vmatpush2.bf16.msra.mxu0 %v5453_v31 }
  0xca   : > { %v854_v55 = vld [vmem:[%s6263_s14 + $0xf80] sm:$0xff]  ;;  %v5446_v33 = vcombine.high %v726_v26, %v730_v27  ;;  %3597 = vmatprep.subr.bf16.mxu1 %v5582_v54  ;;  %v5445_v39 = vcombine.low %v726_v26, %v730_v27  ;;  %v415_v26 = vld [vmem:[%s6263_s14 + $0x1c8] sm:$0xff] }
  0xcb   : > { %v858_v29 = vld [vmem:[%s6263_s14 + $0xfa0] sm:$0xff]  ;;  %3598 = vmatpush2.bf16.msra.mxu1 %v5581_v32  ;;  %v419_v27 = vld [vmem:[%s6263_s14 + $0x1e8] sm:$0xff] }
  0xcc   : > { %v5574_v34 = vcombine.high %v854_v55, %v858_v29  ;;  %v718_v35 = vld [vmem:[%s6263_s14 + $0xb40] sm:$0xff]  ;;  %3558 = vmatprep.subr.bf16.mxu0 %v5446_v33  ;;  %v5573_v40 = vcombine.low %v854_v55, %v858_v29  ;;  %v543_v55 = vld [vmem:[%s6263_s14 + $0x5c8] sm:$0xff]  ;;  %v5136_v33 = vcombine.high %v415_v26, %v419_v27 }
  0xcd   : > { %v722_v36 = vld [vmem:[%s6263_s14 + $0xb60] sm:$0xff]  ;;  %3559 = vmatpush2.bf16.msra.mxu0 %v5445_v39  ;;  %v547_v29 = vld [vmem:[%s6263_s14 + $0x5e8] sm:$0xff] }
  0xce   : > { %v846_v37 = vld [vmem:[%s6263_s14 + $0xf40] sm:$0xff]  ;;  %v5438_v41 = vcombine.high %v718_v35, %v722_v36  ;;  %3599 = vmatprep.subr.bf16.mxu1 %v5574_v34  ;;  %v5437_v47 = vcombine.low %v718_v35, %v722_v36  ;;  %v5264_v34 = vcombine.high %v543_v55, %v547_v29  ;;  %v407_v35 = vld [vmem:[%s6263_s14 + $0x188] sm:$0xff] }
  0xcf   : > { %v850_v38 = vld [vmem:[%s6263_s14 + $0xf60] sm:$0xff]  ;;  %3600 = vmatpush2.bf16.msra.mxu1 %v5573_v40  ;;  %v411_v36 = vld [vmem:[%s6263_s14 + $0x1a8] sm:$0xff]  ;;  %v6468_v40 = vcombine.low %v6384_v23, %v6384_v23 }
  0xd0   : > { %v5566_v42 = vcombine.high %v846_v37, %v850_v38  ;;  %v710_v43 = vld [vmem:[%s6263_s14 + $0xb00] sm:$0xff]  ;;  %3560 = vmatprep.subr.bf16.mxu0 %v5438_v41  ;;  %v5565_v48 = vcombine.low %v846_v37, %v850_v38  ;;  %v6462_v37 = vcombine.low %v6377_v20, %v6377_v20  ;;  %v535_v38 = vld [vmem:[%s6263_s14 + $0x588] sm:$0xff]  ;;  %v5135_v41 = vcombine.low %v415_v26, %v419_v27 }
  0xd1   : > { %v714_v44 = vld [vmem:[%s6263_s14 + $0xb20] sm:$0xff]  ;;  %3561 = vmatpush2.bf16.msra.mxu0 %v5437_v47  ;;  %v539_v39 = vld [vmem:[%s6263_s14 + $0x5a8] sm:$0xff]  ;;  %v5127_v23 = vcombine.low %v407_v35, %v411_v36 }
  0xd2   : > { %v838_v45 = vld [vmem:[%s6263_s14 + $0xf00] sm:$0xff]  ;;  %v5430_v49 = vcombine.high %v710_v43, %v714_v44  ;;  %3601 = vmatprep.subr.bf16.mxu1 %v5566_v42  ;;  %v5429_v57 = vcombine.low %v710_v43, %v714_v44  ;;  %v5263_v42 = vcombine.low %v543_v55, %v547_v29  ;;  %v5128_v43 = vcombine.high %v407_v35, %v411_v36  ;;  %v403_v20 = vld [vmem:[%s6263_s14 + $0x168] sm:$0xff] }
  0xd3   : > { %v842_v46 = vld [vmem:[%s6263_s14 + $0xf20] sm:$0xff]  ;;  %3602 = vmatpush2.bf16.msra.mxu1 %v5565_v48  ;;  %v5256_v44 = vcombine.high %v535_v38, %v539_v39  ;;  %v531_v47 = vld [vmem:[%s6263_s14 + $0x568] sm:$0xff]  ;;  %v5255_v48 = vcombine.low %v535_v38, %v539_v39 }
  0xd4   : > { %v5558_v50 = vcombine.high %v838_v45, %v842_v46  ;;  %v702_v51 = vld [vmem:[%s6263_s14 + $0xac0] sm:$0xff]  ;;  %3562 = vmatprep.subr.bf16.mxu0 %v5430_v49  ;;  %v5557_v58 = vcombine.low %v838_v45, %v842_v46  ;;  %v399_v45 = vld [vmem:[%s6263_s14 + $0x148] sm:$0xff] }
  0xd5   : > { %v706_v52 = vld [vmem:[%s6263_s14 + $0xae0] sm:$0xff]  ;;  %3563 = vmatpush2.bf16.msra.mxu0 %v5429_v57  ;;  %v527_v46 = vld [vmem:[%s6263_s14 + $0x548] sm:$0xff]  ;;  %v5120_v49 = vcombine.high %v399_v45, %v403_v20  ;;  %v5119_v57 = vcombine.low %v399_v45, %v403_v20 }
  0xd6   : > { %v830_v53 = vld [vmem:[%s6263_s14 + $0xec0] sm:$0xff]  ;;  %v5422_v61 = vcombine.high %v702_v51, %v706_v52  ;;  %3603 = vmatprep.subr.bf16.mxu1 %v5558_v50  ;;  %v5421_v3 = vcombine.low %v702_v51, %v706_v52  ;;  %v5248_v50 = vcombine.high %v527_v46, %v531_v47  ;;  %v391_v51 = vld [vmem:[%s6263_s14 + $0x108] sm:$0xff] }
  0xd7   : > { %v834_v56 = vld [vmem:[%s6263_s14 + $0xee0] sm:$0xff]  ;;  %3604 = vmatpush2.bf16.msra.mxu1 %v5557_v58  ;;  %v395_v52 = vld [vmem:[%s6263_s14 + $0x128] sm:$0xff]  ;;  %v5247_v58 = vcombine.low %v527_v46, %v531_v47 }
  0xd8   : > { %v5550_v62 = vcombine.high %v830_v53, %v834_v56  ;;  %v694_v63 = vld [vmem:[%s6263_s14 + $0xa80] sm:$0xff]  ;;  %3564 = vmatprep.subr.bf16.mxu0 %v5422_v61  ;;  %v5549_v4 = vcombine.low %v830_v53, %v834_v56  ;;  %v519_v53 = vld [vmem:[%s6263_s14 + $0x508] sm:$0xff]  ;;  %v5112_v61 = vcombine.high %v391_v51, %v395_v52 }
  0xd9   : > { %v698_v0 = vld [vmem:[%s6263_s14 + $0xaa0] sm:$0xff]  ;;  %3565 = vmatpush2.bf16.msra.mxu0 %v5421_v3  ;;  %v523_v56 = vld [vmem:[%s6263_s14 + $0x528] sm:$0xff]  ;;  %v5111_v3 = vcombine.low %v391_v51, %v395_v52 }
  0xda   : > { %v822_v1 = vld [vmem:[%s6263_s14 + $0xe80] sm:$0xff]  ;;  %v5414_v5 = vcombine.high %v694_v63, %v698_v0  ;;  %3605 = vmatprep.subr.bf16.mxu1 %v5550_v62  ;;  %v5413_v11 = vcombine.low %v694_v63, %v698_v0  ;;  %v5240_v62 = vcombine.high %v519_v53, %v523_v56  ;;  %v383_v63 = vld [vmem:[%s6263_s14 + $0xc8] sm:$0xff] }
  0xdb   : > { %v826_v2 = vld [vmem:[%s6263_s14 + $0xea0] sm:$0xff]  ;;  %3606 = vmatpush2.bf16.msra.mxu1 %v5549_v4  ;;  %v387_v0 = vld [vmem:[%s6263_s14 + $0xe8] sm:$0xff]  ;;  %v5239_v4 = vcombine.low %v519_v53, %v523_v56 }
  0xdc   : > { %v5542_v6 = vcombine.high %v822_v1, %v826_v2  ;;  %v686_v7 = vld [vmem:[%s6263_s14 + $0xa40] sm:$0xff]  ;;  %3566 = vmatprep.subr.bf16.mxu0 %v5414_v5  ;;  %v5541_v12 = vcombine.low %v822_v1, %v826_v2  ;;  %v511_v1 = vld [vmem:[%s6263_s14 + $0x4c8] sm:$0xff]  ;;  %v5104_v5 = vcombine.high %v383_v63, %v387_v0 }
  0xdd   : > { %v690_v8 = vld [vmem:[%s6263_s14 + $0xa60] sm:$0xff]  ;;  %3567 = vmatpush2.bf16.msra.mxu0 %v5413_v11  ;;  %v515_v2 = vld [vmem:[%s6263_s14 + $0x4e8] sm:$0xff]  ;;  %v5103_v11 = vcombine.low %v383_v63, %v387_v0 }
  0xde   : > { %v814_v9 = vld [vmem:[%s6263_s14 + $0xe40] sm:$0xff]  ;;  %v5406_v13 = vcombine.high %v686_v7, %v690_v8  ;;  %3607 = vmatprep.subr.bf16.mxu1 %v5542_v6  ;;  %v5405_v22 = vcombine.low %v686_v7, %v690_v8  ;;  %v5232_v6 = vcombine.high %v511_v1, %v515_v2  ;;  %v375_v7 = vld [vmem:[%s6263_s14 + $0x88] sm:$0xff] }
  0xdf   : > { %v818_v10 = vld [vmem:[%s6263_s14 + $0xe60] sm:$0xff]  ;;  %3608 = vmatpush2.bf16.msra.mxu1 %v5541_v12  ;;  %v379_v8 = vld [vmem:[%s6263_s14 + $0xa8] sm:$0xff]  ;;  %v5231_v12 = vcombine.low %v511_v1, %v515_v2 }
  0xe0   : > { %v5534_v14 = vcombine.high %v814_v9, %v818_v10  ;;  %v678_v15 = vld [vmem:[%s6263_s14 + $0xa00] sm:$0xff]  ;;  %3568 = vmatprep.subr.bf16.mxu0 %v5406_v13  ;;  %v5533_v24 = vcombine.low %v814_v9, %v818_v10  ;;  %v503_v9 = vld [vmem:[%s6263_s14 + $0x488] sm:$0xff]  ;;  %v5096_v13 = vcombine.high %v375_v7, %v379_v8 }
  0xe1   : > { %v682_v16 = vld [vmem:[%s6263_s14 + $0xa20] sm:$0xff]  ;;  %3569 = vmatpush2.bf16.msra.mxu0 %v5405_v22  ;;  %v507_v10 = vld [vmem:[%s6263_s14 + $0x4a8] sm:$0xff]  ;;  %v5095_v22 = vcombine.low %v375_v7, %v379_v8 }
  0xe2   : > { %v806_v18 = vld [vmem:[%s6263_s14 + $0xe00] sm:$0xff]  ;;  %v5398_v25 = vcombine.high %v678_v15, %v682_v16  ;;  %3609 = vmatprep.subr.bf16.mxu1 %v5534_v14  ;;  %v5397_v31 = vcombine.low %v678_v15, %v682_v16  ;;  %v5224_v14 = vcombine.high %v503_v9, %v507_v10  ;;  %v367_v15 = vld [vmem:[%s6263_s14 + $0x48] sm:$0xff] }
  0xe3   : > { %v810_v19 = vld [vmem:[%s6263_s14 + $0xe20] sm:$0xff]  ;;  %3610 = vmatpush2.bf16.msra.mxu1 %v5533_v24  ;;  %v371_v16 = vld [vmem:[%s6263_s14 + $0x68] sm:$0xff]  ;;  %v5223_v24 = vcombine.low %v503_v9, %v507_v10 }
  0xe4   : > { %v5526_v54 = vcombine.high %v806_v18, %v810_v19  ;;  %3570 = vmatprep.subr.bf16.mxu0 %v5398_v25  ;;  %v5525_v32 = vcombine.low %v806_v18, %v810_v19  ;;  %v495_v18 = vld [vmem:[%s6263_s14 + $0x448] sm:$0xff]  ;;  %v5088_v25 = vcombine.high %v367_v15, %v371_v16 }
  0xe5   : > { %3571 = vmatpush2.bf16.msra.mxu0 %v5397_v31  ;;  %v499_v19 = vld [vmem:[%s6263_s14 + $0x468] sm:$0xff]  ;;  %v5087_v31 = vcombine.low %v367_v15, %v371_v16 }
  0xe6   : > { %3611 = vmatprep.subr.bf16.mxu1 %v5526_v54  ;;  %3622 = vmatprep.subr.bf16.mxu0 %v5136_v33  ;;  %v5216_v54 = vcombine.high %v495_v18, %v499_v19  ;;  %v359_v26 = vld [vmem:[%s6263_s14 + $0x8] sm:$0xff] }
  0xe7   : > { %3612 = vmatpush2.bf16.msra.mxu1 %v5525_v32  ;;  %v363_v27 = vld [vmem:[%s6263_s14 + $0x28] sm:$0xff]  ;;  %v5215_v32 = vcombine.low %v495_v18, %v499_v19 }
  0xe8   : > { %3663 = vmatprep.subr.bf16.mxu1 %v5264_v34  ;;  %3573 = vmatmul.mubr.bf16.vlgmr.msra.gmra.mxu0 %v6462_v37  ;;  %v487_v55 = vld [vmem:[%s6263_s14 + $0x408] sm:$0xff]  ;;  %v5080_v33 = vcombine.high %v359_v26, %v363_v27 }
  0xe9   : > { %3623 = vmatpush1.bf16.msra.mxu0 %v5135_v41  ;;  %3654 = vmatprep.mubr.bf16.mxu0 %v6322_v59  ;;  %v491_v29 = vld [vmem:[%s6263_s14 + $0x428] sm:$0xff]  ;;  %v5079_v41 = vcombine.low %v359_v26, %v363_v27 }
  0xea   : > { %3614 = vmatmul.mubr.bf16.vlgmr.msra.gmra.mxu1 %v6468_v40  ;;  %3624 = vmatprep.subr.bf16.mxu0 %v5128_v43  ;;  %v5208_v34 = vcombine.high %v487_v55, %v491_v29  ;;  %v479_v35 = vld [vmem:[%s6263_s14 + $0x3c8] sm:$0xff] }
  0xeb   : > { %3664 = vmatpush1.bf16.msra.mxu1 %v5263_v42  ;;  %3695 = vmatprep.mubr.bf16.mxu1 %v6326_v60  ;;  %v483_v36 = vld [vmem:[%s6263_s14 + $0x3e8] sm:$0xff]  ;;  %v5207_v42 = vcombine.low %v487_v55, %v491_v29 }
  0xec   : > { %3665 = vmatprep.subr.bf16.mxu1 %v5256_v44  ;;  %v607_v38 = vld [vmem:[%s6263_s14 + $0x7c8] sm:$0xff]  ;;  %v5200_v43 = vcombine.high %v479_v35, %v483_v36 }
  0xed   : > { %3625 = vmatpush1.bf16.msra.mxu0 %v5127_v23  ;;  %v611_v39 = vld [vmem:[%s6263_s14 + $0x7e8] sm:$0xff]  ;;  %v5199_v23 = vcombine.low %v479_v35, %v483_v36 }
  0xee   : > { %3626 = vmatprep.subr.bf16.mxu0 %v5120_v49  ;;  %v5328_v44 = vcombine.high %v607_v38, %v611_v39  ;;  %v471_v45 = vld [vmem:[%s6263_s14 + $0x388] sm:$0xff] }
  0xef   : > { %3666 = vmatpush1.bf16.msra.mxu1 %v5255_v48  ;;  %v475_v20 = vld [vmem:[%s6263_s14 + $0x3a8] sm:$0xff]  ;;  %v5327_v48 = vcombine.low %v607_v38, %v611_v39 }
  0xf0   : > { %3667 = vmatprep.subr.bf16.mxu1 %v5248_v50  ;;  %v599_v46 = vld [vmem:[%s6263_s14 + $0x788] sm:$0xff]  ;;  %v5192_v49 = vcombine.high %v471_v45, %v475_v20 }
  0xf1   : > { %3627 = vmatpush1.bf16.msra.mxu0 %v5119_v57  ;;  %v603_v47 = vld [vmem:[%s6263_s14 + $0x7a8] sm:$0xff]  ;;  %v5191_v57 = vcombine.low %v471_v45, %v475_v20 }
  0xf2   : > { %3628 = vmatprep.subr.bf16.mxu0 %v5112_v61  ;;  %v5320_v50 = vcombine.high %v599_v46, %v603_v47  ;;  %v463_v51 = vld [vmem:[%s6263_s14 + $0x348] sm:$0xff] }
  0xf3   : > { %3668 = vmatpush1.bf16.msra.mxu1 %v5247_v58  ;;  %v467_v52 = vld [vmem:[%s6263_s14 + $0x368] sm:$0xff]  ;;  %v5319_v58 = vcombine.low %v599_v46, %v603_v47 }
  0xf4   : > { %3669 = vmatprep.subr.bf16.mxu1 %v5240_v62  ;;  %v591_v53 = vld [vmem:[%s6263_s14 + $0x748] sm:$0xff]  ;;  %v5184_v61 = vcombine.high %v463_v51, %v467_v52 }
  0xf5   : > { %3629 = vmatpush1.bf16.msra.mxu0 %v5111_v3  ;;  %v595_v56 = vld [vmem:[%s6263_s14 + $0x768] sm:$0xff]  ;;  %v5183_v3 = vcombine.low %v463_v51, %v467_v52 }
  0xf6   : > { %3630 = vmatprep.subr.bf16.mxu0 %v5104_v5  ;;  %v5312_v62 = vcombine.high %v591_v53, %v595_v56  ;;  %v455_v63 = vld [vmem:[%s6263_s14 + $0x308] sm:$0xff] }
  0xf7   : > { %3670 = vmatpush1.bf16.msra.mxu1 %v5239_v4  ;;  %v459_v0 = vld [vmem:[%s6263_s14 + $0x328] sm:$0xff]  ;;  %v5311_v4 = vcombine.low %v591_v53, %v595_v56 }
  0xf8   : > { %3671 = vmatprep.subr.bf16.mxu1 %v5232_v6  ;;  %v583_v1 = vld [vmem:[%s6263_s14 + $0x708] sm:$0xff]  ;;  %v5176_v5 = vcombine.high %v455_v63, %v459_v0 }
  0xf9   : > { %3631 = vmatpush1.bf16.msra.mxu0 %v5103_v11  ;;  %v587_v2 = vld [vmem:[%s6263_s14 + $0x728] sm:$0xff]  ;;  %v5175_v11 = vcombine.low %v455_v63, %v459_v0 }
  0xfa   : > { %3632 = vmatprep.subr.bf16.mxu0 %v5096_v13  ;;  %v5304_v6 = vcombine.high %v583_v1, %v587_v2  ;;  %v447_v7 = vld [vmem:[%s6263_s14 + $0x2c8] sm:$0xff] }
  0xfb   : > { %3672 = vmatpush1.bf16.msra.mxu1 %v5231_v12  ;;  %v451_v8 = vld [vmem:[%s6263_s14 + $0x2e8] sm:$0xff]  ;;  %v5303_v12 = vcombine.low %v583_v1, %v587_v2 }
  0xfc   : > { %3673 = vmatprep.subr.bf16.mxu1 %v5224_v14  ;;  %v575_v9 = vld [vmem:[%s6263_s14 + $0x6c8] sm:$0xff]  ;;  %v5168_v13 = vcombine.high %v447_v7, %v451_v8 }
  0xfd   : > { %3633 = vmatpush1.bf16.msra.mxu0 %v5095_v22  ;;  %v579_v10 = vld [vmem:[%s6263_s14 + $0x6e8] sm:$0xff]  ;;  %v5167_v22 = vcombine.low %v447_v7, %v451_v8 }
  0xfe   : > { %3634 = vmatprep.subr.bf16.mxu0 %v5088_v25  ;;  %v5296_v14 = vcombine.high %v575_v9, %v579_v10  ;;  %v439_v15 = vld [vmem:[%s6263_s14 + $0x288] sm:$0xff] }
  0xff   : > { %3674 = vmatpush1.bf16.msra.mxu1 %v5223_v24  ;;  %v443_v16 = vld [vmem:[%s6263_s14 + $0x2a8] sm:$0xff]  ;;  %v5295_v24 = vcombine.low %v575_v9, %v579_v10 }
 0x100   : > { %3675 = vmatprep.subr.bf16.mxu1 %v5216_v54  ;;  %v567_v18 = vld [vmem:[%s6263_s14 + $0x688] sm:$0xff]  ;;  %v5160_v25 = vcombine.high %v439_v15, %v443_v16 }
 0x101   : > { %3635 = vmatpush1.bf16.msra.mxu0 %v5087_v31  ;;  %v571_v19 = vld [vmem:[%s6263_s14 + $0x6a8] sm:$0xff]  ;;  %v5159_v31 = vcombine.low %v439_v15, %v443_v16 }
 0x102   : > { %3636 = vmatprep.subr.bf16.mxu0 %v5080_v33  ;;  %v5288_v54 = vcombine.high %v567_v18, %v571_v19  ;;  %v431_v26 = vld [vmem:[%s6263_s14 + $0x248] sm:$0xff] }
 0x103   : > { %3676 = vmatpush1.bf16.msra.mxu1 %v5215_v32  ;;  %v435_v27 = vld [vmem:[%s6263_s14 + $0x268] sm:$0xff]  ;;  %v5287_v32 = vcombine.low %v567_v18, %v571_v19 }
 0x104   : > { %3677 = vmatprep.subr.bf16.mxu1 %v5208_v34  ;;  %v559_v55 = vld [vmem:[%s6263_s14 + $0x648] sm:$0xff]  ;;  %v5152_v33 = vcombine.high %v431_v26, %v435_v27 }
 0x105   : > { %3637 = vmatpush1.bf16.msra.mxu0 %v5079_v41  ;;  %v563_v29 = vld [vmem:[%s6263_s14 + $0x668] sm:$0xff]  ;;  %v5151_v41 = vcombine.low %v431_v26, %v435_v27 }
 0x106   : > { %3638 = vmatprep.subr.bf16.mxu0 %v5200_v43  ;;  %v5280_v34 = vcombine.high %v559_v55, %v563_v29  ;;  %v423_v35 = vld [vmem:[%s6263_s14 + $0x208] sm:$0xff] }
 0x107   : > { %3678 = vmatpush1.bf16.msra.mxu1 %v5207_v42  ;;  %v427_v36 = vld [vmem:[%s6263_s14 + $0x228] sm:$0xff]  ;;  %v5279_v42 = vcombine.low %v559_v55, %v563_v29 }
 0x108   : > { %3679 = vmatprep.subr.bf16.mxu1 %v5328_v44  ;;  %v551_v38 = vld [vmem:[%s6263_s14 + $0x608] sm:$0xff]  ;;  %v5144_v43 = vcombine.high %v423_v35, %v427_v36 }
 0x109   : > { %3639 = vmatpush2.bf16.msra.mxu0 %v5199_v23  ;;  %v555_v39 = vld [vmem:[%s6263_s14 + $0x628] sm:$0xff]  ;;  %v5143_v23 = vcombine.low %v423_v35, %v427_v36 }
 0x10a   : > { %3640 = vmatprep.subr.bf16.mxu0 %v5192_v49  ;;  %v5272_v44 = vcombine.high %v551_v38, %v555_v39  ;;  %v671_v45 = vld [vmem:[%s6263_s14 + $0x9c8] sm:$0xff] }
 0x10b   : > { %3680 = vmatpush2.bf16.msra.mxu1 %v5327_v48  ;;  %v675_v20 = vld [vmem:[%s6263_s14 + $0x9e8] sm:$0xff]  ;;  %v5271_v48 = vcombine.low %v551_v38, %v555_v39 }
 0x10c   : > { %3681 = vmatprep.subr.bf16.mxu1 %v5320_v50  ;;  %v799_v46 = vld [vmem:[%s6263_s14 + $0xdc8] sm:$0xff]  ;;  %v5392_v49 = vcombine.high %v671_v45, %v675_v20 }
 0x10d   : > { %3641 = vmatpush2.bf16.msra.mxu0 %v5191_v57  ;;  %v803_v47 = vld [vmem:[%s6263_s14 + $0xde8] sm:$0xff]  ;;  %v5391_v57 = vcombine.low %v671_v45, %v675_v20 }
 0x10e   : > { %3642 = vmatprep.subr.bf16.mxu0 %v5184_v61  ;;  %v5520_v50 = vcombine.high %v799_v46, %v803_v47  ;;  %v663_v51 = vld [vmem:[%s6263_s14 + $0x988] sm:$0xff] }
 0x10f   : > { %3682 = vmatpush2.bf16.msra.mxu1 %v5319_v58  ;;  %v667_v52 = vld [vmem:[%s6263_s14 + $0x9a8] sm:$0xff]  ;;  %v5519_v58 = vcombine.low %v799_v46, %v803_v47 }
 0x110   : > { %3683 = vmatprep.subr.bf16.mxu1 %v5312_v62  ;;  %v791_v53 = vld [vmem:[%s6263_s14 + $0xd88] sm:$0xff]  ;;  %v5384_v61 = vcombine.high %v663_v51, %v667_v52 }
 0x111   : > { %3643 = vmatpush2.bf16.msra.mxu0 %v5183_v3  ;;  %v795_v56 = vld [vmem:[%s6263_s14 + $0xda8] sm:$0xff]  ;;  %v5383_v3 = vcombine.low %v663_v51, %v667_v52 }
 0x112   : > { %3644 = vmatprep.subr.bf16.mxu0 %v5176_v5  ;;  %v5512_v62 = vcombine.high %v791_v53, %v795_v56  ;;  %v655_v63 = vld [vmem:[%s6263_s14 + $0x948] sm:$0xff] }
 0x113   : > { %3684 = vmatpush2.bf16.msra.mxu1 %v5311_v4  ;;  %v659_v0 = vld [vmem:[%s6263_s14 + $0x968] sm:$0xff]  ;;  %v5511_v4 = vcombine.low %v791_v53, %v795_v56 }
 0x114   : > { %3685 = vmatprep.subr.bf16.mxu1 %v5304_v6  ;;  %v783_v1 = vld [vmem:[%s6263_s14 + $0xd48] sm:$0xff]  ;;  %v5376_v5 = vcombine.high %v655_v63, %v659_v0 }
 0x115   : > { %3645 = vmatpush2.bf16.msra.mxu0 %v5175_v11  ;;  %v787_v2 = vld [vmem:[%s6263_s14 + $0xd68] sm:$0xff]  ;;  %v5375_v11 = vcombine.low %v655_v63, %v659_v0 }
 0x116   : > { %3646 = vmatprep.subr.bf16.mxu0 %v5168_v13  ;;  %v5504_v6 = vcombine.high %v783_v1, %v787_v2  ;;  %v647_v7 = vld [vmem:[%s6263_s14 + $0x908] sm:$0xff] }
 0x117   : > { %3686 = vmatpush2.bf16.msra.mxu1 %v5303_v12  ;;  %v651_v8 = vld [vmem:[%s6263_s14 + $0x928] sm:$0xff]  ;;  %v5503_v12 = vcombine.low %v783_v1, %v787_v2 }
 0x118   : > { %3687 = vmatprep.subr.bf16.mxu1 %v5296_v14  ;;  %v775_v9 = vld [vmem:[%s6263_s14 + $0xd08] sm:$0xff]  ;;  %v5368_v13 = vcombine.high %v647_v7, %v651_v8 }
 0x119   : > { %3647 = vmatpush2.bf16.msra.mxu0 %v5167_v22  ;;  %v779_v10 = vld [vmem:[%s6263_s14 + $0xd28] sm:$0xff]  ;;  %v5367_v22 = vcombine.low %v647_v7, %v651_v8 }
 0x11a   : > { %3648 = vmatprep.subr.bf16.mxu0 %v5160_v25  ;;  %v5496_v14 = vcombine.high %v775_v9, %v779_v10  ;;  %v639_v15 = vld [vmem:[%s6263_s14 + $0x8c8] sm:$0xff] }
 0x11b   : > { %3688 = vmatpush2.bf16.msra.mxu1 %v5295_v24  ;;  %v643_v16 = vld [vmem:[%s6263_s14 + $0x8e8] sm:$0xff]  ;;  %v5495_v24 = vcombine.low %v775_v9, %v779_v10 }
 0x11c   : > { %3689 = vmatprep.subr.bf16.mxu1 %v5288_v54  ;;  %v767_v18 = vld [vmem:[%s6263_s14 + $0xcc8] sm:$0xff]  ;;  %v5360_v25 = vcombine.high %v639_v15, %v643_v16 }
 0x11d   : > { %3649 = vmatpush2.bf16.msra.mxu0 %v5159_v31  ;;  %v771_v19 = vld [vmem:[%s6263_s14 + $0xce8] sm:$0xff]  ;;  %v5359_v31 = vcombine.low %v639_v15, %v643_v16 }
 0x11e   : > { %3650 = vmatprep.subr.bf16.mxu0 %v5152_v33  ;;  %v5488_v54 = vcombine.high %v767_v18, %v771_v19  ;;  %v631_v26 = vld [vmem:[%s6263_s14 + $0x888] sm:$0xff] }
 0x11f   : > { %3690 = vmatpush2.bf16.msra.mxu1 %v5287_v32  ;;  %v635_v27 = vld [vmem:[%s6263_s14 + $0x8a8] sm:$0xff]  ;;  %v5487_v32 = vcombine.low %v767_v18, %v771_v19 }
 0x120   : > { %3691 = vmatprep.subr.bf16.mxu1 %v5280_v34  ;;  %v759_v55 = vld [vmem:[%s6263_s14 + $0xc88] sm:$0xff]  ;;  %v5352_v33 = vcombine.high %v631_v26, %v635_v27 }
 0x121   : > { %3651 = vmatpush2.bf16.msra.mxu0 %v5151_v41  ;;  %v763_v29 = vld [vmem:[%s6263_s14 + $0xca8] sm:$0xff]  ;;  %v5351_v41 = vcombine.low %v631_v26, %v635_v27 }
 0x122   : > { %3652 = vmatprep.subr.bf16.mxu0 %v5144_v43  ;;  %v5480_v34 = vcombine.high %v759_v55, %v763_v29  ;;  %v623_v35 = vld [vmem:[%s6263_s14 + $0x848] sm:$0xff] }
 0x123   : > { %3692 = vmatpush2.bf16.msra.mxu1 %v5279_v42  ;;  %v627_v36 = vld [vmem:[%s6263_s14 + $0x868] sm:$0xff]  ;;  %v5479_v42 = vcombine.low %v759_v55, %v763_v29 }
 0x124   : > { %3693 = vmatprep.subr.bf16.mxu1 %v5272_v44  ;;  %v751_v38 = vld [vmem:[%s6263_s14 + $0xc48] sm:$0xff]  ;;  %v5344_v43 = vcombine.high %v623_v35, %v627_v36 }
 0x125   : > { %3653 = vmatpush2.bf16.msra.mxu0 %v5143_v23  ;;  %v755_v39 = vld [vmem:[%s6263_s14 + $0xc68] sm:$0xff]  ;;  %v5343_v23 = vcombine.low %v623_v35, %v627_v36 }
 0x126   : > { %3704 = vmatprep.subr.bf16.mxu0 %v5392_v49  ;;  %v5472_v44 = vcombine.high %v751_v38, %v755_v39  ;;  %v615_v45 = vld [vmem:[%s6263_s14 + $0x808] sm:$0xff] }
 0x127   : > { %3694 = vmatpush2.bf16.msra.mxu1 %v5271_v48  ;;  %v619_v20 = vld [vmem:[%s6263_s14 + $0x828] sm:$0xff]  ;;  %v5471_v48 = vcombine.low %v751_v38, %v755_v39 }
 0x128   : > { %3745 = vmatprep.subr.bf16.mxu1 %v5520_v50  ;;  %3655 = vmatmul.mubr.bf16.vlgmr.msra.gmra.mxu0 %v6372_v17  ;;  %v743_v46 = vld [vmem:[%s6263_s14 + $0xc08] sm:$0xff]  ;;  %v5336_v49 = vcombine.high %v615_v45, %v619_v20 }
 0x129   : > { %3705 = vmatpush1.bf16.msra.mxu0 %v5391_v57  ;;  %3736 = vmatprep.mubr.bf16.mxu0 %v6390_v28  ;;  %v747_v47 = vld [vmem:[%s6263_s14 + $0xc28] sm:$0xff]  ;;  %v5335_v57 = vcombine.low %v615_v45, %v619_v20 }
 0x12a   : > { %3696 = vmatmul.mubr.bf16.vlgmr.msra.gmra.mxu1 %v6381_v21  ;;  %3706 = vmatprep.subr.bf16.mxu0 %v5384_v61  ;;  %v5464_v50 = vcombine.high %v743_v46, %v747_v47  ;;  %v735_v51 = vld [vmem:[%s6263_s14 + $0xbc8] sm:$0xff] }
 0x12b   : > { %3746 = vmatpush1.bf16.msra.mxu1 %v5519_v58  ;;  %3777 = vmatprep.mubr.bf16.mxu1 %v6397_v30  ;;  %v739_v52 = vld [vmem:[%s6263_s14 + $0xbe8] sm:$0xff]  ;;  %v5463_v58 = vcombine.low %v743_v46, %v747_v47 }
 0x12c   : > { %3747 = vmatprep.subr.bf16.mxu1 %v5512_v62  ;;  %v863_v53 = vld [vmem:[%s6263_s14 + $0xfc8] sm:$0xff]  ;;  %v5456_v61 = vcombine.high %v735_v51, %v739_v52 }
 0x12d   : > { %3707 = vmatpush1.bf16.msra.mxu0 %v5383_v3  ;;  %v867_v56 = vld [vmem:[%s6263_s14 + $0xfe8] sm:$0xff]  ;;  %v5455_v3 = vcombine.low %v735_v51, %v739_v52 }
 0x12e   : > { %3708 = vmatprep.subr.bf16.mxu0 %v5376_v5  ;;  %v5584_v62 = vcombine.high %v863_v53, %v867_v56  ;;  %v727_v63 = vld [vmem:[%s6263_s14 + $0xb88] sm:$0xff] }
 0x12f   : > { %3748 = vmatpush1.bf16.msra.mxu1 %v5511_v4  ;;  %v731_v0 = vld [vmem:[%s6263_s14 + $0xba8] sm:$0xff]  ;;  %v5583_v4 = vcombine.low %v863_v53, %v867_v56 }
 0x130   : > { %3749 = vmatprep.subr.bf16.mxu1 %v5504_v6  ;;  %v855_v1 = vld [vmem:[%s6263_s14 + $0xf88] sm:$0xff]  ;;  %v5448_v5 = vcombine.high %v727_v63, %v731_v0 }
 0x131   : > { %3709 = vmatpush1.bf16.msra.mxu0 %v5375_v11  ;;  %v859_v2 = vld [vmem:[%s6263_s14 + $0xfa8] sm:$0xff]  ;;  %v5447_v11 = vcombine.low %v727_v63, %v731_v0  ;;  %v416_v63 = vld [vmem:[%s6263_s14 + $0x1d0] sm:$0xff] }
 0x132   : > { %3710 = vmatprep.subr.bf16.mxu0 %v5368_v13  ;;  %v5576_v6 = vcombine.high %v855_v1, %v859_v2  ;;  %v719_v7 = vld [vmem:[%s6263_s14 + $0xb48] sm:$0xff]  ;;  %v420_v0 = vld [vmem:[%s6263_s14 + $0x1f0] sm:$0xff] }
 0x133   : > { %3750 = vmatpush1.bf16.msra.mxu1 %v5503_v12  ;;  %v723_v8 = vld [vmem:[%s6263_s14 + $0xb68] sm:$0xff]  ;;  %v5575_v12 = vcombine.low %v855_v1, %v859_v2  ;;  %v544_v1 = vld [vmem:[%s6263_s14 + $0x5d0] sm:$0xff] }
 0x134   : > { %3751 = vmatprep.subr.bf16.mxu1 %v5496_v14  ;;  %v847_v9 = vld [vmem:[%s6263_s14 + $0xf48] sm:$0xff]  ;;  %v5440_v13 = vcombine.high %v719_v7, %v723_v8  ;;  %v548_v2 = vld [vmem:[%s6263_s14 + $0x5f0] sm:$0xff] }
 0x135   : > { %3711 = vmatpush1.bf16.msra.mxu0 %v5367_v22  ;;  %v851_v10 = vld [vmem:[%s6263_s14 + $0xf68] sm:$0xff]  ;;  %v5439_v22 = vcombine.low %v719_v7, %v723_v8  ;;  %v408_v7 = vld [vmem:[%s6263_s14 + $0x190] sm:$0xff] }
 0x136   : > { %3712 = vmatprep.subr.bf16.mxu0 %v5360_v25  ;;  %v5568_v14 = vcombine.high %v847_v9, %v851_v10  ;;  %v711_v15 = vld [vmem:[%s6263_s14 + $0xb08] sm:$0xff]  ;;  %v412_v8 = vld [vmem:[%s6263_s14 + $0x1b0] sm:$0xff] }
 0x137   : > { %3752 = vmatpush1.bf16.msra.mxu1 %v5495_v24  ;;  %v715_v16 = vld [vmem:[%s6263_s14 + $0xb28] sm:$0xff]  ;;  %v5567_v24 = vcombine.low %v847_v9, %v851_v10  ;;  %v536_v9 = vld [vmem:[%s6263_s14 + $0x590] sm:$0xff] }
 0x138   : > { %3753 = vmatprep.subr.bf16.mxu1 %v5488_v54  ;;  %v839_v18 = vld [vmem:[%s6263_s14 + $0xf08] sm:$0xff]  ;;  %v5432_v25 = vcombine.high %v711_v15, %v715_v16  ;;  %v540_v10 = vld [vmem:[%s6263_s14 + $0x5b0] sm:$0xff] }
 0x139   : > { %3713 = vmatpush1.bf16.msra.mxu0 %v5359_v31  ;;  %v843_v19 = vld [vmem:[%s6263_s14 + $0xf28] sm:$0xff]  ;;  %v5431_v31 = vcombine.low %v711_v15, %v715_v16  ;;  %v400_v15 = vld [vmem:[%s6263_s14 + $0x150] sm:$0xff] }
 0x13a   : > { %3714 = vmatprep.subr.bf16.mxu0 %v5352_v33  ;;  %v5560_v54 = vcombine.high %v839_v18, %v843_v19  ;;  %v703_v26 = vld [vmem:[%s6263_s14 + $0xac8] sm:$0xff]  ;;  %v404_v16 = vld [vmem:[%s6263_s14 + $0x170] sm:$0xff] }
 0x13b   : > { %3754 = vmatpush1.bf16.msra.mxu1 %v5487_v32  ;;  %v707_v27 = vld [vmem:[%s6263_s14 + $0xae8] sm:$0xff]  ;;  %v5559_v32 = vcombine.low %v839_v18, %v843_v19  ;;  %v528_v19 = vld [vmem:[%s6263_s14 + $0x550] sm:$0xff] }
 0x13c   : > { %3755 = vmatprep.subr.bf16.mxu1 %v5480_v34  ;;  %v831_v55 = vld [vmem:[%s6263_s14 + $0xec8] sm:$0xff]  ;;  %v5424_v33 = vcombine.high %v703_v26, %v707_v27 }
 0x13d   : > { %3715 = vmatpush1.bf16.msra.mxu0 %v5351_v41  ;;  %v835_v29 = vld [vmem:[%s6263_s14 + $0xee8] sm:$0xff]  ;;  %v5423_v41 = vcombine.low %v703_v26, %v707_v27  ;;  %v5257_v26 = vcombine.low %v536_v9, %v540_v10  ;;  %v5122_v27 = vcombine.high %v400_v15, %v404_v16 }
 0x13e   : > { %3716 = vmatprep.subr.bf16.mxu0 %v5344_v43  ;;  %v5552_v34 = vcombine.high %v831_v55, %v835_v29  ;;  %v695_v35 = vld [vmem:[%s6263_s14 + $0xa88] sm:$0xff] }
 0x13f   : > { %3756 = vmatpush1.bf16.msra.mxu1 %v5479_v42  ;;  %v699_v36 = vld [vmem:[%s6263_s14 + $0xaa8] sm:$0xff]  ;;  %v5551_v42 = vcombine.low %v831_v55, %v835_v29 }
 0x140   : > { %3757 = vmatprep.subr.bf16.mxu1 %v5472_v44  ;;  %v823_v38 = vld [vmem:[%s6263_s14 + $0xe88] sm:$0xff]  ;;  %v5416_v43 = vcombine.high %v695_v35, %v699_v36 }
 0x141   : > { %3717 = vmatpush1.bf16.msra.mxu0 %v5343_v23  ;;  %v827_v39 = vld [vmem:[%s6263_s14 + $0xea8] sm:$0xff]  ;;  %v5415_v23 = vcombine.low %v695_v35, %v699_v36  ;;  %v524_v35 = vld [vmem:[%s6263_s14 + $0x530] sm:$0xff] }
 0x142   : > { %3718 = vmatprep.subr.bf16.mxu0 %v5336_v49  ;;  %v5544_v44 = vcombine.high %v823_v38, %v827_v39  ;;  %v687_v45 = vld [vmem:[%s6263_s14 + $0xa48] sm:$0xff] }
 0x143   : > { %3758 = vmatpush1.bf16.msra.mxu1 %v5471_v48  ;;  %v691_v20 = vld [vmem:[%s6263_s14 + $0xa68] sm:$0xff]  ;;  %v5543_v48 = vcombine.low %v823_v38, %v827_v39  ;;  %v5121_v38 = vcombine.low %v400_v15, %v404_v16  ;;  %v480_v15 = vld [vmem:[%s6263_s14 + $0x3d0] sm:$0xff] }
 0x144   : > { %3759 = vmatprep.subr.bf16.mxu1 %v5464_v50  ;;  %v815_v46 = vld [vmem:[%s6263_s14 + $0xe48] sm:$0xff]  ;;  %v5408_v49 = vcombine.high %v687_v45, %v691_v20  ;;  %v484_v16 = vld [vmem:[%s6263_s14 + $0x3f0] sm:$0xff] }
 0x145   : > { %3719 = vmatpush1.bf16.msra.mxu0 %v5335_v57  ;;  %v819_v47 = vld [vmem:[%s6263_s14 + $0xe68] sm:$0xff]  ;;  %v5407_v57 = vcombine.low %v687_v45, %v691_v20  ;;  %v384_v45 = vld [vmem:[%s6263_s14 + $0xd0] sm:$0xff] }
 0x146   : > { %3720 = vmatprep.subr.bf16.mxu0 %v5456_v61  ;;  %v5536_v50 = vcombine.high %v815_v46, %v819_v47  ;;  %v679_v51 = vld [vmem:[%s6263_s14 + $0xa08] sm:$0xff]  ;;  %v388_v20 = vld [vmem:[%s6263_s14 + $0xf0] sm:$0xff] }
 0x147   : > { %3760 = vmatpush1.bf16.msra.mxu1 %v5463_v58  ;;  %v683_v52 = vld [vmem:[%s6263_s14 + $0xa28] sm:$0xff]  ;;  %v5535_v58 = vcombine.low %v815_v46, %v819_v47  ;;  %v512_v46 = vld [vmem:[%s6263_s14 + $0x4d0] sm:$0xff] }
 0x148   : > { %3761 = vmatprep.subr.bf16.mxu1 %v5584_v62  ;;  %v807_v53 = vld [vmem:[%s6263_s14 + $0xe08] sm:$0xff]  ;;  %v5400_v61 = vcombine.high %v679_v51, %v683_v52  ;;  %v516_v47 = vld [vmem:[%s6263_s14 + $0x4f0] sm:$0xff] }
 0x149   : > { %3721 = vmatpush2.bf16.msra.mxu0 %v5455_v3  ;;  %v811_v56 = vld [vmem:[%s6263_s14 + $0xe28] sm:$0xff]  ;;  %v5399_v3 = vcombine.low %v679_v51, %v683_v52  ;;  %v376_v51 = vld [vmem:[%s6263_s14 + $0x90] sm:$0xff] }
 0x14a   : > { %3722 = vmatprep.subr.bf16.mxu0 %v5448_v5  ;;  %v5528_v62 = vcombine.high %v807_v53, %v811_v56  ;;  %v5138_v5 = vcombine.high %v416_v63, %v420_v0  ;;  %v380_v52 = vld [vmem:[%s6263_s14 + $0xb0] sm:$0xff] }
 0x14b   : > { %3762 = vmatpush2.bf16.msra.mxu1 %v5583_v4  ;;  %v5527_v4 = vcombine.low %v807_v53, %v811_v56  ;;  %v504_v53 = vld [vmem:[%s6263_s14 + $0x490] sm:$0xff] }
 0x14c   : > { %3763 = vmatprep.subr.bf16.mxu1 %v5576_v6  ;;  %v5266_v6 = vcombine.high %v544_v1, %v548_v2  ;;  %v508_v56 = vld [vmem:[%s6263_s14 + $0x4b0] sm:$0xff] }
 0x14d   : > { %3723 = vmatpush2.bf16.msra.mxu0 %v5447_v11  ;;  %v5137_v11 = vcombine.low %v416_v63, %v420_v0  ;;  %v368_v63 = vld [vmem:[%s6263_s14 + $0x50] sm:$0xff] }
 0x14e   : > { %3724 = vmatprep.subr.bf16.mxu0 %v5440_v13  ;;  %v5130_v13 = vcombine.high %v408_v7, %v412_v8  ;;  %v372_v0 = vld [vmem:[%s6263_s14 + $0x70] sm:$0xff] }
 0x14f   : > { %3764 = vmatpush2.bf16.msra.mxu1 %v5575_v12  ;;  %v5265_v12 = vcombine.low %v544_v1, %v548_v2  ;;  %v496_v1 = vld [vmem:[%s6263_s14 + $0x450] sm:$0xff] }
 0x150   : > { %3765 = vmatprep.subr.bf16.mxu1 %v5568_v14  ;;  %v5258_v14 = vcombine.high %v536_v9, %v540_v10  ;;  %v500_v2 = vld [vmem:[%s6263_s14 + $0x470] sm:$0xff] }
 0x151   : > { %3725 = vmatpush2.bf16.msra.mxu0 %v5439_v22  ;;  %v532_v22 = vld [vmem:[%s6263_s14 + $0x570] sm:$0xff] }
 0x152   : > { %3726 = vmatprep.subr.bf16.mxu0 %v5432_v25  ;;  %v5129_v25 = vcombine.low %v408_v7, %v412_v8  ;;  %v5250_v29 = vcombine.high %v528_v19, %v532_v22  ;;  %v360_v7 = vld [vmem:[%s6263_s14 + $0x10] sm:$0xff] }
 0x153   : > { %3766 = vmatpush2.bf16.msra.mxu1 %v5567_v24  ;;  %v364_v8 = vld [vmem:[%s6263_s14 + $0x30] sm:$0xff] }
 0x154   : > { %3767 = vmatprep.subr.bf16.mxu1 %v5560_v54  ;;  %v488_v9 = vld [vmem:[%s6263_s14 + $0x410] sm:$0xff] }
 0x155   : > { %3727 = vmatpush2.bf16.msra.mxu0 %v5431_v31  ;;  %v392_v31 = vld [vmem:[%s6263_s14 + $0x110] sm:$0xff] }
 0x156   : > { %3728 = vmatprep.subr.bf16.mxu0 %v5424_v33  ;;  %v492_v10 = vld [vmem:[%s6263_s14 + $0x430] sm:$0xff] }
 0x157   : > { %3768 = vmatpush2.bf16.msra.mxu1 %v5559_v32  ;;  %v396_v32 = vld [vmem:[%s6263_s14 + $0x130] sm:$0xff] }
 0x158   : > { %3769 = vmatprep.subr.bf16.mxu1 %v5552_v34  ;;  %v520_v34 = vld [vmem:[%s6263_s14 + $0x510] sm:$0xff] }
 0x159   : > { %3729 = vmatpush2.bf16.msra.mxu0 %v5423_v41  ;;  %v5249_v41 = vcombine.low %v528_v19, %v532_v22  ;;  %v608_v19 = vld [vmem:[%s6263_s14 + $0x7d0] sm:$0xff] }
 0x15a   : > { %3730 = vmatprep.subr.bf16.mxu0 %v5416_v43  ;;  %v612_v22 = vld [vmem:[%s6263_s14 + $0x7f0] sm:$0xff] }
 0x15b   : > { %3770 = vmatpush2.bf16.msra.mxu1 %v5551_v42  ;;  %v5114_v42 = vcombine.high %v392_v31, %v396_v32 }
 0x15c   : > { %3771 = vmatprep.subr.bf16.mxu1 %v5544_v44  ;;  %v5242_v44 = vcombine.high %v520_v34, %v524_v35 }
 0x15d   : > { %3731 = vmatpush2.bf16.msra.mxu0 %v5415_v23  ;;  %v5113_v23 = vcombine.low %v392_v31, %v396_v32  ;;  %v472_v31 = vld [vmem:[%s6263_s14 + $0x390] sm:$0xff] }
 0x15e   : > { %3732 = vmatprep.subr.bf16.mxu0 %v5408_v49  ;;  %v5106_v49 = vcombine.high %v384_v45, %v388_v20  ;;  %v476_v32 = vld [vmem:[%s6263_s14 + $0x3b0] sm:$0xff] }
 0x15f   : > { %3772 = vmatpush2.bf16.msra.mxu1 %v5543_v48  ;;  %v5241_v48 = vcombine.low %v520_v34, %v524_v35  ;;  %v604_v34 = vld [vmem:[%s6263_s14 + $0x7b0] sm:$0xff]  ;;  %v5201_v35 = vcombine.low %v480_v15, %v484_v16 }
 0x160   : > { %3773 = vmatprep.subr.bf16.mxu1 %v5536_v50  ;;  %v5234_v50 = vcombine.high %v512_v46, %v516_v47 }
 0x161   : > { %3733 = vmatpush2.bf16.msra.mxu0 %v5407_v57  ;;  %v5105_v57 = vcombine.low %v384_v45, %v388_v20  ;;  %v5193_v45 = vcombine.low %v472_v31, %v476_v32 }
 0x162   : > { %3734 = vmatprep.subr.bf16.mxu0 %v5400_v61  ;;  %v5098_v61 = vcombine.high %v376_v51, %v380_v52 }
 0x163   : > { %3774 = vmatpush2.bf16.msra.mxu1 %v5535_v58  ;;  %v5233_v58 = vcombine.low %v512_v46, %v516_v47 }
 0x164   : > { %3775 = vmatprep.subr.bf16.mxu1 %v5528_v62  ;;  %v5226_v62 = vcombine.high %v504_v53, %v508_v56 }
 0x165   : > { %3735 = vmatpush2.bf16.msra.mxu0 %v5399_v3  ;;  %v5097_v3 = vcombine.low %v376_v51, %v380_v52 }
 0x166   : > { %3786 = vmatprep.subr.bf16.mxu0 %v5138_v5  ;;  %v5090_v5 = vcombine.high %v368_v63, %v372_v0 }
 0x167   : > { %3776 = vmatpush2.bf16.msra.mxu1 %v5527_v4  ;;  %v5225_v4 = vcombine.low %v504_v53, %v508_v56 }
 0x168   : > { %3827 = vmatprep.subr.bf16.mxu1 %v5266_v6  ;;  %v6608_v18 = vpop.f32.mrf.mxu0  ;;  %3737 = vmatmul.mubr.bf16.vlgmr.msra.gmra.mxu0 %v6462_v37  ;;  %v5218_v6 = vcombine.high %v496_v1, %v500_v2 }
 0x169   : > { %3787 = vmatpush1.bf16.msra.mxu0 %v5137_v11  ;;  %3818 = vmatprep.mubr.bf16.mxu0 %v6322_v59  ;;  %v5089_v11 = vcombine.low %v368_v63, %v372_v0 }
 0x16a   : > { %v6613_v24 = vpop.f32.mrf.mxu1  ;;  %3778 = vmatmul.mubr.bf16.vlgmr.msra.gmra.mxu1 %v6468_v40  ;;  %v6616_v54 = vpop.f32.mrf.mxu0  ;;  %3788 = vmatprep.subr.bf16.mxu0 %v5130_v13  ;;  %v5082_v13 = vcombine.high %v360_v7, %v364_v8 }
 0x16b   : > { %3828 = vmatpush1.bf16.msra.mxu1 %v5265_v12  ;;  %3859 = vmatprep.mubr.bf16.mxu1 %v6326_v60  ;;  %v5217_v12 = vcombine.low %v496_v1, %v500_v2 }
 0x16c   : > { %v6618_v55 = vpop.f32.mrf.mxu1  ;;  %3829 = vmatprep.subr.bf16.mxu1 %v5258_v14  ;;  %v3496_v33 = vpop.f32.mrf.mxu0  ;;  %v5210_v14 = vcombine.high %v488_v9, %v492_v10 }
 0x16d   : > { %3789 = vmatpush1.bf16.msra.mxu0 %v5129_v25  ;;  %v5081_v25 = vcombine.low %v360_v7, %v364_v8  ;;  %v600_v33 = vld [vmem:[%s6263_s14 + $0x790] sm:$0xff] }
 0x16e   : > { %v3537_v36 = vpop.f32.mrf.mxu1  ;;  %v3497_v39 = vpop.f32.mrf.mxu0  ;;  %3790 = vmatprep.subr.bf16.mxu0 %v5122_v27  ;;  %v5202_v27 = vcombine.high %v480_v15, %v484_v16  ;;  %v5321_v20 = vcombine.low %v600_v33, %v604_v34 }
 0x16f   : > { %3830 = vmatpush1.bf16.msra.mxu1 %v5257_v26  ;;  %v5209_v26 = vcombine.low %v488_v9, %v492_v10  ;;  %v5329_v36 = vcombine.low %v608_v19, %v612_v22  ;;  %v5322_v39 = vcombine.high %v600_v33, %v604_v34 }
 0x170   : > { %v3538_v43 = vpop.f32.mrf.mxu1  ;;  %3831 = vmatprep.subr.bf16.mxu1 %v5250_v29  ;;  %v5330_v29 = vcombine.high %v608_v19, %v612_v22 }
 0x171   : > { %3791 = vmatpush1.bf16.msra.mxu0 %v5121_v38  ;;  %v5194_v38 = vcombine.high %v472_v31, %v476_v32  ;;  %v592_v43 = vld [vmem:[%s6263_s14 + $0x750] sm:$0xff] }
 0x172   : > { %3792 = vmatprep.subr.bf16.mxu0 %v5114_v42  ;;  %v468_v42 = vld [vmem:[%s6263_s14 + $0x370] sm:$0xff] }
 0x173   : > { %3832 = vmatpush1.bf16.msra.mxu1 %v5249_v41  ;;  %v464_v41 = vld [vmem:[%s6263_s14 + $0x350] sm:$0xff] }
 0x174   : > { %3833 = vmatprep.subr.bf16.mxu1 %v5242_v44  ;;  %v596_v44 = vld [vmem:[%s6263_s14 + $0x770] sm:$0xff]  ;;  %v5186_v46 = vcombine.high %v464_v41, %v468_v42  ;;  %v5185_v51 = vcombine.low %v464_v41, %v468_v42 }
 0x175   : > { %3793 = vmatpush1.bf16.msra.mxu0 %v5113_v23  ;;  %v5314_v47 = vcombine.high %v592_v43, %v596_v44  ;;  %v456_v23 = vld [vmem:[%s6263_s14 + $0x310] sm:$0xff]  ;;  %v5313_v52 = vcombine.low %v592_v43, %v596_v44 }
 0x176   : > { %3794 = vmatprep.subr.bf16.mxu0 %v5106_v49  ;;  %v584_v49 = vld [vmem:[%s6263_s14 + $0x710] sm:$0xff] }
 0x177   : > { %3834 = vmatpush1.bf16.msra.mxu1 %v5241_v48  ;;  %v460_v48 = vld [vmem:[%s6263_s14 + $0x330] sm:$0xff] }
 0x178   : > { %3835 = vmatprep.subr.bf16.mxu1 %v5234_v50  ;;  %v588_v50 = vld [vmem:[%s6263_s14 + $0x730] sm:$0xff]  ;;  %v5178_v53 = vcombine.high %v456_v23, %v460_v48  ;;  %v5177_v63 = vcombine.low %v456_v23, %v460_v48 }
 0x179   : > { %3795 = vmatpush1.bf16.msra.mxu0 %v5105_v57  ;;  %v5306_v56 = vcombine.high %v584_v49, %v588_v50  ;;  %v448_v57 = vld [vmem:[%s6263_s14 + $0x2d0] sm:$0xff]  ;;  %v5305_v0 = vcombine.low %v584_v49, %v588_v50  ;;  %v3534_v50 = vadd.f32 %v6613_v24, %v6608_v18 }
 0x17a   : > { %3796 = vmatprep.subr.bf16.mxu0 %v5098_v61  ;;  %v576_v61 = vld [vmem:[%s6263_s14 + $0x6d0] sm:$0xff] }
 0x17b   : > { %3836 = vmatpush1.bf16.msra.mxu1 %v5233_v58  ;;  %v452_v58 = vld [vmem:[%s6263_s14 + $0x2f0] sm:$0xff] }
 0x17c   : > { %3837 = vmatprep.subr.bf16.mxu1 %v5226_v62  ;;  %v580_v62 = vld [vmem:[%s6263_s14 + $0x6f0] sm:$0xff]  ;;  %v5170_v1 = vcombine.high %v448_v57, %v452_v58  ;;  %v5169_v7 = vcombine.low %v448_v57, %v452_v58 }
 0x17d   : > { %3797 = vmatpush1.bf16.msra.mxu0 %v5097_v3  ;;  %v5298_v2 = vcombine.high %v576_v61, %v580_v62  ;;  %v440_v3 = vld [vmem:[%s6263_s14 + $0x290] sm:$0xff]  ;;  %v5297_v8 = vcombine.low %v576_v61, %v580_v62  ;;  %v3536_v61 = vadd.f32 %v6618_v55, %v6616_v54 }
 0x17e   : > { %3798 = vmatprep.subr.bf16.mxu0 %v5090_v5  ;;  %v568_v5 = vld [vmem:[%s6263_s14 + $0x690] sm:$0xff] }
 0x17f   : > { %3838 = vmatpush1.bf16.msra.mxu1 %v5225_v4  ;;  %v444_v4 = vld [vmem:[%s6263_s14 + $0x2b0] sm:$0xff] }
 0x180   : > { %3839 = vmatprep.subr.bf16.mxu1 %v5218_v6  ;;  %v572_v6 = vld [vmem:[%s6263_s14 + $0x6b0] sm:$0xff]  ;;  %v5162_v9 = vcombine.high %v440_v3, %v444_v4  ;;  %v5161_v15 = vcombine.low %v440_v3, %v444_v4 }
 0x181   : > { %3799 = vmatpush1.bf16.msra.mxu0 %v5089_v11  ;;  %v5290_v10 = vcombine.high %v568_v5, %v572_v6  ;;  %v432_v11 = vld [vmem:[%s6263_s14 + $0x250] sm:$0xff]  ;;  %v5289_v16 = vcombine.low %v568_v5, %v572_v6 }
 0x182   : > { %3800 = vmatprep.subr.bf16.mxu0 %v5082_v13  ;;  %v560_v13 = vld [vmem:[%s6263_s14 + $0x650] sm:$0xff] }
 0x183   : > { %3840 = vmatpush1.bf16.msra.mxu1 %v5217_v12  ;;  %v436_v12 = vld [vmem:[%s6263_s14 + $0x270] sm:$0xff] }
 0x184   : > { %3841 = vmatprep.subr.bf16.mxu1 %v5210_v14  ;;  %v564_v14 = vld [vmem:[%s6263_s14 + $0x670] sm:$0xff]  ;;  %v5154_v19 = vcombine.high %v432_v11, %v436_v12  ;;  %v5153_v31 = vcombine.low %v432_v11, %v436_v12 }
 0x185   : > { %3801 = vmatpush1.bf16.msra.mxu0 %v5081_v25  ;;  %v5282_v22 = vcombine.high %v560_v13, %v564_v14  ;;  %v424_v25 = vld [vmem:[%s6263_s14 + $0x210] sm:$0xff]  ;;  %v5281_v32 = vcombine.low %v560_v13, %v564_v14 }
 0x186   : > { %3802 = vmatprep.subr.bf16.mxu0 %v5202_v27  ;;  %v552_v27 = vld [vmem:[%s6263_s14 + $0x610] sm:$0xff] }
 0x187   : > { %3842 = vmatpush1.bf16.msra.mxu1 %v5209_v26  ;;  %v428_v26 = vld [vmem:[%s6263_s14 + $0x230] sm:$0xff] }
 0x188   : > { %3843 = vmatprep.subr.bf16.mxu1 %v5330_v29  ;;  %v556_v29 = vld [vmem:[%s6263_s14 + $0x630] sm:$0xff]  ;;  %v5146_v33 = vcombine.high %v424_v25, %v428_v26  ;;  %v5145_v41 = vcombine.low %v424_v25, %v428_v26 }
 0x189   : > { %3803 = vmatpush2.bf16.msra.mxu0 %v5201_v35  ;;  %v5274_v34 = vcombine.high %v552_v27, %v556_v29  ;;  %v672_v35 = vld [vmem:[%s6263_s14 + $0x9d0] sm:$0xff]  ;;  %v5273_v42 = vcombine.low %v552_v27, %v556_v29 }
 0x18a   : > { %3804 = vmatprep.subr.bf16.mxu0 %v5194_v38  ;;  %v800_v38 = vld [vmem:[%s6263_s14 + $0xdd0] sm:$0xff] }
 0x18b   : > { %3844 = vmatpush2.bf16.msra.mxu1 %v5329_v36  ;;  %v676_v36 = vld [vmem:[%s6263_s14 + $0x9f0] sm:$0xff] }
 0x18c   : > { %3845 = vmatprep.subr.bf16.mxu1 %v5322_v39  ;;  %v804_v39 = vld [vmem:[%s6263_s14 + $0xdf0] sm:$0xff]  ;;  %v5394_v43 = vcombine.high %v672_v35, %v676_v36  ;;  %v5393_v23 = vcombine.low %v672_v35, %v676_v36 }
 0x18d   : > { %3805 = vmatpush2.bf16.msra.mxu0 %v5193_v45  ;;  %v5522_v44 = vcombine.high %v800_v38, %v804_v39  ;;  %v664_v45 = vld [vmem:[%s6263_s14 + $0x990] sm:$0xff]  ;;  %v5521_v48 = vcombine.low %v800_v38, %v804_v39 }
 0x18e   : > { %3806 = vmatprep.subr.bf16.mxu0 %v5186_v46  ;;  %v792_v46 = vld [vmem:[%s6263_s14 + $0xd90] sm:$0xff] }
 0x18f   : > { %3846 = vmatpush2.bf16.msra.mxu1 %v5321_v20  ;;  %v668_v20 = vld [vmem:[%s6263_s14 + $0x9b0] sm:$0xff] }
 0x190   : > { %3847 = vmatprep.subr.bf16.mxu1 %v5314_v47  ;;  %v796_v47 = vld [vmem:[%s6263_s14 + $0xdb0] sm:$0xff]  ;;  %v5386_v49 = vcombine.high %v664_v45, %v668_v20  ;;  %v5385_v18 = vcombine.low %v664_v45, %v668_v20 }
 0x191   : > { %3807 = vmatpush2.bf16.msra.mxu0 %v5185_v51  ;;  %v5514_v51 = vcombine.high %v792_v46, %v796_v47  ;;  %v784_v57 = vld [vmem:[%s6263_s14 + $0xd50] sm:$0xff] }
 0x192   : > { %3808 = vmatprep.subr.bf16.mxu0 %v5178_v53  ;;  %v660_v53 = vld [vmem:[%s6263_s14 + $0x970] sm:$0xff] }
 0x193   : > { %3848 = vmatpush2.bf16.msra.mxu1 %v5313_v52  ;;  %v656_v52 = vld [vmem:[%s6263_s14 + $0x950] sm:$0xff] }
 0x194   : > { %3849 = vmatprep.subr.bf16.mxu1 %v5306_v56  ;;  %v788_v58 = vld [vmem:[%s6263_s14 + $0xd70] sm:$0xff]  ;;  %v5377_v14 = vcombine.low %v656_v52, %v660_v53 }
 0x195   : > { %3809 = vmatpush2.bf16.msra.mxu0 %v5177_v63  ;;  %v346_v24 = vld [vmem:[#allocation2 + $0x30] sm:$0xff]  ;;  %v5506_v54 = vcombine.high %v784_v57, %v788_v58 }
 0x196   : > { %3810 = vmatprep.subr.bf16.mxu0 %v5170_v1  ;;  %v5513_v1 = vcombine.low %v792_v46, %v796_v47  ;;  %v648_v55 = vld [vmem:[%s6263_s14 + $0x910] sm:$0xff] }
 0x197   : > { %3850 = vmatpush2.bf16.msra.mxu1 %v5305_v0  ;;  %v652_v6 = vld [vmem:[%s6263_s14 + $0x930] sm:$0xff] }
 0x198   : > { %3851 = vmatprep.subr.bf16.mxu1 %v5298_v2  ;;  %v5378_v2 = vcombine.high %v656_v52, %v660_v53  ;;  %v640_v27 = vld [vmem:[%s6263_s14 + $0x8d0] sm:$0xff] }
 0x199   : > { %3811 = vmatpush2.bf16.msra.mxu0 %v5169_v7  ;;  %v347_v7 = vld [vmem:[#allocation2] sm:$0xff]  ;;  %v644_v29 = vld [vmem:[%s6263_s14 + $0x8f0] sm:$0xff] }
 0x19a   : > { %3812 = vmatprep.subr.bf16.mxu0 %v5162_v9  ;;  %v776_v9 = vld [vmem:[%s6263_s14 + $0xd10] sm:$0xff]  ;;  %v5362_v35 = vcombine.high %v640_v27, %v644_v29 }
 0x19b   : > { %3852 = vmatpush2.bf16.msra.mxu1 %v5297_v8  ;;  %v632_v38 = vld [vmem:[%s6263_s14 + $0x890] sm:$0xff] }
 0x19c   : > { %3853 = vmatprep.subr.bf16.mxu1 %v5290_v10  ;;  %v780_v10 = vld [vmem:[%s6263_s14 + $0xd30] sm:$0xff] }
 0x19d   : > { %3813 = vmatpush2.bf16.msra.mxu0 %v5161_v15  ;;  %v5498_v26 = vcombine.high %v776_v9, %v780_v10  ;;  %v636_v39 = vld [vmem:[%s6263_s14 + $0x8b0] sm:$0xff] }
 0x19e   : > { %3814 = vmatprep.subr.bf16.mxu0 %v5154_v19  ;;  %v5370_v19 = vcombine.high %v648_v55, %v652_v6  ;;  %v5354_v45 = vcombine.high %v632_v38, %v636_v39  ;;  %v624_v46 = vld [vmem:[%s6263_s14 + $0x850] sm:$0xff] }
 0x19f   : > { %3854 = vmatpush2.bf16.msra.mxu1 %v5289_v16  ;;  %v5505_v16 = vcombine.low %v784_v57, %v788_v58  ;;  %v628_v47 = vld [vmem:[%s6263_s14 + $0x870] sm:$0xff] }
 0x1a0   : > { %3855 = vmatprep.subr.bf16.mxu1 %v5282_v22  ;;  %v616_v53 = vld [vmem:[%s6263_s14 + $0x810] sm:$0xff] }
 0x1a1   : > { %3815 = vmatpush2.bf16.msra.mxu0 %v5153_v31  ;;  %v768_v31 = vld [vmem:[%s6263_s14 + $0xcd0] sm:$0xff] }
 0x1a2   : > { %3816 = vmatprep.subr.bf16.mxu0 %v5146_v33  ;;  %v5369_v33 = vcombine.low %v648_v55, %v652_v6  ;;  %v744_v57 = vld [vmem:[%s6263_s14 + $0xc10] sm:$0xff] }
 0x1a3   : > { %3856 = vmatpush2.bf16.msra.mxu1 %v5281_v32  ;;  %v772_v32 = vld [vmem:[%s6263_s14 + $0xcf0] sm:$0xff] }
 0x1a4   : > { %3857 = vmatprep.subr.bf16.mxu1 %v5274_v34  ;;  %v5497_v34 = vcombine.low %v776_v9, %v780_v10  ;;  %v5490_v36 = vcombine.high %v768_v31, %v772_v32  ;;  %v748_v58 = vld [vmem:[%s6263_s14 + $0xc30] sm:$0xff] }
 0x1a5   : > { %3817 = vmatpush2.bf16.msra.mxu0 %v5145_v41  ;;  %v760_v41 = vld [vmem:[%s6263_s14 + $0xc90] sm:$0xff] }
 0x1a6   : > { %3868 = vmatprep.subr.bf16.mxu0 %v5394_v43  ;;  %v5361_v43 = vcombine.low %v640_v27, %v644_v29  ;;  %v728_v55 = vld [vmem:[%s6263_s14 + $0xb90] sm:$0xff] }
 0x1a7   : > { %3858 = vmatpush2.bf16.msra.mxu1 %v5273_v42  ;;  %v764_v42 = vld [vmem:[%s6263_s14 + $0xcb0] sm:$0xff] }
 0x1a8   : > { %3909 = vmatprep.subr.bf16.mxu1 %v5522_v44  ;;  %v3574_v56 = vpop.f32.mrf.mxu0  ;;  %3819 = vmatmul.mubr.bf16.vlgmr.msra.gmra.mxu0 %v6372_v17  ;;  %v5489_v44 = vcombine.low %v768_v31, %v772_v32  ;;  %v5482_v20 = vcombine.high %v760_v41, %v764_v42  ;;  %v732_v6 = vld [vmem:[%s6263_s14 + $0xbb0] sm:$0xff] }
 0x1a9   : > { %v3575_v62 = vadd.f32 %v3574_v56, %v3534_v50  ;;  %3869 = vmatpush1.bf16.msra.mxu0 %v5393_v23  ;;  %3900 = vmatprep.mubr.bf16.mxu0 %v6390_v28  ;;  %v752_v23 = vld [vmem:[%s6263_s14 + $0xc50] sm:$0xff]  ;;  %v5481_v50 = vcombine.low %v760_v41, %v764_v42 }
 0x1aa   : > { %v3615_v63 = vpop.f32.mrf.mxu1  ;;  %3860 = vmatmul.mubr.bf16.vlgmr.msra.gmra.mxu1 %v6381_v21  ;;  %v3576_v0 = vpop.f32.mrf.mxu0  ;;  %3870 = vmatprep.subr.bf16.mxu0 %v5386_v49  ;;  %v5353_v49 = vcombine.low %v632_v38, %v636_v39  ;;  %v620_v56 = vld [vmem:[%s6263_s14 + $0x830] sm:$0xff] }
 0x1ab   : > { %3910 = vmatpush1.bf16.msra.mxu1 %v5521_v48  ;;  %v3616_v3 = vadd.f32 %v3615_v63, %v3575_v62  ;;  %v3577_v4 = vadd.f32 %v3576_v0, %v3536_v61  ;;  %3941 = vmatprep.mubr.bf16.mxu1 %v6397_v30  ;;  %v756_v48 = vld [vmem:[%s6263_s14 + $0xc70] sm:$0xff]  ;;  %v5345_v61 = vcombine.low %v624_v46, %v628_v47 }
 0x1ac   : > { %v3617_v5 = vpop.f32.mrf.mxu1  ;;  %3911 = vmatprep.subr.bf16.mxu1 %v5514_v51  ;;  %v3578_v8 = vpop.f32.mrf.mxu0  ;;  %v5346_v51 = vcombine.high %v624_v46, %v628_v47  ;;  %v5474_v52 = vcombine.high %v752_v23, %v756_v48  ;;  %v5473_v62 = vcombine.low %v752_v23, %v756_v48  ;;  %v5338_v63 = vcombine.high %v616_v53, %v620_v56  ;;  %v740_v0 = vld [vmem:[%s6263_s14 + $0xbf0] sm:$0xff] }
 0x1ad   : > { %v4114_v11 = vadd.f32 %v3616_v3, %v346_v24  ;;  %v3618_v12 = vadd.f32 %v3617_v5, %v3577_v4  ;;  %3871 = vmatpush1.bf16.msra.mxu0 %v5385_v18  ;;  %v5466_v18 = vcombine.high %v744_v57, %v748_v58  ;;  %v736_v24 = vld [vmem:[%s6263_s14 + $0xbd0] sm:$0xff]  ;;  %v5337_v3 = vcombine.low %v616_v53, %v620_v56 }
 0x1ae   : > { %v3619_v13 = vpop.f32.mrf.mxu1  ;;  %v3579_v15 = vpop.f32.mrf.mxu0  ;;  %3872 = vmatprep.subr.bf16.mxu0 %v5378_v2  ;;  %v868_v2 = vld [vmem:[%s6263_s14 + $0xff0] sm:$0xff]  ;;  %v5465_v4 = vcombine.low %v744_v57, %v748_v58  ;;  %v5458_v5 = vcombine.high %v736_v24, %v740_v0  ;;  %v5457_v9 = vcombine.low %v736_v24, %v740_v0 }
 0x1af   : > { %3912 = vmatpush1.bf16.msra.mxu1 %v5513_v1  ;;  %4122 = vst [vmem:[#allocation2 + $0x30] sm:$0xff] %v4114_v11  ;;  %v4115_v22 = vadd.f32 %v3618_v12, %v347_v7  ;;  %v864_v1 = vld [vmem:[%s6263_s14 + $0xfd0] sm:$0xff]  ;;  %v5450_v11 = vcombine.high %v728_v55, %v732_v6 }
 0x1b0   : > { %v3620_v25 = vpop.f32.mrf.mxu1  ;;  %3913 = vmatprep.subr.bf16.mxu1 %v5506_v54  ;;  %v5586_v54 = vcombine.high %v864_v1, %v868_v2  ;;  %v856_v7 = vld [vmem:[%s6263_s14 + $0xf90] sm:$0xff]  ;;  %v5585_v10 = vcombine.low %v864_v1, %v868_v2 }
 0x1b1   : > { %4123 = vst [vmem:[#allocation2] sm:$0xff] %v4115_v22  ;;  %3873 = vmatpush1.bf16.msra.mxu0 %v5377_v14  ;;  %v860_v8 = vld [vmem:[%s6263_s14 + $0xfb0] sm:$0xff] }
 0x1b2   : > { %3874 = vmatprep.subr.bf16.mxu0 %v5370_v19  ;;  %v5578_v12 = vcombine.high %v856_v7, %v860_v8  ;;  %v720_v13 = vld [vmem:[%s6263_s14 + $0xb50] sm:$0xff]  ;;  %v5449_v19 = vcombine.low %v728_v55, %v732_v6  ;;  %v5577_v22 = vcombine.low %v856_v7, %v860_v8  ;;  %v417_v55 = vld [vmem:[%s6263_s14 + $0x1d8] sm:$0xff] }
 0x1b3   : > { %3914 = vmatpush1.bf16.msra.mxu1 %v5505_v16  ;;  %v724_v14 = vld [vmem:[%s6263_s14 + $0xb70] sm:$0xff]  ;;  %v421_v6 = vld [vmem:[%s6263_s14 + $0x1f8] sm:$0xff] }
 0x1b4   : > { %3915 = vmatprep.subr.bf16.mxu1 %v5498_v26  ;;  %v848_v15 = vld [vmem:[%s6263_s14 + $0xf50] sm:$0xff]  ;;  %v5442_v25 = vcombine.high %v720_v13, %v724_v14  ;;  %v545_v7 = vld [vmem:[%s6263_s14 + $0x5d8] sm:$0xff] }
 0x1b5   : > { %3875 = vmatpush1.bf16.msra.mxu0 %v5369_v33  ;;  %v852_v16 = vld [vmem:[%s6263_s14 + $0xf70] sm:$0xff]  ;;  %v5441_v33 = vcombine.low %v720_v13, %v724_v14  ;;  %v549_v8 = vld [vmem:[%s6263_s14 + $0x5f8] sm:$0xff] }
 0x1b6   : > { %3876 = vmatprep.subr.bf16.mxu0 %v5362_v35  ;;  %v5570_v26 = vcombine.high %v848_v15, %v852_v16  ;;  %v712_v27 = vld [vmem:[%s6263_s14 + $0xb10] sm:$0xff]  ;;  %v409_v13 = vld [vmem:[%s6263_s14 + $0x198] sm:$0xff] }
 0x1b7   : > { %3916 = vmatpush1.bf16.msra.mxu1 %v5497_v34  ;;  %v716_v29 = vld [vmem:[%s6263_s14 + $0xb30] sm:$0xff]  ;;  %v5569_v34 = vcombine.low %v848_v15, %v852_v16  ;;  %v413_v14 = vld [vmem:[%s6263_s14 + $0x1b8] sm:$0xff] }
 0x1b8   : > { %3917 = vmatprep.subr.bf16.mxu1 %v5490_v36  ;;  %v840_v31 = vld [vmem:[%s6263_s14 + $0xf10] sm:$0xff]  ;;  %v5434_v35 = vcombine.high %v712_v27, %v716_v29  ;;  %v537_v15 = vld [vmem:[%s6263_s14 + $0x598] sm:$0xff] }
 0x1b9   : > { %3877 = vmatpush1.bf16.msra.mxu0 %v5361_v43  ;;  %v844_v32 = vld [vmem:[%s6263_s14 + $0xf30] sm:$0xff]  ;;  %v5433_v43 = vcombine.low %v712_v27, %v716_v29  ;;  %v541_v16 = vld [vmem:[%s6263_s14 + $0x5b8] sm:$0xff] }
 0x1ba   : > { %3878 = vmatprep.subr.bf16.mxu0 %v5354_v45  ;;  %v5562_v36 = vcombine.high %v840_v31, %v844_v32  ;;  %v704_v38 = vld [vmem:[%s6263_s14 + $0xad0] sm:$0xff]  ;;  %v401_v27 = vld [vmem:[%s6263_s14 + $0x158] sm:$0xff] }
 0x1bb   : > { %3918 = vmatpush1.bf16.msra.mxu1 %v5489_v44  ;;  %v708_v39 = vld [vmem:[%s6263_s14 + $0xaf0] sm:$0xff]  ;;  %v5561_v44 = vcombine.low %v840_v31, %v844_v32  ;;  %v405_v29 = vld [vmem:[%s6263_s14 + $0x178] sm:$0xff] }
 0x1bc   : > { %3919 = vmatprep.subr.bf16.mxu1 %v5482_v20  ;;  %v832_v41 = vld [vmem:[%s6263_s14 + $0xed0] sm:$0xff]  ;;  %v5426_v45 = vcombine.high %v704_v38, %v708_v39  ;;  %v529_v32 = vld [vmem:[%s6263_s14 + $0x558] sm:$0xff] }
 0x1bd   : > { %3879 = vmatpush1.bf16.msra.mxu0 %v5353_v49  ;;  %v836_v42 = vld [vmem:[%s6263_s14 + $0xef0] sm:$0xff]  ;;  %v5425_v49 = vcombine.low %v704_v38, %v708_v39  ;;  %v5259_v38 = vcombine.low %v537_v15, %v541_v16  ;;  %v5124_v39 = vcombine.high %v401_v27, %v405_v29 }
 0x1be   : > { %3880 = vmatprep.subr.bf16.mxu0 %v5346_v51  ;;  %v5554_v20 = vcombine.high %v832_v41, %v836_v42  ;;  %v696_v46 = vld [vmem:[%s6263_s14 + $0xa90] sm:$0xff] }
 0x1bf   : > { %3920 = vmatpush1.bf16.msra.mxu1 %v5481_v50  ;;  %v700_v47 = vld [vmem:[%s6263_s14 + $0xab0] sm:$0xff]  ;;  %v5553_v50 = vcombine.low %v832_v41, %v836_v42 }
 0x1c0   : > { %3921 = vmatprep.subr.bf16.mxu1 %v5474_v52  ;;  %v824_v23 = vld [vmem:[%s6263_s14 + $0xe90] sm:$0xff]  ;;  %v5418_v51 = vcombine.high %v696_v46, %v700_v47 }
 0x1c1   : > { %3881 = vmatpush1.bf16.msra.mxu0 %v5345_v61  ;;  %v828_v48 = vld [vmem:[%s6263_s14 + $0xeb0] sm:$0xff]  ;;  %v5417_v61 = vcombine.low %v696_v46, %v700_v47  ;;  %v525_v46 = vld [vmem:[%s6263_s14 + $0x538] sm:$0xff] }
 0x1c2   : > { %3882 = vmatprep.subr.bf16.mxu0 %v5338_v63  ;;  %v5546_v52 = vcombine.high %v824_v23, %v828_v48  ;;  %v688_v53 = vld [vmem:[%s6263_s14 + $0xa50] sm:$0xff] }
 0x1c3   : > { %3922 = vmatpush1.bf16.msra.mxu1 %v5473_v62  ;;  %v692_v56 = vld [vmem:[%s6263_s14 + $0xa70] sm:$0xff]  ;;  %v5545_v62 = vcombine.low %v824_v23, %v828_v48  ;;  %v5123_v23 = vcombine.low %v401_v27, %v405_v29  ;;  %v609_v27 = vld [vmem:[%s6263_s14 + $0x7d8] sm:$0xff] }
 0x1c4   : > { %3923 = vmatprep.subr.bf16.mxu1 %v5466_v18  ;;  %v816_v57 = vld [vmem:[%s6263_s14 + $0xe50] sm:$0xff]  ;;  %v5410_v63 = vcombine.high %v688_v53, %v692_v56  ;;  %v613_v29 = vld [vmem:[%s6263_s14 + $0x7f8] sm:$0xff] }
 0x1c5   : > { %3883 = vmatpush1.bf16.msra.mxu0 %v5337_v3  ;;  %v820_v58 = vld [vmem:[%s6263_s14 + $0xe70] sm:$0xff]  ;;  %v5409_v3 = vcombine.low %v688_v53, %v692_v56  ;;  %v389_v53 = vld [vmem:[%s6263_s14 + $0xf8] sm:$0xff] }
 0x1c6   : > { %3884 = vmatprep.subr.bf16.mxu0 %v5458_v5  ;;  %v5538_v18 = vcombine.high %v816_v57, %v820_v58  ;;  %v680_v24 = vld [vmem:[%s6263_s14 + $0xa10] sm:$0xff]  ;;  %v513_v56 = vld [vmem:[%s6263_s14 + $0x4d8] sm:$0xff] }
 0x1c7   : > { %3924 = vmatpush1.bf16.msra.mxu1 %v5465_v4  ;;  %v684_v0 = vld [vmem:[%s6263_s14 + $0xa30] sm:$0xff]  ;;  %v5537_v4 = vcombine.low %v816_v57, %v820_v58  ;;  %v517_v57 = vld [vmem:[%s6263_s14 + $0x4f8] sm:$0xff] }
 0x1c8   : > { %3925 = vmatprep.subr.bf16.mxu1 %v5586_v54  ;;  %v808_v1 = vld [vmem:[%s6263_s14 + $0xe10] sm:$0xff]  ;;  %v5402_v5 = vcombine.high %v680_v24, %v684_v0 }
 0x1c9   : > { %3885 = vmatpush2.bf16.msra.mxu0 %v5457_v9  ;;  %v812_v2 = vld [vmem:[%s6263_s14 + $0xe30] sm:$0xff]  ;;  %v5401_v9 = vcombine.low %v680_v24, %v684_v0  ;;  %v505_v24 = vld [vmem:[%s6263_s14 + $0x498] sm:$0xff] }
 0x1ca   : > { %3886 = vmatprep.subr.bf16.mxu0 %v5450_v11  ;;  %v5530_v54 = vcombine.high %v808_v1, %v812_v2  ;;  %v5140_v11 = vcombine.high %v417_v55, %v421_v6  ;;  %v509_v0 = vld [vmem:[%s6263_s14 + $0x4b8] sm:$0xff] }
 0x1cb   : > { %3926 = vmatpush2.bf16.msra.mxu1 %v5585_v10  ;;  %v5529_v10 = vcombine.low %v808_v1, %v812_v2  ;;  %v5235_v2 = vcombine.low %v513_v56, %v517_v57 }
 0x1cc   : > { %3927 = vmatprep.subr.bf16.mxu1 %v5578_v12  ;;  %v5268_v12 = vcombine.high %v545_v7, %v549_v8 }
 0x1cd   : > { %3887 = vmatpush2.bf16.msra.mxu0 %v5449_v19  ;;  %v5139_v19 = vcombine.low %v417_v55, %v421_v6  ;;  %v497_v55 = vld [vmem:[%s6263_s14 + $0x458] sm:$0xff] }
 0x1ce   : > { %3888 = vmatprep.subr.bf16.mxu0 %v5442_v25  ;;  %v5132_v25 = vcombine.high %v409_v13, %v413_v14  ;;  %v501_v6 = vld [vmem:[%s6263_s14 + $0x478] sm:$0xff] }
 0x1cf   : > { %3928 = vmatpush2.bf16.msra.mxu1 %v5577_v22  ;;  %v5267_v22 = vcombine.low %v545_v7, %v549_v8  ;;  %v5227_v8 = vcombine.low %v505_v24, %v509_v0 }
 0x1d0   : > { %3929 = vmatprep.subr.bf16.mxu1 %v5570_v26  ;;  %v5260_v26 = vcombine.high %v537_v15, %v541_v16  ;;  %v5219_v16 = vcombine.low %v497_v55, %v501_v6 }
 0x1d1   : > { %3889 = vmatpush2.bf16.msra.mxu0 %v5441_v33  ;;  %v533_v33 = vld [vmem:[%s6263_s14 + $0x578] sm:$0xff] }
 0x1d2   : > { %3890 = vmatprep.subr.bf16.mxu0 %v5434_v35  ;;  %v5131_v35 = vcombine.low %v409_v13, %v413_v14  ;;  %v5252_v42 = vcombine.high %v529_v32, %v533_v33  ;;  %v489_v13 = vld [vmem:[%s6263_s14 + $0x418] sm:$0xff] }
 0x1d3   : > { %3930 = vmatpush2.bf16.msra.mxu1 %v5569_v34  ;;  %v493_v14 = vld [vmem:[%s6263_s14 + $0x438] sm:$0xff] }
 0x1d4   : > { %3931 = vmatprep.subr.bf16.mxu1 %v5562_v36 }
 0x1d5   : > { %3891 = vmatpush2.bf16.msra.mxu0 %v5433_v43  ;;  %v393_v43 = vld [vmem:[%s6263_s14 + $0x118] sm:$0xff] }
 0x1d6   : > { %3892 = vmatprep.subr.bf16.mxu0 %v5426_v45 }
 0x1d7   : > { %3932 = vmatpush2.bf16.msra.mxu1 %v5561_v44  ;;  %v397_v44 = vld [vmem:[%s6263_s14 + $0x138] sm:$0xff] }
 0x1d8   : > { %3933 = vmatprep.subr.bf16.mxu1 %v5554_v20  ;;  %v521_v20 = vld [vmem:[%s6263_s14 + $0x518] sm:$0xff] }
 0x1d9   : > { %3893 = vmatpush2.bf16.msra.mxu0 %v5425_v49  ;;  %v5251_v49 = vcombine.low %v529_v32, %v533_v33  ;;  %v5243_v58 = vcombine.low %v521_v20, %v525_v46  ;;  %v5211_v33 = vcombine.low %v489_v13, %v493_v14 }
 0x1da   : > { %3894 = vmatprep.subr.bf16.mxu0 %v5418_v51 }
 0x1db   : > { %3934 = vmatpush2.bf16.msra.mxu1 %v5553_v50  ;;  %v5116_v50 = vcombine.high %v393_v43, %v397_v44 }
 0x1dc   : > { %3935 = vmatprep.subr.bf16.mxu1 %v5546_v52  ;;  %v385_v52 = vld [vmem:[%s6263_s14 + $0xd8] sm:$0xff] }
 0x1dd   : > { %3895 = vmatpush2.bf16.msra.mxu0 %v5417_v61  ;;  %v5108_v61 = vcombine.high %v385_v52, %v389_v53  ;;  %v5107_v1 = vcombine.low %v385_v52, %v389_v53 }
 0x1de   : > { %3896 = vmatprep.subr.bf16.mxu0 %v5410_v63  ;;  %v377_v63 = vld [vmem:[%s6263_s14 + $0x98] sm:$0xff] }
 0x1df   : > { %3936 = vmatpush2.bf16.msra.mxu1 %v5545_v62  ;;  %v5236_v62 = vcombine.high %v513_v56, %v517_v57  ;;  %v457_v56 = vld [vmem:[%s6263_s14 + $0x318] sm:$0xff] }
 0x1e0   : > { %3937 = vmatprep.subr.bf16.mxu1 %v5538_v18  ;;  %v381_v18 = vld [vmem:[%s6263_s14 + $0xb8] sm:$0xff] }
 0x1e1   : > { %3897 = vmatpush2.bf16.msra.mxu0 %v5409_v3  ;;  %v5100_v3 = vcombine.high %v377_v63, %v381_v18  ;;  %v5099_v7 = vcombine.low %v377_v63, %v381_v18  ;;  %v461_v57 = vld [vmem:[%s6263_s14 + $0x338] sm:$0xff] }
 0x1e2   : > { %3898 = vmatprep.subr.bf16.mxu0 %v5402_v5  ;;  %v369_v5 = vld [vmem:[%s6263_s14 + $0x58] sm:$0xff]  ;;  %v5180_v63 = vcombine.high %v457_v56, %v461_v57 }
 0x1e3   : > { %3938 = vmatpush2.bf16.msra.mxu1 %v5537_v4  ;;  %v5228_v4 = vcombine.high %v505_v24, %v509_v0  ;;  %v449_v24 = vld [vmem:[%s6263_s14 + $0x2d8] sm:$0xff] }
 0x1e4   : > { %3939 = vmatprep.subr.bf16.mxu1 %v5530_v54  ;;  %v373_v54 = vld [vmem:[%s6263_s14 + $0x78] sm:$0xff] }
 0x1e5   : > { %3899 = vmatpush2.bf16.msra.mxu0 %v5401_v9  ;;  %v5092_v9 = vcombine.high %v369_v5, %v373_v54  ;;  %v5091_v15 = vcombine.low %v369_v5, %v373_v54  ;;  %v453_v0 = vld [vmem:[%s6263_s14 + $0x2f8] sm:$0xff] }
 0x1e6   : > { %3950 = vmatprep.subr.bf16.mxu0 %v5140_v11  ;;  %v361_v11 = vld [vmem:[%s6263_s14 + $0x18] sm:$0xff]  ;;  %v5172_v5 = vcombine.high %v449_v24, %v453_v0 }
 0x1e7   : > { %3940 = vmatpush2.bf16.msra.mxu1 %v5529_v10  ;;  %v5220_v10 = vcombine.high %v497_v55, %v501_v6  ;;  %v441_v55 = vld [vmem:[%s6263_s14 + $0x298] sm:$0xff] }
 0x1e8   : > { %3991 = vmatprep.subr.bf16.mxu1 %v5268_v12  ;;  %v6756_v31 = vpop.f32.mrf.mxu0  ;;  %3901 = vmatmul.mubr.bf16.vlgmr.msra.gmra.mxu0 %v6462_v37  ;;  %v365_v12 = vld [vmem:[%s6263_s14 + $0x38] sm:$0xff] }
 0x1e9   : > { %3951 = vmatpush1.bf16.msra.mxu0 %v5139_v19  ;;  %3982 = vmatprep.mubr.bf16.mxu0 %v6322_v59  ;;  %v5244_v59 = vcombine.high %v521_v20, %v525_v46  ;;  %v5084_v19 = vcombine.high %v361_v11, %v365_v12  ;;  %v5083_v32 = vcombine.low %v361_v11, %v365_v12  ;;  %v445_v6 = vld [vmem:[%s6263_s14 + $0x2b8] sm:$0xff] }
 0x1ea   : > { %v6761_v34 = vpop.f32.mrf.mxu1  ;;  %3942 = vmatmul.mubr.bf16.vlgmr.msra.gmra.mxu1 %v6468_v40  ;;  %v6764_v36 = vpop.f32.mrf.mxu0  ;;  %3952 = vmatprep.subr.bf16.mxu0 %v5132_v25  ;;  %v481_v25 = vld [vmem:[%s6263_s14 + $0x3d8] sm:$0xff]  ;;  %v5331_v20 = vcombine.low %v609_v27, %v613_v29  ;;  %v5164_v11 = vcombine.high %v441_v55, %v445_v6 }
 0x1eb   : > { %3992 = vmatpush1.bf16.msra.mxu1 %v5267_v22  ;;  %4023 = vmatprep.mubr.bf16.mxu1 %v6326_v60  ;;  %v5115_v60 = vcombine.low %v393_v43, %v397_v44  ;;  %v5212_v22 = vcombine.high %v489_v13, %v493_v14  ;;  %v601_v43 = vld [vmem:[%s6263_s14 + $0x798] sm:$0xff] }
 0x1ec   : > { %v6766_v41 = vpop.f32.mrf.mxu1  ;;  %3993 = vmatprep.subr.bf16.mxu1 %v5260_v26  ;;  %v3660_v45 = vpop.f32.mrf.mxu0  ;;  %v485_v26 = vld [vmem:[%s6263_s14 + $0x3f8] sm:$0xff] }
 0x1ed   : > { %3953 = vmatpush1.bf16.msra.mxu0 %v5131_v35  ;;  %v5204_v35 = vcombine.high %v481_v25, %v485_v26  ;;  %v605_v44 = vld [vmem:[%s6263_s14 + $0x7b8] sm:$0xff]  ;;  %v5203_v45 = vcombine.low %v481_v25, %v485_v26 }
 0x1ee   : > { %v3701_v47 = vpop.f32.mrf.mxu1  ;;  %v3661_v48 = vpop.f32.mrf.mxu0  ;;  %3954 = vmatprep.subr.bf16.mxu0 %v5124_v39  ;;  %v473_v39 = vld [vmem:[%s6263_s14 + $0x398] sm:$0xff] }
 0x1ef   : > { %3994 = vmatpush1.bf16.msra.mxu1 %v5259_v38  ;;  %v5332_v38 = vcombine.high %v609_v27, %v613_v29  ;;  %v5324_v47 = vcombine.high %v601_v43, %v605_v44  ;;  %v469_v48 = vld [vmem:[%s6263_s14 + $0x378] sm:$0xff] }
 0x1f0   : > { %v3702_v51 = vpop.f32.mrf.mxu1  ;;  %3995 = vmatprep.subr.bf16.mxu1 %v5252_v42  ;;  %v477_v42 = vld [vmem:[%s6263_s14 + $0x3b8] sm:$0xff] }
 0x1f1   : > { %3955 = vmatpush1.bf16.msra.mxu0 %v5123_v23  ;;  %v5196_v46 = vcombine.high %v473_v39, %v477_v42  ;;  %v465_v23 = vld [vmem:[%s6263_s14 + $0x358] sm:$0xff]  ;;  %v5195_v51 = vcombine.low %v473_v39, %v477_v42 }
 0x1f2   : > { %3956 = vmatprep.subr.bf16.mxu0 %v5116_v50  ;;  %v597_v50 = vld [vmem:[%s6263_s14 + $0x778] sm:$0xff]  ;;  %v5188_v52 = vcombine.high %v465_v23, %v469_v48 }
 0x1f3   : > { %3996 = vmatpush1.bf16.msra.mxu1 %v5251_v49  ;;  %v593_v49 = vld [vmem:[%s6263_s14 + $0x758] sm:$0xff] }
 0x1f4   : > { %3997 = vmatprep.subr.bf16.mxu1 %v5244_v59  ;;  %v5323_v59 = vcombine.low %v601_v43, %v605_v44  ;;  %v5316_v53 = vcombine.high %v593_v49, %v597_v50  ;;  %v433_v13 = vld [vmem:[%s6263_s14 + $0x258] sm:$0xff] }
 0x1f5   : > { %3957 = vmatpush1.bf16.msra.mxu0 %v5115_v60  ;;  %v585_v60 = vld [vmem:[%s6263_s14 + $0x718] sm:$0xff] }
 0x1f6   : > { %3958 = vmatprep.subr.bf16.mxu0 %v5108_v61  ;;  %v5187_v61 = vcombine.low %v465_v23, %v469_v48  ;;  %v437_v14 = vld [vmem:[%s6263_s14 + $0x278] sm:$0xff] }
 0x1f7   : > { %3998 = vmatpush1.bf16.msra.mxu1 %v5243_v58  ;;  %v589_v58 = vld [vmem:[%s6263_s14 + $0x738] sm:$0xff]  ;;  %v5156_v25 = vcombine.high %v433_v13, %v437_v14 }
 0x1f8   : > { %3999 = vmatprep.subr.bf16.mxu1 %v5236_v62  ;;  %v5315_v62 = vcombine.low %v593_v49, %v597_v50  ;;  %v5308_v18 = vcombine.high %v585_v60, %v589_v58  ;;  %v425_v27 = vld [vmem:[%s6263_s14 + $0x218] sm:$0xff] }
 0x1f9   : > { %3959 = vmatpush1.bf16.msra.mxu0 %v5107_v1  ;;  %v577_v1 = vld [vmem:[%s6263_s14 + $0x6d8] sm:$0xff] }
 0x1fa   : > { %3960 = vmatprep.subr.bf16.mxu0 %v5100_v3  ;;  %v5179_v3 = vcombine.low %v457_v56, %v461_v57  ;;  %v429_v29 = vld [vmem:[%s6263_s14 + $0x238] sm:$0xff]  ;;  %v3698_v57 = vadd.f32 %v6761_v34, %v6756_v31 }
 0x1fb   : > { %4000 = vmatpush1.bf16.msra.mxu1 %v5235_v2  ;;  %v581_v2 = vld [vmem:[%s6263_s14 + $0x6f8] sm:$0xff]  ;;  %v5148_v39 = vcombine.high %v425_v27, %v429_v29 }
 0x1fc   : > { %4001 = vmatprep.subr.bf16.mxu1 %v5228_v4  ;;  %v5307_v4 = vcombine.low %v585_v60, %v589_v58  ;;  %v5300_v54 = vcombine.high %v577_v1, %v581_v2  ;;  %v673_v43 = vld [vmem:[%s6263_s14 + $0x9d8] sm:$0xff] }
 0x1fd   : > { %3961 = vmatpush1.bf16.msra.mxu0 %v5099_v7  ;;  %v569_v7 = vld [vmem:[%s6263_s14 + $0x698] sm:$0xff] }
 0x1fe   : > { %3962 = vmatprep.subr.bf16.mxu0 %v5092_v9  ;;  %v5171_v9 = vcombine.low %v449_v24, %v453_v0  ;;  %v677_v44 = vld [vmem:[%s6263_s14 + $0x9f8] sm:$0xff]  ;;  %v3700_v24 = vadd.f32 %v6766_v41, %v6764_v36 }
 0x1ff   : > { %4002 = vmatpush1.bf16.msra.mxu1 %v5227_v8  ;;  %v573_v8 = vld [vmem:[%s6263_s14 + $0x6b8] sm:$0xff]  ;;  %v5396_v23 = vcombine.high %v673_v43, %v677_v44 }
 0x200   : > { %4003 = vmatprep.subr.bf16.mxu1 %v5220_v10  ;;  %v5299_v10 = vcombine.low %v577_v1, %v581_v2  ;;  %v5292_v12 = vcombine.high %v569_v7, %v573_v8  ;;  %v665_v49 = vld [vmem:[%s6263_s14 + $0x998] sm:$0xff] }
 0x201   : > { %3963 = vmatpush1.bf16.msra.mxu0 %v5091_v15  ;;  %v561_v15 = vld [vmem:[%s6263_s14 + $0x658] sm:$0xff] }
 0x202   : > { %3964 = vmatprep.subr.bf16.mxu0 %v5084_v19  ;;  %v5163_v19 = vcombine.low %v441_v55, %v445_v6  ;;  %v669_v50 = vld [vmem:[%s6263_s14 + $0x9b8] sm:$0xff] }
 0x203   : > { %4004 = vmatpush1.bf16.msra.mxu1 %v5219_v16  ;;  %v565_v16 = vld [vmem:[%s6263_s14 + $0x678] sm:$0xff]  ;;  %v5388_v56 = vcombine.high %v665_v49, %v669_v50  ;;  %v5387_v31 = vcombine.low %v665_v49, %v669_v50 }
 0x204   : > { %4005 = vmatprep.subr.bf16.mxu1 %v5212_v22  ;;  %v5291_v22 = vcombine.low %v569_v7, %v573_v8  ;;  %v5284_v26 = vcombine.high %v561_v15, %v565_v16  ;;  %v657_v58 = vld [vmem:[%s6263_s14 + $0x958] sm:$0xff] }
 0x205   : > { %3965 = vmatpush1.bf16.msra.mxu0 %v5083_v32  ;;  %v553_v32 = vld [vmem:[%s6263_s14 + $0x618] sm:$0xff] }
 0x206   : > { %3966 = vmatprep.subr.bf16.mxu0 %v5204_v35  ;;  %v5155_v35 = vcombine.low %v433_v13, %v437_v14  ;;  %v348_v34 = vld [vmem:[#allocation2 + $0x18] sm:$0xff] }
 0x207   : > { %4006 = vmatpush1.bf16.msra.mxu1 %v5211_v33  ;;  %v557_v33 = vld [vmem:[%s6263_s14 + $0x638] sm:$0xff] }
 0x208   : > { %4007 = vmatprep.subr.bf16.mxu1 %v5332_v38  ;;  %v5283_v38 = vcombine.low %v561_v15, %v565_v16  ;;  %v5276_v42 = vcombine.high %v553_v32, %v557_v33  ;;  %v649_v41 = vld [vmem:[%s6263_s14 + $0x918] sm:$0xff] }
 0x209   : > { %3967 = vmatpush2.bf16.msra.mxu0 %v5203_v45  ;;  %v801_v45 = vld [vmem:[%s6263_s14 + $0xdd8] sm:$0xff] }
 0x20a   : > { %3968 = vmatprep.subr.bf16.mxu0 %v5196_v46  ;;  %v5147_v46 = vcombine.low %v425_v27, %v429_v29  ;;  %v653_v55 = vld [vmem:[%s6263_s14 + $0x938] sm:$0xff] }
 0x20b   : > { %4008 = vmatpush2.bf16.msra.mxu1 %v5331_v20  ;;  %v805_v20 = vld [vmem:[%s6263_s14 + $0xdf8] sm:$0xff]  ;;  %v5371_v27 = vcombine.low %v649_v41, %v653_v55 }
 0x20c   : > { %4009 = vmatprep.subr.bf16.mxu1 %v5324_v47  ;;  %v5275_v47 = vcombine.low %v553_v32, %v557_v33  ;;  %v5524_v48 = vcombine.high %v801_v45, %v805_v20  ;;  %v777_v7 = vld [vmem:[%s6263_s14 + $0xd18] sm:$0xff] }
 0x20d   : > { %3969 = vmatpush2.bf16.msra.mxu0 %v5195_v51  ;;  %v793_v51 = vld [vmem:[%s6263_s14 + $0xd98] sm:$0xff] }
 0x20e   : > { %3970 = vmatprep.subr.bf16.mxu0 %v5188_v52  ;;  %v5395_v52 = vcombine.low %v673_v43, %v677_v44  ;;  %v781_v8 = vld [vmem:[%s6263_s14 + $0xd38] sm:$0xff] }
 0x20f   : > { %4010 = vmatpush2.bf16.msra.mxu1 %v5323_v59  ;;  %v797_v59 = vld [vmem:[%s6263_s14 + $0xdb8] sm:$0xff]  ;;  %v5499_v29 = vcombine.low %v777_v7, %v781_v8 }
 0x210   : > { %4011 = vmatprep.subr.bf16.mxu1 %v5316_v53  ;;  %v5523_v53 = vcombine.low %v801_v45, %v805_v20  ;;  %v5516_v60 = vcombine.high %v793_v51, %v797_v59 }
 0x211   : > { %3971 = vmatpush2.bf16.msra.mxu0 %v5187_v61  ;;  %v661_v61 = vld [vmem:[%s6263_s14 + $0x978] sm:$0xff] }
 0x212   : > { %3972 = vmatprep.subr.bf16.mxu0 %v5180_v63  ;;  %v785_v63 = vld [vmem:[%s6263_s14 + $0xd58] sm:$0xff] }
 0x213   : > { %4012 = vmatpush2.bf16.msra.mxu1 %v5315_v62 }
 0x214   : > { %4013 = vmatprep.subr.bf16.mxu1 %v5308_v18  ;;  %v789_v18 = vld [vmem:[%s6263_s14 + $0xd78] sm:$0xff] }
 0x215   : > { %3973 = vmatpush2.bf16.msra.mxu0 %v5179_v3  ;;  %v5380_v3 = vcombine.high %v657_v58, %v661_v61  ;;  %v5508_v36 = vcombine.high %v785_v63, %v789_v18  ;;  %v5507_v14 = vcombine.low %v785_v63, %v789_v18  ;;  %v737_v63 = vld [vmem:[%s6263_s14 + $0xbd8] sm:$0xff] }
 0x216   : > { %3974 = vmatprep.subr.bf16.mxu0 %v5172_v5  ;;  %v741_v18 = vld [vmem:[%s6263_s14 + $0xbf8] sm:$0xff] }
 0x217   : > { %4014 = vmatpush2.bf16.msra.mxu1 %v5307_v4 }
 0x218   : > { %4015 = vmatprep.subr.bf16.mxu1 %v5300_v54 }
 0x219   : > { %3975 = vmatpush2.bf16.msra.mxu0 %v5171_v9 }
 0x21a   : > { %3976 = vmatprep.subr.bf16.mxu0 %v5164_v11 }
 0x21b   : > { %4016 = vmatpush2.bf16.msra.mxu1 %v5299_v10 }
 0x21c   : > { %4017 = vmatprep.subr.bf16.mxu1 %v5292_v12  ;;  %v5379_v12 = vcombine.low %v657_v58, %v661_v61 }
 0x21d   : > { %3977 = vmatpush2.bf16.msra.mxu0 %v5163_v19  ;;  %v641_v19 = vld [vmem:[%s6263_s14 + $0x8d8] sm:$0xff] }
 0x21e   : > { %3978 = vmatprep.subr.bf16.mxu0 %v5156_v25  ;;  %v769_v25 = vld [vmem:[%s6263_s14 + $0xcd8] sm:$0xff] }
 0x21f   : > { %4018 = vmatpush2.bf16.msra.mxu1 %v5291_v22  ;;  %v645_v22 = vld [vmem:[%s6263_s14 + $0x8f8] sm:$0xff] }
 0x220   : > { %4019 = vmatprep.subr.bf16.mxu1 %v5284_v26  ;;  %v773_v26 = vld [vmem:[%s6263_s14 + $0xcf8] sm:$0xff]  ;;  %v5364_v32 = vcombine.high %v641_v19, %v645_v22  ;;  %v5363_v43 = vcombine.low %v641_v19, %v645_v22 }
 0x221   : > { %3979 = vmatpush2.bf16.msra.mxu0 %v5155_v35  ;;  %v5492_v33 = vcombine.high %v769_v25, %v773_v26  ;;  %v633_v35 = vld [vmem:[%s6263_s14 + $0x898] sm:$0xff]  ;;  %v5491_v44 = vcombine.low %v769_v25, %v773_v26 }
 0x222   : > { %3980 = vmatprep.subr.bf16.mxu0 %v5148_v39  ;;  %v761_v39 = vld [vmem:[%s6263_s14 + $0xc98] sm:$0xff] }
 0x223   : > { %4020 = vmatpush2.bf16.msra.mxu1 %v5283_v38  ;;  %v637_v38 = vld [vmem:[%s6263_s14 + $0x8b8] sm:$0xff] }
 0x224   : > { %4021 = vmatprep.subr.bf16.mxu1 %v5276_v42  ;;  %v765_v42 = vld [vmem:[%s6263_s14 + $0xcb8] sm:$0xff]  ;;  %v5356_v45 = vcombine.high %v633_v35, %v637_v38  ;;  %v5355_v49 = vcombine.low %v633_v35, %v637_v38 }
 0x225   : > { %3981 = vmatpush2.bf16.msra.mxu0 %v5147_v46  ;;  %v5484_v20 = vcombine.high %v761_v39, %v765_v42  ;;  %v625_v46 = vld [vmem:[%s6263_s14 + $0x858] sm:$0xff]  ;;  %v5483_v50 = vcombine.low %v761_v39, %v765_v42 }
 0x226   : > { %4032 = vmatprep.subr.bf16.mxu0 %v5396_v23  ;;  %v753_v23 = vld [vmem:[%s6263_s14 + $0xc58] sm:$0xff] }
 0x227   : > { %4022 = vmatpush2.bf16.msra.mxu1 %v5275_v47  ;;  %v629_v47 = vld [vmem:[%s6263_s14 + $0x878] sm:$0xff] }
 0x228   : > { %4073 = vmatprep.subr.bf16.mxu1 %v5524_v48  ;;  %v3738_v62 = vpop.f32.mrf.mxu0  ;;  %3983 = vmatmul.mubr.bf16.vlgmr.msra.gmra.mxu0 %v6372_v17  ;;  %v5515_v17 = vcombine.low %v793_v51, %v797_v59  ;;  %v757_v48 = vld [vmem:[%s6263_s14 + $0xc78] sm:$0xff]  ;;  %v5348_v51 = vcombine.high %v625_v46, %v629_v47 }
 0x229   : > { %v3739_v0 = vadd.f32 %v3738_v62, %v3698_v57  ;;  %4033 = vmatpush1.bf16.msra.mxu0 %v5395_v52  ;;  %4064 = vmatprep.mubr.bf16.mxu0 %v6390_v28  ;;  %v5372_v28 = vcombine.high %v649_v41, %v653_v55  ;;  %v5476_v59 = vcombine.high %v753_v23, %v757_v48  ;;  %v617_v52 = vld [vmem:[%s6263_s14 + $0x818] sm:$0xff] }
 0x22a   : > { %v3779_v1 = vpop.f32.mrf.mxu1  ;;  %4024 = vmatmul.mubr.bf16.vlgmr.msra.gmra.mxu1 %v6381_v21  ;;  %v3740_v2 = vpop.f32.mrf.mxu0  ;;  %4034 = vmatprep.subr.bf16.mxu0 %v5388_v56  ;;  %v349_v21 = vld [vmem:[#allocation2 + $0x10] sm:$0xff]  ;;  %v745_v56 = vld [vmem:[%s6263_s14 + $0xc18] sm:$0xff]  ;;  %v5475_v58 = vcombine.low %v753_v23, %v757_v48 }
 0x22b   : > { %4074 = vmatpush1.bf16.msra.mxu1 %v5523_v53  ;;  %v3780_v4 = vadd.f32 %v3779_v1, %v3739_v0  ;;  %v3741_v5 = vadd.f32 %v3740_v2, %v3700_v24  ;;  %4105 = vmatprep.mubr.bf16.mxu1 %v6397_v30  ;;  %v5500_v30 = vcombine.high %v777_v7, %v781_v8  ;;  %v621_v53 = vld [vmem:[%s6263_s14 + $0x838] sm:$0xff] }
 0x22c   : > { %v3781_v54 = vpop.f32.mrf.mxu1  ;;  %4075 = vmatprep.subr.bf16.mxu1 %v5516_v60  ;;  %v3742_v6 = vpop.f32.mrf.mxu0  ;;  %v749_v57 = vld [vmem:[%s6263_s14 + $0xc38] sm:$0xff]  ;;  %v5347_v60 = vcombine.low %v625_v46, %v629_v47  ;;  %v5340_v61 = vcombine.high %v617_v52, %v621_v53  ;;  %v5339_v1 = vcombine.low %v617_v52, %v621_v53 }
 0x22d   : > { %v4116_v9 = vadd.f32 %v3780_v4, %v348_v34  ;;  %v3782_v10 = vadd.f32 %v3781_v54, %v3741_v5  ;;  %4035 = vmatpush1.bf16.msra.mxu0 %v5387_v31  ;;  %v5468_v62 = vcombine.high %v745_v56, %v749_v57  ;;  %v865_v24 = vld [vmem:[%s6263_s14 + $0xfd8] sm:$0xff]  ;;  %v5467_v31 = vcombine.low %v745_v56, %v749_v57 }
 0x22e   : > { %v3783_v11 = vpop.f32.mrf.mxu1  ;;  %v3743_v13 = vpop.f32.mrf.mxu0  ;;  %4036 = vmatprep.subr.bf16.mxu0 %v5380_v3  ;;  %v869_v0 = vld [vmem:[%s6263_s14 + $0xff8] sm:$0xff]  ;;  %v5460_v34 = vcombine.high %v737_v63, %v741_v18  ;;  %v5459_v54 = vcombine.low %v737_v63, %v741_v18 }
 0x22f   : > { %4076 = vmatpush1.bf16.msra.mxu1 %v5515_v17  ;;  %4124 = vst [vmem:[#allocation2 + $0x18] sm:$0xff] %v4116_v9  ;;  %v4117_v15 = vadd.f32 %v3782_v10, %v349_v21  ;;  %v5588_v2 = vcombine.high %v865_v24, %v869_v0  ;;  %v729_v17 = vld [vmem:[%s6263_s14 + $0xb98] sm:$0xff] }
 0x230   : > { %v3784_v16 = vpop.f32.mrf.mxu1  ;;  %4077 = vmatprep.subr.bf16.mxu1 %v5508_v36  ;;  %v733_v3 = vld [vmem:[%s6263_s14 + $0xbb8] sm:$0xff]  ;;  %v5587_v36 = vcombine.low %v865_v24, %v869_v0 }
 0x231   : > { %4125 = vst [vmem:[#allocation2 + $0x10] sm:$0xff] %v4117_v15  ;;  %4037 = vmatpush1.bf16.msra.mxu0 %v5379_v12  ;;  %v857_v4 = vld [vmem:[%s6263_s14 + $0xf98] sm:$0xff]  ;;  %v5452_v41 = vcombine.high %v729_v17, %v733_v3  ;;  %v5451_v9 = vcombine.low %v729_v17, %v733_v3 }
 0x232   : > { %4038 = vmatprep.subr.bf16.mxu0 %v5372_v28  ;;  %v861_v5 = vld [vmem:[%s6263_s14 + $0xfb8] sm:$0xff] }
 0x233   : > { %4078 = vmatpush1.bf16.msra.mxu1 %v5507_v14  ;;  %v5580_v55 = vcombine.high %v857_v4, %v861_v5  ;;  %v721_v21 = vld [vmem:[%s6263_s14 + $0xb58] sm:$0xff]  ;;  %v5579_v10 = vcombine.low %v857_v4, %v861_v5 }
 0x234   : > { %4079 = vmatprep.subr.bf16.mxu1 %v5500_v30  ;;  %v725_v6 = vld [vmem:[%s6263_s14 + $0xb78] sm:$0xff] }
 0x235   : > { %4039 = vmatpush1.bf16.msra.mxu0 %v5371_v27  ;;  %v849_v7 = vld [vmem:[%s6263_s14 + $0xf58] sm:$0xff]  ;;  %v5444_v11 = vcombine.high %v721_v21, %v725_v6  ;;  %v5443_v16 = vcombine.low %v721_v21, %v725_v6  ;;  %v350_v6 = vld [vmem:[#allocation2 + $0x8] sm:$0xff] }
 0x236   : > { %4040 = vmatprep.subr.bf16.mxu0 %v5364_v32  ;;  %v853_v8 = vld [vmem:[%s6263_s14 + $0xf78] sm:$0xff] }
 0x237   : > { %4080 = vmatpush1.bf16.msra.mxu1 %v5499_v29  ;;  %v5572_v12 = vcombine.high %v849_v7, %v853_v8  ;;  %v713_v13 = vld [vmem:[%s6263_s14 + $0xb18] sm:$0xff]  ;;  %v5571_v30 = vcombine.low %v849_v7, %v853_v8 }
 0x238   : > { %4081 = vmatprep.subr.bf16.mxu1 %v5492_v33  ;;  %v717_v14 = vld [vmem:[%s6263_s14 + $0xb38] sm:$0xff] }
 0x239   : > { %4041 = vmatpush1.bf16.msra.mxu0 %v5363_v43  ;;  %v841_v28 = vld [vmem:[%s6263_s14 + $0xf18] sm:$0xff]  ;;  %v5436_v19 = vcombine.high %v713_v13, %v717_v14  ;;  %v5435_v32 = vcombine.low %v713_v13, %v717_v14 }
 0x23a   : > { %4042 = vmatprep.subr.bf16.mxu0 %v5356_v45  ;;  %v845_v15 = vld [vmem:[%s6263_s14 + $0xf38] sm:$0xff] }
 0x23b   : > { %4082 = vmatpush1.bf16.msra.mxu1 %v5491_v44  ;;  %v5564_v22 = vcombine.high %v841_v28, %v845_v15  ;;  %v705_v25 = vld [vmem:[%s6263_s14 + $0xad8] sm:$0xff]  ;;  %v5563_v33 = vcombine.low %v841_v28, %v845_v15 }
 0x23c   : > { %4083 = vmatprep.subr.bf16.mxu1 %v5484_v20  ;;  %v709_v26 = vld [vmem:[%s6263_s14 + $0xaf8] sm:$0xff] }
 0x23d   : > { %4043 = vmatpush1.bf16.msra.mxu0 %v5355_v49  ;;  %v833_v27 = vld [vmem:[%s6263_s14 + $0xed8] sm:$0xff]  ;;  %v5428_v35 = vcombine.high %v705_v25, %v709_v26  ;;  %v5427_v45 = vcombine.low %v705_v25, %v709_v26 }
 0x23e   : > { %4044 = vmatprep.subr.bf16.mxu0 %v5348_v51  ;;  %v837_v29 = vld [vmem:[%s6263_s14 + $0xef8] sm:$0xff] }
 0x23f   : > { %4084 = vmatpush1.bf16.msra.mxu1 %v5483_v50  ;;  %v5556_v38 = vcombine.high %v833_v27, %v837_v29  ;;  %v697_v39 = vld [vmem:[%s6263_s14 + $0xa98] sm:$0xff]  ;;  %v5555_v20 = vcombine.low %v833_v27, %v837_v29 }
 0x240   : > { %4085 = vmatprep.subr.bf16.mxu1 %v5476_v59  ;;  %v701_v42 = vld [vmem:[%s6263_s14 + $0xab8] sm:$0xff] }
 0x241   : > { %4045 = vmatpush1.bf16.msra.mxu0 %v5347_v60  ;;  %v825_v43 = vld [vmem:[%s6263_s14 + $0xe98] sm:$0xff]  ;;  %v5420_v46 = vcombine.high %v697_v39, %v701_v42  ;;  %v5419_v51 = vcombine.low %v697_v39, %v701_v42  ;;  %v352_v42 = vld [vmem:[#allocation2 + $0x28] sm:$0xff] }
 0x242   : > { %4046 = vmatprep.subr.bf16.mxu0 %v5340_v61  ;;  %v829_v44 = vld [vmem:[%s6263_s14 + $0xeb8] sm:$0xff] }
 0x243   : > { %4086 = vmatpush1.bf16.msra.mxu1 %v5475_v58  ;;  %v5548_v47 = vcombine.high %v825_v43, %v829_v44  ;;  %v689_v23 = vld [vmem:[%s6263_s14 + $0xa58] sm:$0xff]  ;;  %v5547_v59 = vcombine.low %v825_v43, %v829_v44 }
 0x244   : > { %4087 = vmatprep.subr.bf16.mxu1 %v5468_v62  ;;  %v693_v48 = vld [vmem:[%s6263_s14 + $0xa78] sm:$0xff] }
 0x245   : > { %4047 = vmatpush1.bf16.msra.mxu0 %v5339_v1  ;;  %v817_v49 = vld [vmem:[%s6263_s14 + $0xe58] sm:$0xff]  ;;  %v5412_v52 = vcombine.high %v689_v23, %v693_v48  ;;  %v5411_v61 = vcombine.low %v689_v23, %v693_v48 }
 0x246   : > { %4048 = vmatprep.subr.bf16.mxu0 %v5460_v34  ;;  %v821_v50 = vld [vmem:[%s6263_s14 + $0xe78] sm:$0xff] }
 0x247   : > { %4088 = vmatpush1.bf16.msra.mxu1 %v5467_v31  ;;  %v5540_v53 = vcombine.high %v817_v49, %v821_v50  ;;  %v681_v56 = vld [vmem:[%s6263_s14 + $0xa18] sm:$0xff]  ;;  %v5539_v62 = vcombine.low %v817_v49, %v821_v50 }
 0x248   : > { %4089 = vmatprep.subr.bf16.mxu1 %v5588_v2  ;;  %v685_v57 = vld [vmem:[%s6263_s14 + $0xa38] sm:$0xff] }
 0x249   : > { %4049 = vmatpush2.bf16.msra.mxu0 %v5459_v54  ;;  %v809_v60 = vld [vmem:[%s6263_s14 + $0xe18] sm:$0xff]  ;;  %v5404_v63 = vcombine.high %v681_v56, %v685_v57  ;;  %v5403_v24 = vcombine.low %v681_v56, %v685_v57 }
 0x24a   : > { %4050 = vmatprep.subr.bf16.mxu0 %v5452_v41  ;;  %v813_v58 = vld [vmem:[%s6263_s14 + $0xe38] sm:$0xff] }
 0x24b   : > { %4090 = vmatpush2.bf16.msra.mxu1 %v5587_v36  ;;  %v5532_v18 = vcombine.high %v809_v60, %v813_v58  ;;  %v5531_v0 = vcombine.low %v809_v60, %v813_v58 }
 0x24c   : > { %4091 = vmatprep.subr.bf16.mxu1 %v5580_v55 }
 0x24d   : > { %4051 = vmatpush2.bf16.msra.mxu0 %v5451_v9 }
 0x24e   : > { %4052 = vmatprep.subr.bf16.mxu0 %v5444_v11 }
 0x24f   : > { %4092 = vmatpush2.bf16.msra.mxu1 %v5579_v10 }
 0x250   : > { %4093 = vmatprep.subr.bf16.mxu1 %v5572_v12 }
 0x251   : > { %4053 = vmatpush2.bf16.msra.mxu0 %v5443_v16 }
 0x252   : > { %4054 = vmatprep.subr.bf16.mxu0 %v5436_v19 }
 0x253   : > { %4094 = vmatpush2.bf16.msra.mxu1 %v5571_v30 }
 0x254   : > { %4095 = vmatprep.subr.bf16.mxu1 %v5564_v22 }
 0x255   : > { %4055 = vmatpush2.bf16.msra.mxu0 %v5435_v32 }
 0x256   : > { %4056 = vmatprep.subr.bf16.mxu0 %v5428_v35 }
 0x257   : > { %4096 = vmatpush2.bf16.msra.mxu1 %v5563_v33 }
 0x258   : > { %4097 = vmatprep.subr.bf16.mxu1 %v5556_v38 }
 0x259   : > { %4057 = vmatpush2.bf16.msra.mxu0 %v5427_v45 }
 0x25a   : > { %4058 = vmatprep.subr.bf16.mxu0 %v5420_v46  ;;  %v353_v46 = vld [vmem:[#allocation2 + $0x38] sm:$0xff] }
 0x25b   : > { %4098 = vmatpush2.bf16.msra.mxu1 %v5555_v20 }
 0x25c   : > { %4099 = vmatprep.subr.bf16.mxu1 %v5548_v47 }
 0x25d   : > { %4059 = vmatpush2.bf16.msra.mxu0 %v5419_v51 }
 0x25e   : > { %4060 = vmatprep.subr.bf16.mxu0 %v5412_v52 }
 0x25f   : > { %4100 = vmatpush2.bf16.msra.mxu1 %v5547_v59 }
 0x260   : > { %4101 = vmatprep.subr.bf16.mxu1 %v5540_v53 }
 0x261   : > { %4061 = vmatpush2.bf16.msra.mxu0 %v5411_v61 }
 0x262   : > { %4062 = vmatprep.subr.bf16.mxu0 %v5404_v63 }
 0x263   : > { %4102 = vmatpush2.bf16.msra.mxu1 %v5539_v62 }
 0x264   : > { %4103 = vmatprep.subr.bf16.mxu1 %v5532_v18 }
 0x265   : > { %4063 = vmatpush2.bf16.msra.mxu0 %v5403_v24 }
 0x267   : > { %4104 = vmatpush2.bf16.msra.mxu1 %v5531_v0 }
 0x268   : > { %v3820_v1 = vpop.f32.mrf.mxu0  ;;  %4065 = vmatmul.mubr.bf16.vlgmr.msra.gmra.mxu0 %v6462_v37  ;;  %v351_v37 = vld [vmem:[#allocation2 + $0x20] sm:$0xff] }
 0x26a   : > { %v3861_v31 = vpop.f32.mrf.mxu1  ;;  %4106 = vmatmul.mubr.bf16.vlgmr.msra.gmra.mxu1 %v6468_v40  ;;  %v3822_v34 = vpop.f32.mrf.mxu0 }
 0x26b   : > { %v3862_v54 = vadd.f32 %v3861_v31, %v3820_v1 }
 0x26c   : > { %v3863_v2 = vpop.f32.mrf.mxu1  ;;  %v3824_v17 = vpop.f32.mrf.mxu0 }
 0x26d   : > { %v3864_v41 = vadd.f32 %v3863_v2, %v3822_v34 }
 0x26e   : > { %v3865_v3 = vpop.f32.mrf.mxu1  ;;  %v3825_v4 = vpop.f32.mrf.mxu0 }
 0x270   : > { %v3866_v5 = vpop.f32.mrf.mxu1 }
 0x2a8   : > { %v3902_v36 = vpop.f32.mrf.mxu0 }
 0x2a9   : > { %v3903_v55 = vadd.f32 %v3902_v36, %v3862_v54 }
 0x2aa   : > { %v3943_v21 = vpop.f32.mrf.mxu1  ;;  %v3904_v7 = vpop.f32.mrf.mxu0 }
 0x2ab   : > { %v3944_v8 = vadd.f32 %v3943_v21, %v3903_v55  ;;  %v3905_v9 = vadd.f32 %v3904_v7, %v3864_v41 }
 0x2ac   : > { %v3945_v10 = vpop.f32.mrf.mxu1  ;;  %v3906_v11 = vpop.f32.mrf.mxu0 }
 0x2ad   : > { %v4118_v12 = vadd.f32 %v3944_v8, %v350_v6  ;;  %v3946_v40 = vadd.f32 %v3945_v10, %v3905_v9 }
 0x2ae   : > { %v3947_v13 = vpop.f32.mrf.mxu1  ;;  %v3907_v14 = vpop.f32.mrf.mxu0 }
 0x2af   : > { %4126 = vst [vmem:[#allocation2 + $0x8] sm:$0xff] %v4118_v12  ;;  %v4119_v28 = vadd.f32 %v3946_v40, %v351_v37 }
 0x2b0   : > { %v3948_v15 = vpop.f32.mrf.mxu1 }
 0x2b1   : > { %4127 = vst [vmem:[#allocation2 + $0x20] sm:$0xff] %v4119_v28 }
 0x2e8   : > { %v3984_v16 = vpop.f32.mrf.mxu0 }
 0x2ea   : > { %v4025_v30 = vpop.f32.mrf.mxu1  ;;  %v3986_v19 = vpop.f32.mrf.mxu0 }
 0x2eb   : > { %v4026_v32 = vadd.f32 %v4025_v30, %v3984_v16 }
 0x2ec   : > { %v4027_v22 = vpop.f32.mrf.mxu1  ;;  %v3988_v25 = vpop.f32.mrf.mxu0 }
 0x2ed   : > { %v4028_v35 = vadd.f32 %v4027_v22, %v3986_v19 }
 0x2ee   : > { %v4029_v26 = vpop.f32.mrf.mxu1  ;;  %v3989_v27 = vpop.f32.mrf.mxu0 }
 0x2f0   : > { %v4030_v29 = vpop.f32.mrf.mxu1 }
 0x328   : > { %v4066_v33 = vpop.f32.mrf.mxu0 }
 0x329   : > { %v4067_v38 = vadd.f32 %v4066_v33, %v4026_v32 }
 0x32a   : > { %v4107_v39 = vpop.f32.mrf.mxu1  ;;  %v4068_v43 = vpop.f32.mrf.mxu0 }
 0x32b   : > { %v4108_v44 = vadd.f32 %v4107_v39, %v4067_v38  ;;  %v4069_v45 = vadd.f32 %v4068_v43, %v4028_v35 }
 0x32c   : > { %v4109_v20 = vpop.f32.mrf.mxu1  ;;  %v4070_v47 = vpop.f32.mrf.mxu0 }
 0x32d   : > { %v4120_v23 = vadd.f32 %v4108_v44, %v352_v42  ;;  %v4110_v48 = vadd.f32 %v4109_v20, %v4069_v45  ;;  %4133 = sbr.rel (%p5589_p7) target bundleno = 1142 (0x476), region = 64 }
 0x32e   : > { %v4111_v49 = vpop.f32.mrf.mxu1  ;;  %v4071_v50 = vpop.f32.mrf.mxu0 }
 0x32f   : > { %4128 = vst [vmem:[#allocation2 + $0x28] sm:$0xff] %v4120_v23  ;;  %v4121_v51 = vadd.f32 %v4110_v48, %v353_v46 }
 0x330   : > { %v4112_v59 = vpop.f32.mrf.mxu1 }
 0x331   : > { %4129 = vst [vmem:[#allocation2 + $0x38] sm:$0xff] %v4121_v51 }
 0x332   : > { %v5847_v52 = vld [vmem:[#allocation7 + $0x78] sm:$0xff]   ;;  %v5851_v60 = vld [vmem:[#allocation7 + $0x70] sm:$0xff]   ;;  %v5855_v63 = vld [vmem:[#allocation7 + $0x68] sm:$0xff]   ;;  %v4144_v5 = vlaneseq }
 0x333   : > { %v5848_v53 = vld [vmem:[#allocation7 + $0xf8] sm:$0xff]   ;;  %5660 = vmatprep.subr.bf16.mxu0 %v5847_v52  ;;  %v5852_v58 = vld [vmem:[#allocation7 + $0xf0] sm:$0xff]   ;;  %v5856_v18 = vld [vmem:[#allocation7 + $0xe8] sm:$0xff]  }
 0x334   : > { %v5849_v56 = vld [vmem:[#allocation7 + $0x38] sm:$0xff]   ;;  %5682 = vmatprep.subr.bf16.mxu1 %v5848_v53  ;;  %v5853_v61 = vld [vmem:[#allocation7 + $0x30] sm:$0xff]   ;;  %v5857_v24 = vld [vmem:[#allocation7 + $0x28] sm:$0xff]   ;;  %v6897_v21 = vshrl.u32 %v4144_v5, 7 }
 0x335   : > { %v5850_v57 = vld [vmem:[#allocation7 + $0xb8] sm:$0xff]   ;;  %5661 = vmatpush3.bf16.msra.mxu0 %v5849_v56  ;;  %v5854_v62 = vld [vmem:[#allocation7 + $0xb0] sm:$0xff]   ;;  %v5858_v0 = vld [vmem:[#allocation7 + $0xa8] sm:$0xff]  }
 0x336   : > { %5683 = vmatpush3.bf16.msra.mxu1 %v5850_v57  ;;  %5662 = vmatprep.subr.bf16.mxu0 %v5851_v60  ;;  %v5859_v1 = vld [vmem:[#allocation7 + $0x60] sm:$0xff]   ;;  %v5863_v17 = vld [vmem:[#allocation7 + $0x58] sm:$0xff]   ;;  %v5867_v36 = vld [vmem:[#allocation7 + $0x50] sm:$0xff]   ;;  %v4150_v10 = vsub.s32 1, %v6897_v21  ;;  %v4158_v11 = vsub.s32 3, %v6897_v21  ;;  %v4146_v40 = vsub.s32 0, %v6897_v21 }
 0x337   : > { %5684 = vmatprep.subr.bf16.mxu1 %v5852_v58  ;;  %v5860_v31 = vld [vmem:[#allocation7 + $0xe0] sm:$0xff]   ;;  %v5864_v3 = vld [vmem:[#allocation7 + $0xd8] sm:$0xff]   ;;  %v5868_v41 = vld [vmem:[#allocation7 + $0xd0] sm:$0xff]   ;;  %v4154_v14 = vsub.s32 2, %v6897_v21  ;;  %v4166_v58 = vsub.s32 5, %v6897_v21 }
 0x338   : > { %v5861_v34 = vld [vmem:[#allocation7 + $0x20] sm:$0xff]   ;;  %v5865_v4 = vld [vmem:[#allocation7 + $0x18] sm:$0xff]   ;;  %v5869_v55 = vld [vmem:[#allocation7 + $0x10] sm:$0xff]  }
 0x339   : > { %5663 = vmatpush3.bf16.msra.mxu0 %v5853_v61  ;;  %v5862_v2 = vld [vmem:[#allocation7 + $0xa0] sm:$0xff]   ;;  %v5866_v54 = vld [vmem:[#allocation7 + $0x98] sm:$0xff]   ;;  %v5870_v6 = vld [vmem:[#allocation7 + $0x90] sm:$0xff]   ;;  %v4174_v61 = vsub.s32 7, %v6897_v21 }
 0x33a   : > { %5685 = vmatpush3.bf16.msra.mxu1 %v5854_v62  ;;  %5664 = vmatprep.subr.bf16.mxu0 %v5855_v63  ;;  %v5871_v7 = vld [vmem:[#allocation7 + $0x48] sm:$0xff]   ;;  %v5875_v12 = vld [vmem:[#allocation7 + $0x40] sm:$0xff]   ;;  %v4135_v16 = vld [vmem:[#allocation2] sm:$0xff]  ;;  %v4162_v62 = vsub.s32 4, %v6897_v21  ;;  %v4170_v63 = vsub.s32 6, %v6897_v21 }
 0x33b   : > { %5686 = vmatprep.subr.bf16.mxu1 %v5856_v18  ;;  %v5872_v8 = vld [vmem:[#allocation7 + $0xc8] sm:$0xff]   ;;  %v5876_v13 = vld [vmem:[#allocation7 + $0xc0] sm:$0xff]   ;;  %v4142_v30 = vld [vmem:[#allocation5] sm:$0xff] }
 0x33c   : > { %v5873_v9 = vld [vmem:[#allocation7 + $0x8] sm:$0xff]   ;;  %v5877_v28 = vld [vmem:[#allocation7] sm:$0xff]   ;;  %v4151_v22 = vrot.slane %v4142_v30, %v4150_v10  ;;  %v4159_v25 = vrot.slane %v4142_v30, %v4158_v11  ;;  %v5879_v26 = vld [vmem:[#allocation7 + $0x178] sm:$0xff]   ;;  %v4147_v27 = vrot.slane %v4142_v30, %v4146_v40  ;;  %v4155_v29 = vrot.slane %v4142_v30, %v4154_v14 }
 0x33d   : > { %5665 = vmatpush3.bf16.msra.mxu0 %v5857_v24  ;;  %v5874_v37 = vld [vmem:[#allocation7 + $0x88] sm:$0xff]   ;;  %v5878_v15 = vld [vmem:[#allocation7 + $0x80] sm:$0xff]   ;;  %v5880_v32 = vld [vmem:[#allocation7 + $0x1f8] sm:$0xff]   ;;  %v4167_v18 = vrot.slane %v4142_v30, %v4166_v58  ;;  %v4175_v24 = vrot.slane %v4142_v30, %v4174_v61 }
 0x33e   : > { %5687 = vmatpush3.bf16.msra.mxu1 %v5858_v0  ;;  %5666 = vmatprep.subr.bf16.mxu0 %v5859_v1  ;;  %v4137_v19 = vld [vmem:[#allocation2 + $0x10] sm:$0xff]  ;;  %v4185_v33 = vadd.f32 %v4151_v22, %v4135_v16  ;;  %v4136_v39 = vld [vmem:[#allocation2 + $0x18] sm:$0xff]  ;;  %v4163_v0 = vrot.slane %v4142_v30, %v4162_v62  ;;  %v4171_v1 = vrot.slane %v4142_v30, %v4170_v63  ;;  %v5881_v30 = vld [vmem:[#allocation7 + $0x138] sm:$0xff]  }
 0x33f   : > { %5688 = vmatprep.subr.bf16.mxu1 %v5860_v31  ;;  %v4187_v35 = vadd.f32 %v4159_v25, %v4137_v19  ;;  %v4134_v38 = vld [vmem:[#allocation2 + $0x30] sm:$0xff]  ;;  %v4186_v43 = vadd.f32 %v4155_v29, %v4136_v39  ;;  %v4139_v31 = vld [vmem:[#allocation2 + $0x20] sm:$0xff]  ;;  %v5883_v25 = vld [vmem:[#allocation7 + $0x170] sm:$0xff]  }
 0x340   : > { %v4184_v42 = vadd.f32 %v4147_v27, %v4134_v38  ;;  %v4193_v44 = vsub.f32 0.0, %v4185_v33  ;;  %v5882_v22 = vld [vmem:[#allocation7 + $0x1b8] sm:$0xff]   ;;  %v5884_v27 = vld [vmem:[#allocation7 + $0x1f0] sm:$0xff]   ;;  %v5889_v38 = vld [vmem:[#allocation7 + $0x128] sm:$0xff]  }
 0x341   : > { %5667 = vmatpush3.bf16.msra.mxu0 %v5861_v34  ;;  %v4195_v45 = vsub.f32 0.0, %v4187_v35  ;;  %v4194_v46 = vsub.f32 0.0, %v4186_v43  ;;  %v4141_v34 = vld [vmem:[#allocation2 + $0x38] sm:$0xff]  ;;  %v5890_v39 = vld [vmem:[#allocation7 + $0x1a8] sm:$0xff]  }
 0x342   : > { %5689 = vmatpush3.bf16.msra.mxu1 %v5862_v2  ;;  %5668 = vmatprep.subr.bf16.mxu0 %v5863_v17  ;;  %v4192_v20 = vsub.f32 0.0, %v4184_v42  ;;  %v4202_v47 = vmul.f32 1.442695, %v4193_v44  ;;  %v6907_v2 = vadd.f32 %v4167_v18, %v4139_v31  ;;  %v6909_v17 = vadd.f32 %v4175_v24, %v4141_v34  ;;  %v5885_v29 = vld [vmem:[#allocation7 + $0x130] sm:$0xff]   ;;  %v5893_v44 = vld [vmem:[#allocation7 + $0x120] sm:$0xff]   ;;  %v5903_v62 = vld [vmem:[#allocation7 + $0x148] sm:$0xff]  }
 0x343   : > { %5690 = vmatprep.subr.bf16.mxu1 %v5864_v3  ;;  %v4206_v23 = vmul.f32 1.442695, %v4195_v45  ;;  %v4204_v49 = vmul.f32 1.442695, %v4194_v46  ;;  %v4138_v3 = vld [vmem:[#allocation2 + $0x8] sm:$0xff]  ;;  %v5895_v46 = vld [vmem:[#allocation7 + $0x158] sm:$0xff]  }
 0x344   : > { %v4200_v48 = vmul.f32 1.442695, %v4192_v20  ;;  %5911 = vpow2.f32 %v4202_v47  ;;  %v6911_v5 = vadd.f32 %v4163_v0, %v4138_v3  ;;  %v5894_v20 = vld [vmem:[#allocation7 + $0x1a0] sm:$0xff]   ;;  %v5901_v58 = vld [vmem:[#allocation7 + $0x110] sm:$0xff]   ;;  %v5904_v63 = vld [vmem:[#allocation7 + $0x1c8] sm:$0xff]  }
 0x345   : > { %5669 = vmatpush3.bf16.msra.mxu0 %v5865_v4  ;;  %5913 = vpow2.f32 %v4206_v23  ;;  %v4140_v4 = vld [vmem:[#allocation2 + $0x28] sm:$0xff]  ;;  %v5896_v23 = vld [vmem:[#allocation7 + $0x1d8] sm:$0xff]   ;;  %v5902_v61 = vld [vmem:[#allocation7 + $0x190] sm:$0xff]  }
 0x346   : > { %5691 = vmatpush3.bf16.msra.mxu1 %v5866_v54  ;;  %5670 = vmatprep.subr.bf16.mxu0 %v5867_v36  ;;  %5915 = vpow2.f32 %v4200_v48  ;;  %v6913_v54 = vadd.f32 %v4171_v1, %v4140_v4  ;;  %v5905_v18 = vld [vmem:[#allocation7 + $0x108] sm:$0xff]   ;;  %v5907_v0 = vld [vmem:[#allocation7 + $0x140] sm:$0xff]  }
 0x347   : > { %5692 = vmatprep.subr.bf16.mxu1 %v5868_v41  ;;  %5917 = vpow2.f32 %v4204_v49  ;;  %v4197_v41 = vsub.f32 0.0, %v6907_v2  ;;  %v5906_v24 = vld [vmem:[#allocation7 + $0x188] sm:$0xff]   ;;  %v5908_v1 = vld [vmem:[#allocation7 + $0x1c0] sm:$0xff]  }
 0x348   : > { %v5909_v31 = vld [vmem:[#allocation7 + $0x100] sm:$0xff]  }
 0x349   : > { %5671 = vmatpush3.bf16.msra.mxu0 %v5869_v55  ;;  %v4199_v55 = vsub.f32 0.0, %v6909_v17  ;;  %v5910_v3 = vld [vmem:[#allocation7 + $0x180] sm:$0xff]  }
 0x34a   : > { %5693 = vmatpush3.bf16.msra.mxu1 %v5870_v6  ;;  %5672 = vmatprep.subr.bf16.mxu0 %v5871_v7  ;;  %v4196_v7 = vsub.f32 0.0, %v6911_v5 }
 0x34b   : > { %5694 = vmatprep.subr.bf16.mxu1 %v5872_v8  ;;  %v4198_v8 = vsub.f32 0.0, %v6913_v54  ;;  %v4214_v11 = vmul.f32 1.442695, %v4199_v55 }
 0x34c   : > { %v4208_v14 = vmul.f32 1.442695, %v4196_v7 }
 0x34d   : > { %5673 = vmatpush3.bf16.msra.mxu0 %v5873_v9 }
 0x34e   : > { %5695 = vmatpush3.bf16.msra.mxu1 %v5874_v37  ;;  %5674 = vmatprep.subr.bf16.mxu0 %v5875_v12  ;;  %v4210_v37 = vmul.f32 1.442695, %v4197_v41 }
 0x34f   : > { %5696 = vmatprep.subr.bf16.mxu1 %v5876_v13 }
 0x351   : > { %5675 = vmatpush3.bf16.msra.mxu0 %v5877_v28  ;;  %v5912_v50 = vpop.eup %5911  ;;  %v4212_v28 = vmul.f32 1.442695, %v4198_v8 }
 0x352   : > { %5697 = vmatpush3.bf16.msra.mxu1 %v5878_v15  ;;  %5704 = vmatprep.subr.bf16.mxu0 %v5879_v26  ;;  %v5914_v51 = vpop.eup %5913  ;;  %v4217_v59 = vadd.f32 1.0, %v5912_v50 }
 0x353   : > { %5726 = vmatprep.subr.bf16.mxu1 %v5880_v32  ;;  %v5916_v52 = vpop.eup %5915  ;;  %v4219_v53 = vadd.f32 1.0, %v5914_v51  ;;  %v5886_v32 = vld [vmem:[#allocation7 + $0x1b0] sm:$0xff]  }
 0x354   : > { %v5918_v56 = vpop.eup %5917  ;;  %5919 = vrcp.f32 %v4217_v59  ;;  %v4216_v57 = vadd.f32 1.0, %v5916_v52  ;;  %v5897_v59 = vld [vmem:[#allocation7 + $0x118] sm:$0xff]  }
 0x355   : > { %5921 = vrcp.f32 %v4219_v53  ;;  %v4218_v60 = vadd.f32 1.0, %v5918_v56  ;;  %v5898_v53 = vld [vmem:[#allocation7 + $0x198] sm:$0xff]   ;;  %v5899_v56 = vld [vmem:[#allocation7 + $0x150] sm:$0xff]  }
 0x356   : > { %5923 = vrcp.f32 %v4216_v57 }
 0x357   : > { %5925 = vrcp.f32 %v4218_v60  ;;  %v5900_v60 = vld [vmem:[#allocation7 + $0x1d0] sm:$0xff]  }
 0x358   : > { %5927 = vpow2.f32 %v4210_v37 }
 0x359   : > { %5929 = vpow2.f32 %v4214_v11 }
 0x35a   : > { %5931 = vpow2.f32 %v4208_v14 }
 0x35b   : > { %5933 = vpow2.f32 %v4212_v28 }
 0x361   : > { %v5920_v36 = vpop.eup %5919 }
 0x362   : > { %v5922_v21 = vpop.eup %5921  ;;  %v4233_v6 = vmul.f32 %v5920_v36, %v4185_v33  ;;  %v5887_v33 = vld [vmem:[#allocation7 + $0x168] sm:$0xff]  }
 0x363   : > { %v5924_v9 = vpop.eup %5923  ;;  %v4235_v10 = vmul.f32 %v5922_v21, %v4187_v35  ;;  %v5888_v35 = vld [vmem:[#allocation7 + $0x1e8] sm:$0xff]  }
 0x364   : > { %v5926_v12 = vpop.eup %5925  ;;  %v4241_v40 = vpack.c.bf16 %v4233_v6, %v4233_v6  ;;  %v4232_v13 = vmul.f32 %v5924_v9, %v4184_v42  ;;  %v5891_v42 = vld [vmem:[#allocation7 + $0x160] sm:$0xff]  }
 0x365   : > { %v4243_v15 = vpack.c.bf16 %v4235_v10, %v4235_v10  ;;  %v4234_v16 = vmul.f32 %v5926_v12, %v4186_v43  ;;  %v5892_v43 = vld [vmem:[#allocation7 + $0x1e0] sm:$0xff]   ;;  %v5928_v45 = vpop.eup %5927 }
 0x366   : > { %4799 = vmatprep.mubr.bf16.mxu0 %v4241_v40  ;;  %v4240_v19 = vpack.c.bf16 %v4232_v13, %v4232_v13  ;;  %v5930_v47 = vpop.eup %5929  ;;  %v4221_v48 = vadd.f32 1.0, %v5928_v45 }
 0x367   : > { %4839 = vmatprep.mubr.bf16.mxu1 %v4243_v15  ;;  %v4242_v26 = vpack.c.bf16 %v4234_v16, %v4234_v16  ;;  %v5932_v49 = vpop.eup %5931  ;;  %v4223_v50 = vadd.f32 1.0, %v5930_v47 }
 0x368   : > { %4800 = vmatmul.mubr.bf16.vlgmr.msra.gmra.mxu0 %v4240_v19  ;;  %v5934_v51 = vpop.eup %5933  ;;  %5935 = vrcp.f32 %v4221_v48  ;;  %v4220_v52 = vadd.f32 1.0, %v5932_v49 }
 0x369   : > { %4840 = vmatmul.mubr.bf16.vlgmr.msra.gmra.mxu1 %v4242_v26  ;;  %5705 = vmatpush3.bf16.msra.mxu0 %v5881_v30  ;;  %5937 = vrcp.f32 %v4223_v50  ;;  %v4222_v57 = vadd.f32 1.0, %v5934_v51 }
 0x36a   : > { %5727 = vmatpush3.bf16.msra.mxu1 %v5882_v22  ;;  %5706 = vmatprep.subr.bf16.mxu0 %v5883_v25  ;;  %5939 = vrcp.f32 %v4220_v52 }
 0x36b   : > { %5728 = vmatprep.subr.bf16.mxu1 %v5884_v27  ;;  %5941 = vrcp.f32 %v4222_v57 }
 0x36d   : > { %5707 = vmatpush3.bf16.msra.mxu0 %v5885_v29 }
 0x36e   : > { %5729 = vmatpush3.bf16.msra.mxu1 %v5886_v32  ;;  %5708 = vmatprep.subr.bf16.mxu0 %v5887_v33 }
 0x36f   : > { %5730 = vmatprep.subr.bf16.mxu1 %v5888_v35 }
 0x371   : > { %5709 = vmatpush3.bf16.msra.mxu0 %v5889_v38 }
 0x372   : > { %5731 = vmatpush3.bf16.msra.mxu1 %v5890_v39  ;;  %5710 = vmatprep.subr.bf16.mxu0 %v5891_v42 }
 0x373   : > { %5732 = vmatprep.subr.bf16.mxu1 %v5892_v43 }
 0x375   : > { %5711 = vmatpush3.bf16.msra.mxu0 %v5893_v44  ;;  %v5936_v34 = vpop.eup %5935 }
 0x376   : > { %5733 = vmatpush3.bf16.msra.mxu1 %v5894_v20  ;;  %5712 = vmatprep.subr.bf16.mxu0 %v5895_v46  ;;  %v5938_v4 = vpop.eup %5937  ;;  %v4237_v36 = vmul.f32 %v5936_v34, %v6907_v2 }
 0x377   : > { %5734 = vmatprep.subr.bf16.mxu1 %v5896_v23  ;;  %v5940_v41 = vpop.eup %5939  ;;  %v4239_v55 = vmul.f32 %v5938_v4, %v6909_v17 }
 0x378   : > { %v5942_v21 = vpop.eup %5941  ;;  %v4245_v6 = vpack.c.bf16 %v4237_v36, %v4237_v36  ;;  %v4236_v7 = vmul.f32 %v5940_v41, %v6911_v5  ;;  %v5590_v5 = vld [vmem:[#allocation8] ss:$0 sm:$0xff] }
 0x379   : > { %5713 = vmatpush3.bf16.msra.mxu0 %v5897_v59  ;;  %v4247_v8 = vpack.c.bf16 %v4239_v55, %v4239_v55  ;;  %v4238_v9 = vmul.f32 %v5942_v21, %v6913_v54 }
 0x37a   : > { %5735 = vmatpush3.bf16.msra.mxu1 %v5898_v53  ;;  %5714 = vmatprep.subr.bf16.mxu0 %v5899_v56  ;;  %v4244_v10 = vpack.c.bf16 %v4236_v7, %v4236_v7 }
 0x37b   : > { %5736 = vmatprep.subr.bf16.mxu1 %v5900_v60  ;;  %4879 = vmatprep.mubr.bf16.mxu0 %v4245_v6  ;;  %v4246_v37 = vpack.c.bf16 %v4238_v9, %v4238_v9 }
 0x37c   : > { %4919 = vmatprep.mubr.bf16.mxu1 %v4247_v8 }
 0x37d   : > { %5715 = vmatpush3.bf16.msra.mxu0 %v5901_v58 }
 0x37e   : > { %5737 = vmatpush3.bf16.msra.mxu1 %v5902_v61  ;;  %5716 = vmatprep.subr.bf16.mxu0 %v5903_v62 }
 0x37f   : > { %5738 = vmatprep.subr.bf16.mxu1 %v5904_v63 }
 0x381   : > { %5717 = vmatpush3.bf16.msra.mxu0 %v5905_v18 }
 0x382   : > { %5739 = vmatpush3.bf16.msra.mxu1 %v5906_v24  ;;  %5718 = vmatprep.subr.bf16.mxu0 %v5907_v0 }
 0x383   : > { %5740 = vmatprep.subr.bf16.mxu1 %v5908_v1 }
 0x385   : > { %5719 = vmatpush3.bf16.msra.mxu0 %v5909_v31 }
 0x386   : > { %5741 = vmatpush3.bf16.msra.mxu1 %v5910_v3 }
 0x388   : > { %4880 = vmatmul.mubr.bf16.vlgmr.msra.gmra.mxu0 %v4244_v10 }
 0x389   : > { %4920 = vmatmul.mubr.bf16.vlgmr.msra.gmra.mxu1 %v4246_v37 }
 0x428   : > { %v5676_v11 = vpop.f32.mrf.mxu0 }
 0x429   : > { %v5698_v2 = vpop.f32.mrf.mxu1 }
 0x42a   : > { %v5677_v12 = vpop.f32.mrf.mxu0 }
 0x42b   : > { %v5699_v40 = vpop.f32.mrf.mxu1  ;;  %v5678_v15 = vadd.f32 %v5677_v12, %v5676_v11 }
 0x42c   : > { %v5679_v17 = vpop.f32.mrf.mxu0  ;;  %v5700_v19 = vadd.f32 %v5699_v40, %v5698_v2 }
 0x42d   : > { %v5701_v13 = vpop.f32.mrf.mxu1  ;;  %v4802_v16 = vadd.f32 %v5678_v15, %v5590_v5 }
 0x42e   : > { %v5680_v14 = vpop.f32.mrf.mxu0 }
 0x42f   : > { %v5702_v28 = vpop.f32.mrf.mxu1  ;;  %v4842_v25 = vadd.f32 %v5700_v19, %v4802_v16 }
 0x448   : > { %v5720_v30 = vpop.f32.mrf.mxu0 }
 0x449   : > { %v5742_v54 = vpop.f32.mrf.mxu1 }
 0x44a   : > { %v5721_v22 = vpop.f32.mrf.mxu0 }
 0x44b   : > { %v5722_v26 = vadd.f32 %v5721_v22, %v5720_v30  ;;  %v5743_v27 = vpop.f32.mrf.mxu1 }
 0x44c   : > { %v5723_v29 = vpop.f32.mrf.mxu0  ;;  %v5744_v33 = vadd.f32 %v5743_v27, %v5742_v54 }
 0x44d   : > { %v4882_v32 = vadd.f32 %v5722_v26, %v4842_v25  ;;  %v5745_v35 = vpop.f32.mrf.mxu1 }
 0x44e   : > { %v5724_v38 = vpop.f32.mrf.mxu0 }
 0x44f   : > { %v4922_v39 = vadd.f32 %v5744_v33, %v4882_v32  ;;  %v5746_v42 = vpop.f32.mrf.mxu1 }
 0x451   : > { %v4927_v43 = vsub.f32 0.0, %v4922_v39 }
 0x453   : > { %v4928_v44 = vmul.f32 1.442695, %v4927_v43 }
 0x455   : > { %5943 = vpow2.f32 %v4928_v44 }
 0x462   : > { %v5944_v45 = vpop.eup %5943 }
 0x463   : > { %v4930_v20 = vadd.f32 1.0, %v5944_v45 }
 0x465   : > { %5945 = vrcp.f32 %v4930_v20 }
 0x472   : > { %v5946_v46 = vpop.eup %5945 }
 0x473   : > { %v4932_v47 = vmul.f32 %v5946_v46, %v4922_v39 }
 0x475   : > { %4933 = vst [vmem:[%s6949_s5] sm:$0xff] %v4932_v47 }
 0x476 PF: > { %s20_s23 = sadd.s32 1, %s6111_s23   ;;  %s6962_s18 = smov %s6095_s19 }
 0x477   : > { %p17_p11 = scmp.ge.s32.totalorder %s20_s23, 6   ;;  %s6963_s19 = smov %s6099_s20 }
 0x478   : > { %s6964_s20 = smov %s6245_s9  ;;  %s6965_s21 = smov %s6107_s22 }
 0x479   : > { %s6966_s22 = smov %s6968_s6  ;;  %19 = sbr.rel (!%p17_p11) target bundleno = 6 (0x6), region = 103 }
 0x47e   :  { %4953 = vsyncpa [#allocation4], 1 }
 0x47f   :  { %4955 = vsyncpa [#allocation4 + $0x1], 1 }
 0x480   :  { %4956 = vsyncpa [#allocation6], 1 }
 0x481   :  { %4957 = vsyncpa [#allocation9], 1 }

</bundles_post_ra>
